<compile_context>
chip_gen: v7x
topology: tpu7x:2x2x1
jax: 0.10.0
libtpu: 0.0.40
codegen_flags: <defaults>
</compile_context>

<pallas_src>
import functools
import math

import jax
import jax.numpy as jnp
from jax.experimental import pallas as pl
from jax.experimental.pallas import tpu as pltpu


# ---------------------------------------------------------------------------
# in-kernel helpers
# ---------------------------------------------------------------------------
def _layer_norm(x, w, b, eps=1e-5):
    # one-pass statistics: var = E[x^2] - mu^2 (no second dependent reduction)
    mu = jnp.mean(x, axis=-1, keepdims=True)
    ms = jnp.mean(x * x, axis=-1, keepdims=True)
    var = ms - mu * mu
    return (x - mu) * jax.lax.rsqrt(var + eps) * w + b


def _mha(q, k, v, wo, bo, *, batch, nhead):
    """Multi-head attention.

    q: (B*Tq, D) f32 (softmax scale already folded into the q projection),
    k/v: (B*Tk, D) f32, wo: (D, D) bf16, bo: (1, D) f32 -> (B*Tq, D) f32.

    Heads are static lane slices feeding batch-batched 3-D contractions (no
    leading-axis stacking, no (H, N, D) f32 intermediate); per-head contexts
    are reassembled on the lane axis so the output projection is a single
    full-width (N, D) @ (D, D) MXU matmul.
    """
    n_q, D = q.shape
    hd = D // nhead
    Tq = n_q // batch
    Tk = k.shape[0] // batch
    q3 = q.reshape(batch, Tq, D).astype(jnp.bfloat16)
    k3 = k.reshape(batch, Tk, D).astype(jnp.bfloat16)
    v3 = v.reshape(batch, Tk, D).astype(jnp.bfloat16)

    ctx_heads = []
    for h in range(nhead):
        sl = slice(h * hd, (h + 1) * hd)
        s = jnp.einsum("bqd,bkd->bqk", q3[:, :, sl], k3[:, :, sl],
                       preferred_element_type=jnp.float32)       # f32 scores
        s = s - jnp.max(s, axis=-1, keepdims=True)
        p = jnp.exp(s)
        p = p * pl.reciprocal(jnp.sum(p, axis=-1, keepdims=True), approx=True)
        ctx_heads.append(
            jnp.einsum("bqk,bkd->bqd", p.astype(jnp.bfloat16), v3[:, :, sl],
                       preferred_element_type=jnp.float32))      # (B, Tq, hd)
    ctx = jnp.concatenate(ctx_heads, axis=-1)                    # (B, Tq, D)
    ctx = ctx.reshape(batch * Tq, D).astype(jnp.bfloat16)
    return jnp.dot(ctx, wo, preferred_element_type=jnp.float32) + bo


# ---------------------------------------------------------------------------
# fused decoder-stack kernel (grid = (batch_tiles, num_layers))
# ---------------------------------------------------------------------------
def decoder_stack_kernel(
        # grid-invariant inputs
        tgt_ref, qpos_ref, km_ref, vmem_ref, fnw_ref, fnb_ref,
        # per-layer tensors (leading layer axis selected by grid axis 1)
        lnw_ref, lnb_ref,
        sa_wqk_ref, sa_bqk_ref, sa_wv_ref, sa_bv_ref, sa_wo_ref, sa_bo_ref,
        ca_wq_ref, ca_bq_ref, ca_wk_ref, ca_bk_ref,
        ca_wv_ref, ca_bv_ref, ca_wo_ref, ca_bo_ref,
        w1_ref, b1_ref, w2_ref, b2_ref,
        # output + scratch
        out_ref, x_sc,
        *, nhead):
    layer = pl.program_id(1)
    n_layers = pl.num_programs(1)

    bsz, T, D = tgt_ref.shape
    S = km_ref.shape[1]

    # layer 0: load resident f32 activations from tgt
    @pl.when(layer == 0)
    def _():
        x_sc[...] = tgt_ref[...]

    x = x_sc[...].reshape(bsz * T, D)          # (B*T, D) folded rows, f32
    qp = qpos_ref[...].reshape(bsz * T, D)

    ln_w = lnw_ref[0]                          # (3, D) f32 (LN1/LN2/LN3 weights)
    ln_b = lnb_ref[0]

    def dot(a, w_bf16, b_f32):
        # bf16 operands -> MXU, f32 accumulation, f32 bias add.
        return jnp.dot(a.astype(jnp.bfloat16), w_bf16,
                       preferred_element_type=jnp.float32) + b_f32

    # ---- self-attention (q, k carry query_pos; v does not) ----------------
    qk = dot(x + qp, sa_wqk_ref[0], sa_bqk_ref[0])                 # (B*T, 2D)
    v = dot(x, sa_wv_ref[0], sa_bv_ref[0])                         # (B*T, D)
    sa = _mha(qk[:, :D], qk[:, D:], v, sa_wo_ref[0], sa_bo_ref[0],
              batch=bsz, nhead=nhead)
    x = _layer_norm(x + sa, ln_w[0:1], ln_b[0:1])

    # ---- cross-attention (k = memory + pos [precombined], v = v_memory) ---
    km = km_ref[...].reshape(bsz * S, D)       # bf16, from wrapper
    vm = vmem_ref[...].reshape(bsz * S, D)     # bf16, from wrapper
    qc = dot(x + qp, ca_wq_ref[0], ca_bq_ref[0])
    kc = dot(km, ca_wk_ref[0], ca_bk_ref[0])
    vc = dot(vm, ca_wv_ref[0], ca_bv_ref[0])
    ca = _mha(qc, kc, vc, ca_wo_ref[0], ca_bo_ref[0],
              batch=bsz, nhead=nhead)
    x = _layer_norm(x + ca, ln_w[1:2], ln_b[1:2])

    # ---- feed-forward ------------------------------------------------------
    h1 = jnp.maximum(dot(x, w1_ref[0], b1_ref[0]), 0.0).astype(jnp.bfloat16)
    ff = jnp.dot(h1, w2_ref[0], preferred_element_type=jnp.float32) + b2_ref[0]
    x = _layer_norm(x + ff, ln_w[2:3], ln_b[2:3])

    x_sc[...] = x.reshape(bsz, T, D)           # keep activations resident in VMEM

    # final LayerNorm of the TransformerDecoder, written once at the last layer
    @pl.when(layer == n_layers - 1)
    def _():
        out_ref[...] = _layer_norm(
            x, fnw_ref[...], fnb_ref[...]).reshape(bsz, T, D)


# ---------------------------------------------------------------------------
# wrapper
# ---------------------------------------------------------------------------
def transformer_decoder(tgt, memory, v_memory, pos, query_pos, params, nhead,
                        *, batch_tile=None, vmem_limit_bytes=48 * 1024 * 1024):
    """Fused TransformerDecoder forward.  Batch-first (B, T, D) / (B, S, D).

    batch_tile: B (default) on single-TensorCore chips (v5e/v6e) so each
    layer's weight block is streamed exactly once; use B//2 on v7x (2 TCs).
    """
    B, T, D = tgt.shape
    S = memory.shape[1]
    L = params["lnw"].shape[0]
    H = nhead
    assert D % H == 0
    hd = D // H
    scale = 1.0 / math.sqrt(hd)
    if batch_tile is None:
        batch_tile = B
    assert B % batch_tile == 0

    grid = (B // batch_tile, L)
    bf16 = lambda a: a.astype(jnp.bfloat16)

    # memory-side K source: fold pos in ONCE, ship bf16 (halves memory-side DMA)
    km = bf16(memory + pos)
    vmem = bf16(v_memory)

    # fold the 1/sqrt(hd) softmax scale into the q-projection weights + biases
    sa_wqk = jnp.concatenate([params["sa_wqk"][:, :, :D] * scale,
                              params["sa_wqk"][:, :, D:]], axis=-1)
    sa_bqk = jnp.concatenate([params["sa_bqk"][:, :, :D] * scale,
                              params["sa_bqk"][:, :, D:]], axis=-1)
    ca_wq = params["ca_wq"] * scale
    ca_bq = params["ca_bq"] * scale

    inputs = [
        tgt, query_pos, km, vmem,
        params["fn_w"], params["fn_b"],
        params["lnw"], params["lnb"],
        bf16(sa_wqk), sa_bqk,
        bf16(params["sa_wv"]), params["sa_bv"],
        bf16(params["sa_wo"]), params["sa_bo"],
        bf16(ca_wq), ca_bq,
        bf16(params["ca_wk"]), params["ca_bk"],
        bf16(params["ca_wv"]), params["ca_bv"],
        bf16(params["ca_wo"]), params["ca_bo"],
        bf16(params["w1"]), params["b1"],
        bf16(params["w2"]), params["b2"],
    ]

    def batch_spec(seq):
        return pl.BlockSpec((batch_tile, seq, D), lambda bt, l: (bt, 0, 0))

    def const_spec(shape):
        zeros = (0,) * len(shape)
        return pl.BlockSpec(shape, lambda bt, l: zeros)

    def layer_spec(arr):
        trailing = (0,) * (arr.ndim - 1)
        return pl.BlockSpec((1,) + arr.shape[1:], lambda bt, l: (l,) + trailing)

    in_specs = ([batch_spec(T), batch_spec(T), batch_spec(S), batch_spec(S),
                 const_spec((1, D)), const_spec((1, D))]
                + [layer_spec(a) for a in inputs[6:]])

    return pl.pallas_call(
        functools.partial(decoder_stack_kernel, nhead=nhead),
        out_shape=jax.ShapeDtypeStruct((B, T, D), jnp.float32),
        grid=grid,
        in_specs=in_specs,
        out_specs=pl.BlockSpec((batch_tile, T, D), lambda bt, l: (bt, 0, 0)),
        scratch_shapes=[pltpu.VMEM((batch_tile, T, D), jnp.float32)],
        compiler_params=pltpu.CompilerParams(
            dimension_semantics=("parallel", "arbitrary"),
            vmem_limit_bytes=vmem_limit_bytes),
    )(*inputs)


# ---------------------------------------------------------------------------
# parameters
# ---------------------------------------------------------------------------
def init_params(key, num_layers, D, F, nhead):
    L = num_layers
    keys = iter(jax.random.split(key, 24))

    def nrm(shape, scale=0.02):
        return jax.random.normal(next(keys), shape, jnp.float32) * scale

    return dict(
        lnw=1.0 + nrm((L, 3, D), 0.05), lnb=nrm((L, 3, D), 0.05),
        sa_wqk=nrm((L, D, 2 * D)), sa_bqk=nrm((L, 1, 2 * D)),
        sa_wv=nrm((L, D, D)),      sa_bv=nrm((L, 1, D)),
        sa_wo=nrm((L, D, D)),      sa_bo=nrm((L, 1, D)),
        ca_wq=nrm((L, D, D)),      ca_bq=nrm((L, 1, D)),
        ca_wk=nrm((L, D, D)),      ca_bk=nrm((L, 1, D)),
        ca_wv=nrm((L, D, D)),      ca_bv=nrm((L, 1, D)),
        ca_wo=nrm((L, D, D)),      ca_bo=nrm((L, 1, D)),
        w1=nrm((L, D, F)),         b1=nrm((L, 1, F)),
        w2=nrm((L, F, D)),         b2=nrm((L, 1, D)),
        fn_w=1.0 + nrm((1, D), 0.05), fn_b=nrm((1, D), 0.05),
    )


# ---------------------------------------------------------------------------
# pure-JAX reference (same math, same bf16 cast points) for correctness check
# ---------------------------------------------------------------------------
def reference_decoder(tgt, memory, v_memory, pos, query_pos, params, nhead):
    B, T, D = tgt.shape
    H = nhead
    hd = D // H
    scale = 1.0 / math.sqrt(hd)
    bf = lambda a: a.astype(jnp.bfloat16)

    def ln(v, w, b, eps=1e-5):
        mu = jnp.mean(v, -1, keepdims=True)
        var = jnp.mean((v - mu) ** 2, -1, keepdims=True)
        return (v - mu) * jax.lax.rsqrt(var + eps) * w + b

    def proj(a, w, b):
        return jnp.einsum("bnd,df->bnf", bf(a), bf(w),
                          preferred_element_type=jnp.float32) + b

    def mha(q, k, v, wo, bo):
        Tq, Tk = q.shape[1], k.shape[1]
        qh = bf(q).reshape(B, Tq, H, hd).transpose(0, 2, 1, 3)
        kh = bf(k).reshape(B, Tk, H, hd).transpose(0, 2, 1, 3)
        vh = bf(v).reshape(B, Tk, H, hd).transpose(0, 2, 1, 3)
        s = jnp.einsum("bhqd,bhkd->bhqk", qh, kh,
                       preferred_element_type=jnp.float32) * scale
        p = jax.nn.softmax(s, axis=-1)
        ctx = jnp.einsum("bhqk,bhkd->bhqd", bf(p), vh,
                         preferred_element_type=jnp.float32)
        ctx = ctx.transpose(0, 2, 1, 3).reshape(B, Tq, D)
        return jnp.einsum("bqd,df->bqf", bf(ctx), bf(wo),
                          preferred_element_type=jnp.float32) + bo

    km_src = memory + pos
    x = tgt
    L = params["lnw"].shape[0]
    for l in range(L):
        lw, lb = params["lnw"][l], params["lnb"][l]
        qk = proj(x + query_pos, params["sa_wqk"][l], params["sa_bqk"][l])
        v = proj(x, params["sa_wv"][l], params["sa_bv"][l])
        sa = mha(qk[..., :D], qk[..., D:], v,
                 params["sa_wo"][l], params["sa_bo"][l])
        x = ln(x + sa, lw[0], lb[0])

        q = proj(x + query_pos, params["ca_wq"][l], params["ca_bq"][l])
        k = proj(km_src, params["ca_wk"][l], params["ca_bk"][l])
        vv = proj(v_memory, params["ca_wv"][l], params["ca_bv"][l])
        ca = mha(q, k, vv, params["ca_wo"][l], params["ca_bo"][l])
        x = ln(x + ca, lw[1], lb[1])

        h = jnp.maximum(proj(x, params["w1"][l], params["b1"][l]), 0.0)
        ff = proj(h, params["w2"][l], params["b2"][l])
        x = ln(x + ff, lw[2], lb[2])
    return ln(x, params["fn_w"][0], params["fn_b"][0])


if __name__ == "__main__":
    # small shapes consistent with the module: (batch, queries, d_model), memory len S
    # NOTE: production DETR-like shapes have D a multiple of 128; tune/benchmark there.
    B, T, S, D = 2, 8, 16, 32
    nhead, d_ffn, num_layers = 4, 64, 2

    key = jax.random.PRNGKey(0)
    k_in, k_p = jax.random.split(key)
    k1, k2, k3, k4, k5 = jax.random.split(k_in, 5)
    tgt = jax.random.normal(k1, (B, T, D), jnp.float32)
    query_pos = jax.random.normal(k2, (B, T, D), jnp.float32)
    memory = jax.random.normal(k3, (B, S, D), jnp.float32)
    pos = jax.random.normal(k4, (B, S, D), jnp.float32)
    v_memory = jax.random.normal(k5, (B, S, D), jnp.float32)

    params = init_params(k_p, num_layers, D, d_ffn, nhead)

    out = transformer_decoder(tgt, memory, v_memory, pos, query_pos, params, nhead)
    out = jax.block_until_ready(out)

    ref = jax.block_until_ready(
        reference_decoder(tgt, memory, v_memory, pos, query_pos, params, nhead))

    assert out.shape == (B, T, D)
    err = float(jnp.max(jnp.abs(out - ref)))
    # tolerance covers bf16 matmul operands, folded softmax scale, approx reciprocal
    assert jnp.allclose(out, ref, atol=3e-2, rtol=3e-2), \
        f"mismatch vs reference, max abs err={err}"
    print("KERNEL_OK")
</pallas_src>

<mosaic_0001>
module attributes {stable_mosaic.version = 11 : i64} {
  func.func @decoder_stack_kernel(%arg0: i32, %arg1: i32, %arg2: memref<2x8x32xf32, #tpu.memory_space<vmem>>, %arg3: memref<2x8x32xf32, #tpu.memory_space<vmem>>, %arg4: memref<2x16x32xbf16, #tpu.memory_space<vmem>>, %arg5: memref<2x16x32xbf16, #tpu.memory_space<vmem>>, %arg6: memref<1x32xf32, #tpu.memory_space<vmem>>, %arg7: memref<1x32xf32, #tpu.memory_space<vmem>>, %arg8: memref<1x3x32xf32, #tpu.memory_space<vmem>>, %arg9: memref<1x3x32xf32, #tpu.memory_space<vmem>>, %arg10: memref<1x32x64xbf16, #tpu.memory_space<vmem>>, %arg11: memref<1x1x64xf32, #tpu.memory_space<vmem>>, %arg12: memref<1x32x32xbf16, #tpu.memory_space<vmem>>, %arg13: memref<1x1x32xf32, #tpu.memory_space<vmem>>, %arg14: memref<1x32x32xbf16, #tpu.memory_space<vmem>>, %arg15: memref<1x1x32xf32, #tpu.memory_space<vmem>>, %arg16: memref<1x32x32xbf16, #tpu.memory_space<vmem>>, %arg17: memref<1x1x32xf32, #tpu.memory_space<vmem>>, %arg18: memref<1x32x32xbf16, #tpu.memory_space<vmem>>, %arg19: memref<1x1x32xf32, #tpu.memory_space<vmem>>, %arg20: memref<1x32x32xbf16, #tpu.memory_space<vmem>>, %arg21: memref<1x1x32xf32, #tpu.memory_space<vmem>>, %arg22: memref<1x32x32xbf16, #tpu.memory_space<vmem>>, %arg23: memref<1x1x32xf32, #tpu.memory_space<vmem>>, %arg24: memref<1x32x64xbf16, #tpu.memory_space<vmem>>, %arg25: memref<1x1x64xf32, #tpu.memory_space<vmem>>, %arg26: memref<1x64x32xbf16, #tpu.memory_space<vmem>>, %arg27: memref<1x1x32xf32, #tpu.memory_space<vmem>>, %arg28: memref<2x8x32xf32, #tpu.memory_space<vmem>>, %arg29: memref<2x8x32xf32, #tpu.memory_space<vmem>>) attributes {dimension_semantics = [#tpu.dimension_semantics<parallel>, #tpu.dimension_semantics<arbitrary>], iteration_bounds = array<i64: 1, 2>, scalar_prefetch = 0 : i64, scratch_operands = 1 : i64, tpu.core_type = #tpu.core_type<tc>, window_params = [{transform_indices = @transform_0, window_bounds = array<i64: 2, 8, 32>}, {transform_indices = @transform_1, window_bounds = array<i64: 2, 8, 32>}, {transform_indices = @transform_2, window_bounds = array<i64: 2, 16, 32>}, {transform_indices = @transform_3, window_bounds = array<i64: 2, 16, 32>}, {pipeline_mode = #tpu.pipeline_mode<synchronous>, transform_indices = @transform_4, window_bounds = array<i64: 1, 32>}, {pipeline_mode = #tpu.pipeline_mode<synchronous>, transform_indices = @transform_5, window_bounds = array<i64: 1, 32>}, {transform_indices = @transform_6, window_bounds = array<i64: 1, 3, 32>}, {transform_indices = @transform_7, window_bounds = array<i64: 1, 3, 32>}, {transform_indices = @transform_8, window_bounds = array<i64: 1, 32, 64>}, {transform_indices = @transform_9, window_bounds = array<i64: 1, 1, 64>}, {transform_indices = @transform_10, window_bounds = array<i64: 1, 32, 32>}, {transform_indices = @transform_11, window_bounds = array<i64: 1, 1, 32>}, {transform_indices = @transform_12, window_bounds = array<i64: 1, 32, 32>}, {transform_indices = @transform_13, window_bounds = array<i64: 1, 1, 32>}, {transform_indices = @transform_14, window_bounds = array<i64: 1, 32, 32>}, {transform_indices = @transform_15, window_bounds = array<i64: 1, 1, 32>}, {transform_indices = @transform_16, window_bounds = array<i64: 1, 32, 32>}, {transform_indices = @transform_17, window_bounds = array<i64: 1, 1, 32>}, {transform_indices = @transform_18, window_bounds = array<i64: 1, 32, 32>}, {transform_indices = @transform_19, window_bounds = array<i64: 1, 1, 32>}, {transform_indices = @transform_20, window_bounds = array<i64: 1, 32, 32>}, {transform_indices = @transform_21, window_bounds = array<i64: 1, 1, 32>}, {transform_indices = @transform_22, window_bounds = array<i64: 1, 32, 64>}, {transform_indices = @transform_23, window_bounds = array<i64: 1, 1, 64>}, {transform_indices = @transform_24, window_bounds = array<i64: 1, 64, 32>}, {transform_indices = @transform_25, window_bounds = array<i64: 1, 1, 32>}, {transform_indices = @transform_26, window_bounds = array<i64: 2, 8, 32>}]} {
    %c0_i32 = arith.constant 0 : i32
    %0 = arith.cmpi eq, %arg1, %c0_i32 : i32
    %1 = arith.extui %0 : i1 to i32
    %c0_i32_0 = arith.constant 0 : i32
    %2 = arith.cmpi ne, %1, %c0_i32_0 : i32
    scf.if %2 {
      %c0_132 = arith.constant 0 : index
      %c0_133 = arith.constant 0 : index
      %c0_134 = arith.constant 0 : index
      %315 = vector.load %arg2[%c0_132, %c0_133, %c0_134] : memref<2x8x32xf32, #tpu.memory_space<vmem>>, vector<2x8x32xf32>
      %c0_135 = arith.constant 0 : index
      %c0_136 = arith.constant 0 : index
      %c0_137 = arith.constant 0 : index
      %316 = vector.load %arg29[%c0_135, %c0_136, %c0_137] : memref<2x8x32xf32, #tpu.memory_space<vmem>>, vector<2x8x32xf32>
      tpu.vector_store %arg29[%c0_135, %c0_136, %c0_137], %315 {strides = array<i32>} : memref<2x8x32xf32, #tpu.memory_space<vmem>>, vector<2x8x32xf32>,
    } else {
    }
    %c0 = arith.constant 0 : index
    %c0_1 = arith.constant 0 : index
    %c0_2 = arith.constant 0 : index
    %3 = vector.load %arg29[%c0, %c0_1, %c0_2] : memref<2x8x32xf32, #tpu.memory_space<vmem>>, vector<2x8x32xf32>
    %4 = vector.shape_cast %3 : vector<2x8x32xf32> to vector<16x32xf32>
    %c0_3 = arith.constant 0 : index
    %c0_4 = arith.constant 0 : index
    %c0_5 = arith.constant 0 : index
    %5 = vector.load %arg3[%c0_3, %c0_4, %c0_5] : memref<2x8x32xf32, #tpu.memory_space<vmem>>, vector<2x8x32xf32>
    %6 = vector.shape_cast %5 : vector<2x8x32xf32> to vector<16x32xf32>
    %c0_6 = arith.constant 0 : index
    %c0_7 = arith.constant 0 : index
    %c0_8 = arith.constant 0 : index
    %7 = vector.load %arg8[%c0_6, %c0_7, %c0_8] : memref<1x3x32xf32, #tpu.memory_space<vmem>>, vector<1x3x32xf32>
    %8 = vector.shape_cast %7 : vector<1x3x32xf32> to vector<3x32xf32>
    %c0_9 = arith.constant 0 : index
    %c0_10 = arith.constant 0 : index
    %c0_11 = arith.constant 0 : index
    %9 = vector.load %arg9[%c0_9, %c0_10, %c0_11] : memref<1x3x32xf32, #tpu.memory_space<vmem>>, vector<1x3x32xf32>
    %10 = vector.shape_cast %9 : vector<1x3x32xf32> to vector<3x32xf32>
    %11 = arith.addf %4, %6 : vector<16x32xf32>
    %c0_12 = arith.constant 0 : index
    %c0_13 = arith.constant 0 : index
    %c0_14 = arith.constant 0 : index
    %12 = vector.load %arg10[%c0_12, %c0_13, %c0_14] : memref<1x32x64xbf16, #tpu.memory_space<vmem>>, vector<1x32x64xbf16>
    %13 = vector.shape_cast %12 : vector<1x32x64xbf16> to vector<32x64xbf16>
    %c0_15 = arith.constant 0 : index
    %c0_16 = arith.constant 0 : index
    %c0_17 = arith.constant 0 : index
    %14 = vector.load %arg11[%c0_15, %c0_16, %c0_17] : memref<1x1x64xf32, #tpu.memory_space<vmem>>, vector<1x1x64xf32>
    %15 = vector.shape_cast %14 : vector<1x1x64xf32> to vector<1x64xf32>
    %16 = arith.truncf %11 : vector<16x32xf32> to vector<16x32xbf16>
    %cst = arith.constant dense<0.000000e+00> : vector<16x64xf32>
    %17 = tpu.matmul %16, %13, %cst {dimension_numbers = #tpu.dot_dimension_numbers<[1], [0], [0], [1], [0, 0, 1, 1], [], []>} : vector<16x32xbf16>, vector<32x64xbf16>, vector<16x64xf32> -> vector<16x64xf32>
    %18 = vector.broadcast %15 : vector<1x64xf32> to vector<16x64xf32>
    %19 = arith.addf %17, %18 : vector<16x64xf32>
    %c0_18 = arith.constant 0 : index
    %c0_19 = arith.constant 0 : index
    %c0_20 = arith.constant 0 : index
    %20 = vector.load %arg12[%c0_18, %c0_19, %c0_20] : memref<1x32x32xbf16, #tpu.memory_space<vmem>>, vector<1x32x32xbf16>
    %21 = vector.shape_cast %20 : vector<1x32x32xbf16> to vector<32x32xbf16>
    %c0_21 = arith.constant 0 : index
    %c0_22 = arith.constant 0 : index
    %c0_23 = arith.constant 0 : index
    %22 = vector.load %arg13[%c0_21, %c0_22, %c0_23] : memref<1x1x32xf32, #tpu.memory_space<vmem>>, vector<1x1x32xf32>
    %23 = vector.shape_cast %22 : vector<1x1x32xf32> to vector<1x32xf32>
    %24 = arith.truncf %4 : vector<16x32xf32> to vector<16x32xbf16>
    %cst_24 = arith.constant dense<0.000000e+00> : vector<16x32xf32>
    %25 = tpu.matmul %24, %21, %cst_24 {dimension_numbers = #tpu.dot_dimension_numbers<[1], [0], [0], [1], [0, 0, 1, 1], [], []>} : vector<16x32xbf16>, vector<32x32xbf16>, vector<16x32xf32> -> vector<16x32xf32>
    %26 = vector.broadcast %23 : vector<1x32xf32> to vector<16x32xf32>
    %27 = arith.addf %25, %26 : vector<16x32xf32>
    %28 = vector.extract_strided_slice %19 {offsets = [0, 0], sizes = [16, 32], strides = [1, 1]} : vector<16x64xf32> to vector<16x32xf32>
    %29 = vector.extract_strided_slice %19 {offsets = [0, 32], sizes = [16, 32], strides = [1, 1]} : vector<16x64xf32> to vector<16x32xf32>
    %c0_25 = arith.constant 0 : index
    %c0_26 = arith.constant 0 : index
    %c0_27 = arith.constant 0 : index
    %30 = vector.load %arg14[%c0_25, %c0_26, %c0_27] : memref<1x32x32xbf16, #tpu.memory_space<vmem>>, vector<1x32x32xbf16>
    %31 = vector.shape_cast %30 : vector<1x32x32xbf16> to vector<32x32xbf16>
    %c0_28 = arith.constant 0 : index
    %c0_29 = arith.constant 0 : index
    %c0_30 = arith.constant 0 : index
    %32 = vector.load %arg15[%c0_28, %c0_29, %c0_30] : memref<1x1x32xf32, #tpu.memory_space<vmem>>, vector<1x1x32xf32>
    %33 = vector.shape_cast %32 : vector<1x1x32xf32> to vector<1x32xf32>
    %34 = vector.shape_cast %28 : vector<16x32xf32> to vector<2x8x32xf32>
    %35 = arith.truncf %34 : vector<2x8x32xf32> to vector<2x8x32xbf16>
    %36 = vector.shape_cast %29 : vector<16x32xf32> to vector<2x8x32xf32>
    %37 = arith.truncf %36 : vector<2x8x32xf32> to vector<2x8x32xbf16>
    %38 = vector.shape_cast %27 : vector<16x32xf32> to vector<2x8x32xf32>
    %39 = arith.truncf %38 : vector<2x8x32xf32> to vector<2x8x32xbf16>
    %40 = vector.extract_strided_slice %35 {offsets = [0, 0, 0], sizes = [2, 8, 8], strides = [1, 1, 1]} : vector<2x8x32xbf16> to vector<2x8x8xbf16>
    %41 = vector.extract_strided_slice %37 {offsets = [0, 0, 0], sizes = [2, 8, 8], strides = [1, 1, 1]} : vector<2x8x32xbf16> to vector<2x8x8xbf16>
    "tpu.trace_start"() <{level = 10 : i32, message = "bqd,bkd->bqk"}> : () -> ()
    %cst_31 = arith.constant dense<0.000000e+00> : vector<2x8x8xf32>
    %42 = tpu.matmul %40, %41, %cst_31 {dimension_numbers = #tpu.dot_dimension_numbers<[2], [2], [1], [1], [0, 0, 0, 1, 1, 1], [0], [0]>} : vector<2x8x8xbf16>, vector<2x8x8xbf16>, vector<2x8x8xf32> -> vector<2x8x8xf32>
    "tpu.trace_stop"() : () -> ()
    %cst_32 = arith.constant dense<0xFF800000> : vector<2x8xf32>
    %43 = vector.multi_reduction <maximumf>, %42, %cst_32 [2] : vector<2x8x8xf32> to vector<2x8xf32>
    %44 = vector.shape_cast %43 : vector<2x8xf32> to vector<2x8x1xf32>
    %45 = vector.broadcast %44 : vector<2x8x1xf32> to vector<2x8x8xf32>
    %46 = arith.subf %42, %45 : vector<2x8x8xf32>
    %47 = math.exp %46 : vector<2x8x8xf32>
    %cst_33 = arith.constant dense<0.000000e+00> : vector<2x8xf32>
    %48 = vector.multi_reduction <add>, %47, %cst_33 [2] : vector<2x8x8xf32> to vector<2x8xf32>
    %49 = vector.shape_cast %48 : vector<2x8xf32> to vector<2x8x1xf32>
    %50 = tpu.reciprocal %49 {approx = true} : vector<2x8x1xf32> -> vector<2x8x1xf32>
    %51 = vector.broadcast %50 : vector<2x8x1xf32> to vector<2x8x8xf32>
    %52 = arith.mulf %47, %51 : vector<2x8x8xf32>
    %53 = arith.truncf %52 : vector<2x8x8xf32> to vector<2x8x8xbf16>
    %54 = vector.extract_strided_slice %39 {offsets = [0, 0, 0], sizes = [2, 8, 8], strides = [1, 1, 1]} : vector<2x8x32xbf16> to vector<2x8x8xbf16>
    "tpu.trace_start"() <{level = 10 : i32, message = "bqk,bkd->bqd"}> : () -> ()
    %cst_34 = arith.constant dense<0.000000e+00> : vector<2x8x8xf32>
    %55 = tpu.matmul %53, %54, %cst_34 {dimension_numbers = #tpu.dot_dimension_numbers<[2], [1], [1], [2], [0, 0, 0, 1, 1, 2], [0], [0]>} : vector<2x8x8xbf16>, vector<2x8x8xbf16>, vector<2x8x8xf32> -> vector<2x8x8xf32>
    "tpu.trace_stop"() : () -> ()
    %56 = vector.extract_strided_slice %35 {offsets = [0, 0, 8], sizes = [2, 8, 8], strides = [1, 1, 1]} : vector<2x8x32xbf16> to vector<2x8x8xbf16>
    %57 = vector.extract_strided_slice %37 {offsets = [0, 0, 8], sizes = [2, 8, 8], strides = [1, 1, 1]} : vector<2x8x32xbf16> to vector<2x8x8xbf16>
    "tpu.trace_start"() <{level = 10 : i32, message = "bqd,bkd->bqk"}> : () -> ()
    %cst_35 = arith.constant dense<0.000000e+00> : vector<2x8x8xf32>
    %58 = tpu.matmul %56, %57, %cst_35 {dimension_numbers = #tpu.dot_dimension_numbers<[2], [2], [1], [1], [0, 0, 0, 1, 1, 1], [0], [0]>} : vector<2x8x8xbf16>, vector<2x8x8xbf16>, vector<2x8x8xf32> -> vector<2x8x8xf32>
    "tpu.trace_stop"() : () -> ()
    %cst_36 = arith.constant dense<0xFF800000> : vector<2x8xf32>
    %59 = vector.multi_reduction <maximumf>, %58, %cst_36 [2] : vector<2x8x8xf32> to vector<2x8xf32>
    %60 = vector.shape_cast %59 : vector<2x8xf32> to vector<2x8x1xf32>
    %61 = vector.broadcast %60 : vector<2x8x1xf32> to vector<2x8x8xf32>
    %62 = arith.subf %58, %61 : vector<2x8x8xf32>
    %63 = math.exp %62 : vector<2x8x8xf32>
    %cst_37 = arith.constant dense<0.000000e+00> : vector<2x8xf32>
    %64 = vector.multi_reduction <add>, %63, %cst_37 [2] : vector<2x8x8xf32> to vector<2x8xf32>
    %65 = vector.shape_cast %64 : vector<2x8xf32> to vector<2x8x1xf32>
    %66 = tpu.reciprocal %65 {approx = true} : vector<2x8x1xf32> -> vector<2x8x1xf32>
    %67 = vector.broadcast %66 : vector<2x8x1xf32> to vector<2x8x8xf32>
    %68 = arith.mulf %63, %67 : vector<2x8x8xf32>
    %69 = arith.truncf %68 : vector<2x8x8xf32> to vector<2x8x8xbf16>
    %70 = vector.extract_strided_slice %39 {offsets = [0, 0, 8], sizes = [2, 8, 8], strides = [1, 1, 1]} : vector<2x8x32xbf16> to vector<2x8x8xbf16>
    "tpu.trace_start"() <{level = 10 : i32, message = "bqk,bkd->bqd"}> : () -> ()
    %cst_38 = arith.constant dense<0.000000e+00> : vector<2x8x8xf32>
    %71 = tpu.matmul %69, %70, %cst_38 {dimension_numbers = #tpu.dot_dimension_numbers<[2], [1], [1], [2], [0, 0, 0, 1, 1, 2], [0], [0]>} : vector<2x8x8xbf16>, vector<2x8x8xbf16>, vector<2x8x8xf32> -> vector<2x8x8xf32>
    "tpu.trace_stop"() : () -> ()
    %72 = vector.extract_strided_slice %35 {offsets = [0, 0, 16], sizes = [2, 8, 8], strides = [1, 1, 1]} : vector<2x8x32xbf16> to vector<2x8x8xbf16>
    %73 = vector.extract_strided_slice %37 {offsets = [0, 0, 16], sizes = [2, 8, 8], strides = [1, 1, 1]} : vector<2x8x32xbf16> to vector<2x8x8xbf16>
    "tpu.trace_start"() <{level = 10 : i32, message = "bqd,bkd->bqk"}> : () -> ()
    %cst_39 = arith.constant dense<0.000000e+00> : vector<2x8x8xf32>
    %74 = tpu.matmul %72, %73, %cst_39 {dimension_numbers = #tpu.dot_dimension_numbers<[2], [2], [1], [1], [0, 0, 0, 1, 1, 1], [0], [0]>} : vector<2x8x8xbf16>, vector<2x8x8xbf16>, vector<2x8x8xf32> -> vector<2x8x8xf32>
    "tpu.trace_stop"() : () -> ()
    %cst_40 = arith.constant dense<0xFF800000> : vector<2x8xf32>
    %75 = vector.multi_reduction <maximumf>, %74, %cst_40 [2] : vector<2x8x8xf32> to vector<2x8xf32>
    %76 = vector.shape_cast %75 : vector<2x8xf32> to vector<2x8x1xf32>
    %77 = vector.broadcast %76 : vector<2x8x1xf32> to vector<2x8x8xf32>
    %78 = arith.subf %74, %77 : vector<2x8x8xf32>
    %79 = math.exp %78 : vector<2x8x8xf32>
    %cst_41 = arith.constant dense<0.000000e+00> : vector<2x8xf32>
    %80 = vector.multi_reduction <add>, %79, %cst_41 [2] : vector<2x8x8xf32> to vector<2x8xf32>
    %81 = vector.shape_cast %80 : vector<2x8xf32> to vector<2x8x1xf32>
    %82 = tpu.reciprocal %81 {approx = true} : vector<2x8x1xf32> -> vector<2x8x1xf32>
    %83 = vector.broadcast %82 : vector<2x8x1xf32> to vector<2x8x8xf32>
    %84 = arith.mulf %79, %83 : vector<2x8x8xf32>
    %85 = arith.truncf %84 : vector<2x8x8xf32> to vector<2x8x8xbf16>
    %86 = vector.extract_strided_slice %39 {offsets = [0, 0, 16], sizes = [2, 8, 8], strides = [1, 1, 1]} : vector<2x8x32xbf16> to vector<2x8x8xbf16>
    "tpu.trace_start"() <{level = 10 : i32, message = "bqk,bkd->bqd"}> : () -> ()
    %cst_42 = arith.constant dense<0.000000e+00> : vector<2x8x8xf32>
    %87 = tpu.matmul %85, %86, %cst_42 {dimension_numbers = #tpu.dot_dimension_numbers<[2], [1], [1], [2], [0, 0, 0, 1, 1, 2], [0], [0]>} : vector<2x8x8xbf16>, vector<2x8x8xbf16>, vector<2x8x8xf32> -> vector<2x8x8xf32>
    "tpu.trace_stop"() : () -> ()
    %88 = vector.extract_strided_slice %35 {offsets = [0, 0, 24], sizes = [2, 8, 8], strides = [1, 1, 1]} : vector<2x8x32xbf16> to vector<2x8x8xbf16>
    %89 = vector.extract_strided_slice %37 {offsets = [0, 0, 24], sizes = [2, 8, 8], strides = [1, 1, 1]} : vector<2x8x32xbf16> to vector<2x8x8xbf16>
    "tpu.trace_start"() <{level = 10 : i32, message = "bqd,bkd->bqk"}> : () -> ()
    %cst_43 = arith.constant dense<0.000000e+00> : vector<2x8x8xf32>
    %90 = tpu.matmul %88, %89, %cst_43 {dimension_numbers = #tpu.dot_dimension_numbers<[2], [2], [1], [1], [0, 0, 0, 1, 1, 1], [0], [0]>} : vector<2x8x8xbf16>, vector<2x8x8xbf16>, vector<2x8x8xf32> -> vector<2x8x8xf32>
    "tpu.trace_stop"() : () -> ()
    %cst_44 = arith.constant dense<0xFF800000> : vector<2x8xf32>
    %91 = vector.multi_reduction <maximumf>, %90, %cst_44 [2] : vector<2x8x8xf32> to vector<2x8xf32>
    %92 = vector.shape_cast %91 : vector<2x8xf32> to vector<2x8x1xf32>
    %93 = vector.broadcast %92 : vector<2x8x1xf32> to vector<2x8x8xf32>
    %94 = arith.subf %90, %93 : vector<2x8x8xf32>
    %95 = math.exp %94 : vector<2x8x8xf32>
    %cst_45 = arith.constant dense<0.000000e+00> : vector<2x8xf32>
    %96 = vector.multi_reduction <add>, %95, %cst_45 [2] : vector<2x8x8xf32> to vector<2x8xf32>
    %97 = vector.shape_cast %96 : vector<2x8xf32> to vector<2x8x1xf32>
    %98 = tpu.reciprocal %97 {approx = true} : vector<2x8x1xf32> -> vector<2x8x1xf32>
    %99 = vector.broadcast %98 : vector<2x8x1xf32> to vector<2x8x8xf32>
    %100 = arith.mulf %95, %99 : vector<2x8x8xf32>
    %101 = arith.truncf %100 : vector<2x8x8xf32> to vector<2x8x8xbf16>
    %102 = vector.extract_strided_slice %39 {offsets = [0, 0, 24], sizes = [2, 8, 8], strides = [1, 1, 1]} : vector<2x8x32xbf16> to vector<2x8x8xbf16>
    "tpu.trace_start"() <{level = 10 : i32, message = "bqk,bkd->bqd"}> : () -> ()
    %cst_46 = arith.constant dense<0.000000e+00> : vector<2x8x8xf32>
    %103 = tpu.matmul %101, %102, %cst_46 {dimension_numbers = #tpu.dot_dimension_numbers<[2], [1], [1], [2], [0, 0, 0, 1, 1, 2], [0], [0]>} : vector<2x8x8xbf16>, vector<2x8x8xbf16>, vector<2x8x8xf32> -> vector<2x8x8xf32>
    "tpu.trace_stop"() : () -> ()
    %104 = tpu.concatenate %55, %71, %87, %103 in 2 : vector<2x8x8xf32>, vector<2x8x8xf32>, vector<2x8x8xf32>, vector<2x8x8xf32> -> vector<2x8x32xf32>
    %105 = vector.shape_cast %104 : vector<2x8x32xf32> to vector<16x32xf32>
    %106 = arith.truncf %105 : vector<16x32xf32> to vector<16x32xbf16>
    %cst_47 = arith.constant dense<0.000000e+00> : vector<16x32xf32>
    %107 = tpu.matmul %106, %31, %cst_47 {dimension_numbers = #tpu.dot_dimension_numbers<[1], [0], [0], [1], [0, 0, 1, 1], [], []>} : vector<16x32xbf16>, vector<32x32xbf16>, vector<16x32xf32> -> vector<16x32xf32>
    %108 = vector.broadcast %33 : vector<1x32xf32> to vector<16x32xf32>
    %109 = arith.addf %107, %108 : vector<16x32xf32>
    %110 = arith.addf %4, %109 : vector<16x32xf32>
    %111 = vector.extract_strided_slice %8 {offsets = [0, 0], sizes = [1, 32], strides = [1, 1]} : vector<3x32xf32> to vector<1x32xf32>
    %112 = vector.extract_strided_slice %10 {offsets = [0, 0], sizes = [1, 32], strides = [1, 1]} : vector<3x32xf32> to vector<1x32xf32>
    %cst_48 = arith.constant dense<0.000000e+00> : vector<16xf32>
    %113 = vector.multi_reduction <add>, %110, %cst_48 [1] : vector<16x32xf32> to vector<16xf32>
    %114 = vector.shape_cast %113 : vector<16xf32> to vector<16x1xf32>
    %cst_49 = arith.constant 3.200000e+01 : f32
    %115 = vector.broadcast %cst_49 : f32 to vector<16x1xf32>
    %116 = arith.divf %114, %115 : vector<16x1xf32>
    %117 = arith.mulf %110, %110 : vector<16x32xf32>
    %cst_50 = arith.constant dense<0.000000e+00> : vector<16xf32>
    %118 = vector.multi_reduction <add>, %117, %cst_50 [1] : vector<16x32xf32> to vector<16xf32>
    %119 = vector.shape_cast %118 : vector<16xf32> to vector<16x1xf32>
    %cst_51 = arith.constant 3.200000e+01 : f32
    %120 = vector.broadcast %cst_51 : f32 to vector<16x1xf32>
    %121 = arith.divf %119, %120 : vector<16x1xf32>
    %122 = arith.mulf %116, %116 : vector<16x1xf32>
    %123 = arith.subf %121, %122 : vector<16x1xf32>
    %124 = vector.broadcast %116 : vector<16x1xf32> to vector<16x32xf32>
    %125 = arith.subf %110, %124 : vector<16x32xf32>
    %cst_52 = arith.constant 9.99999974E-6 : f32
    %126 = vector.broadcast %cst_52 : f32 to vector<16x1xf32>
    %127 = arith.addf %123, %126 : vector<16x1xf32>
    %128 = math.rsqrt %127 : vector<16x1xf32>
    %129 = vector.broadcast %128 : vector<16x1xf32> to vector<16x32xf32>
    %130 = arith.mulf %125, %129 : vector<16x32xf32>
    %131 = vector.broadcast %111 : vector<1x32xf32> to vector<16x32xf32>
    %132 = arith.mulf %130, %131 : vector<16x32xf32>
    %133 = vector.broadcast %112 : vector<1x32xf32> to vector<16x32xf32>
    %134 = arith.addf %132, %133 : vector<16x32xf32>
    %c0_53 = arith.constant 0 : index
    %c0_54 = arith.constant 0 : index
    %c0_55 = arith.constant 0 : index
    %135 = vector.load %arg4[%c0_53, %c0_54, %c0_55] : memref<2x16x32xbf16, #tpu.memory_space<vmem>>, vector<2x16x32xbf16>
    %136 = vector.shape_cast %135 : vector<2x16x32xbf16> to vector<32x32xbf16>
    %c0_56 = arith.constant 0 : index
    %c0_57 = arith.constant 0 : index
    %c0_58 = arith.constant 0 : index
    %137 = vector.load %arg5[%c0_56, %c0_57, %c0_58] : memref<2x16x32xbf16, #tpu.memory_space<vmem>>, vector<2x16x32xbf16>
    %138 = vector.shape_cast %137 : vector<2x16x32xbf16> to vector<32x32xbf16>
    %139 = arith.addf %134, %6 : vector<16x32xf32>
    %c0_59 = arith.constant 0 : index
    %c0_60 = arith.constant 0 : index
    %c0_61 = arith.constant 0 : index
    %140 = vector.load %arg16[%c0_59, %c0_60, %c0_61] : memref<1x32x32xbf16, #tpu.memory_space<vmem>>, vector<1x32x32xbf16>
    %141 = vector.shape_cast %140 : vector<1x32x32xbf16> to vector<32x32xbf16>
    %c0_62 = arith.constant 0 : index
    %c0_63 = arith.constant 0 : index
    %c0_64 = arith.constant 0 : index
    %142 = vector.load %arg17[%c0_62, %c0_63, %c0_64] : memref<1x1x32xf32, #tpu.memory_space<vmem>>, vector<1x1x32xf32>
    %143 = vector.shape_cast %142 : vector<1x1x32xf32> to vector<1x32xf32>
    %144 = arith.truncf %139 : vector<16x32xf32> to vector<16x32xbf16>
    %cst_65 = arith.constant dense<0.000000e+00> : vector<16x32xf32>
    %145 = tpu.matmul %144, %141, %cst_65 {dimension_numbers = #tpu.dot_dimension_numbers<[1], [0], [0], [1], [0, 0, 1, 1], [], []>} : vector<16x32xbf16>, vector<32x32xbf16>, vector<16x32xf32> -> vector<16x32xf32>
    %146 = vector.broadcast %143 : vector<1x32xf32> to vector<16x32xf32>
    %147 = arith.addf %145, %146 : vector<16x32xf32>
    %c0_66 = arith.constant 0 : index
    %c0_67 = arith.constant 0 : index
    %c0_68 = arith.constant 0 : index
    %148 = vector.load %arg18[%c0_66, %c0_67, %c0_68] : memref<1x32x32xbf16, #tpu.memory_space<vmem>>, vector<1x32x32xbf16>
    %149 = vector.shape_cast %148 : vector<1x32x32xbf16> to vector<32x32xbf16>
    %c0_69 = arith.constant 0 : index
    %c0_70 = arith.constant 0 : index
    %c0_71 = arith.constant 0 : index
    %150 = vector.load %arg19[%c0_69, %c0_70, %c0_71] : memref<1x1x32xf32, #tpu.memory_space<vmem>>, vector<1x1x32xf32>
    %151 = vector.shape_cast %150 : vector<1x1x32xf32> to vector<1x32xf32>
    %cst_72 = arith.constant dense<0.000000e+00> : vector<32x32xf32>
    %152 = tpu.matmul %136, %149, %cst_72 {dimension_numbers = #tpu.dot_dimension_numbers<[1], [0], [0], [1], [0, 0, 1, 1], [], []>} : vector<32x32xbf16>, vector<32x32xbf16>, vector<32x32xf32> -> vector<32x32xf32>
    %153 = vector.broadcast %151 : vector<1x32xf32> to vector<32x32xf32>
    %154 = arith.addf %152, %153 : vector<32x32xf32>
    %c0_73 = arith.constant 0 : index
    %c0_74 = arith.constant 0 : index
    %c0_75 = arith.constant 0 : index
    %155 = vector.load %arg20[%c0_73, %c0_74, %c0_75] : memref<1x32x32xbf16, #tpu.memory_space<vmem>>, vector<1x32x32xbf16>
    %156 = vector.shape_cast %155 : vector<1x32x32xbf16> to vector<32x32xbf16>
    %c0_76 = arith.constant 0 : index
    %c0_77 = arith.constant 0 : index
    %c0_78 = arith.constant 0 : index
    %157 = vector.load %arg21[%c0_76, %c0_77, %c0_78] : memref<1x1x32xf32, #tpu.memory_space<vmem>>, vector<1x1x32xf32>
    %158 = vector.shape_cast %157 : vector<1x1x32xf32> to vector<1x32xf32>
    %cst_79 = arith.constant dense<0.000000e+00> : vector<32x32xf32>
    %159 = tpu.matmul %138, %156, %cst_79 {dimension_numbers = #tpu.dot_dimension_numbers<[1], [0], [0], [1], [0, 0, 1, 1], [], []>} : vector<32x32xbf16>, vector<32x32xbf16>, vector<32x32xf32> -> vector<32x32xf32>
    %160 = vector.broadcast %158 : vector<1x32xf32> to vector<32x32xf32>
    %161 = arith.addf %159, %160 : vector<32x32xf32>
    %c0_80 = arith.constant 0 : index
    %c0_81 = arith.constant 0 : index
    %c0_82 = arith.constant 0 : index
    %162 = vector.load %arg22[%c0_80, %c0_81, %c0_82] : memref<1x32x32xbf16, #tpu.memory_space<vmem>>, vector<1x32x32xbf16>
    %163 = vector.shape_cast %162 : vector<1x32x32xbf16> to vector<32x32xbf16>
    %c0_83 = arith.constant 0 : index
    %c0_84 = arith.constant 0 : index
    %c0_85 = arith.constant 0 : index
    %164 = vector.load %arg23[%c0_83, %c0_84, %c0_85] : memref<1x1x32xf32, #tpu.memory_space<vmem>>, vector<1x1x32xf32>
    %165 = vector.shape_cast %164 : vector<1x1x32xf32> to vector<1x32xf32>
    %166 = vector.shape_cast %147 : vector<16x32xf32> to vector<2x8x32xf32>
    %167 = arith.truncf %166 : vector<2x8x32xf32> to vector<2x8x32xbf16>
    %168 = vector.shape_cast %154 : vector<32x32xf32> to vector<2x16x32xf32>
    %169 = arith.truncf %168 : vector<2x16x32xf32> to vector<2x16x32xbf16>
    %170 = vector.shape_cast %161 : vector<32x32xf32> to vector<2x16x32xf32>
    %171 = arith.truncf %170 : vector<2x16x32xf32> to vector<2x16x32xbf16>
    %172 = vector.extract_strided_slice %167 {offsets = [0, 0, 0], sizes = [2, 8, 8], strides = [1, 1, 1]} : vector<2x8x32xbf16> to vector<2x8x8xbf16>
    %173 = vector.extract_strided_slice %169 {offsets = [0, 0, 0], sizes = [2, 16, 8], strides = [1, 1, 1]} : vector<2x16x32xbf16> to vector<2x16x8xbf16>
    "tpu.trace_start"() <{level = 10 : i32, message = "bqd,bkd->bqk"}> : () -> ()
    %cst_86 = arith.constant dense<0.000000e+00> : vector<2x8x16xf32>
    %174 = tpu.matmul %172, %173, %cst_86 {dimension_numbers = #tpu.dot_dimension_numbers<[2], [2], [1], [1], [0, 0, 0, 1, 1, 1], [0], [0]>} : vector<2x8x8xbf16>, vector<2x16x8xbf16>, vector<2x8x16xf32> -> vector<2x8x16xf32>
    "tpu.trace_stop"() : () -> ()
    %cst_87 = arith.constant dense<0xFF800000> : vector<2x8xf32>
    %175 = vector.multi_reduction <maximumf>, %174, %cst_87 [2] : vector<2x8x16xf32> to vector<2x8xf32>
    %176 = vector.shape_cast %175 : vector<2x8xf32> to vector<2x8x1xf32>
    %177 = vector.broadcast %176 : vector<2x8x1xf32> to vector<2x8x16xf32>
    %178 = arith.subf %174, %177 : vector<2x8x16xf32>
    %179 = math.exp %178 : vector<2x8x16xf32>
    %cst_88 = arith.constant dense<0.000000e+00> : vector<2x8xf32>
    %180 = vector.multi_reduction <add>, %179, %cst_88 [2] : vector<2x8x16xf32> to vector<2x8xf32>
    %181 = vector.shape_cast %180 : vector<2x8xf32> to vector<2x8x1xf32>
    %182 = tpu.reciprocal %181 {approx = true} : vector<2x8x1xf32> -> vector<2x8x1xf32>
    %183 = vector.broadcast %182 : vector<2x8x1xf32> to vector<2x8x16xf32>
    %184 = arith.mulf %179, %183 : vector<2x8x16xf32>
    %185 = arith.truncf %184 : vector<2x8x16xf32> to vector<2x8x16xbf16>
    %186 = vector.extract_strided_slice %171 {offsets = [0, 0, 0], sizes = [2, 16, 8], strides = [1, 1, 1]} : vector<2x16x32xbf16> to vector<2x16x8xbf16>
    "tpu.trace_start"() <{level = 10 : i32, message = "bqk,bkd->bqd"}> : () -> ()
    %cst_89 = arith.constant dense<0.000000e+00> : vector<2x8x8xf32>
    %187 = tpu.matmul %185, %186, %cst_89 {dimension_numbers = #tpu.dot_dimension_numbers<[2], [1], [1], [2], [0, 0, 0, 1, 1, 2], [0], [0]>} : vector<2x8x16xbf16>, vector<2x16x8xbf16>, vector<2x8x8xf32> -> vector<2x8x8xf32>
    "tpu.trace_stop"() : () -> ()
    %188 = vector.extract_strided_slice %167 {offsets = [0, 0, 8], sizes = [2, 8, 8], strides = [1, 1, 1]} : vector<2x8x32xbf16> to vector<2x8x8xbf16>
    %189 = vector.extract_strided_slice %169 {offsets = [0, 0, 8], sizes = [2, 16, 8], strides = [1, 1, 1]} : vector<2x16x32xbf16> to vector<2x16x8xbf16>
    "tpu.trace_start"() <{level = 10 : i32, message = "bqd,bkd->bqk"}> : () -> ()
    %cst_90 = arith.constant dense<0.000000e+00> : vector<2x8x16xf32>
    %190 = tpu.matmul %188, %189, %cst_90 {dimension_numbers = #tpu.dot_dimension_numbers<[2], [2], [1], [1], [0, 0, 0, 1, 1, 1], [0], [0]>} : vector<2x8x8xbf16>, vector<2x16x8xbf16>, vector<2x8x16xf32> -> vector<2x8x16xf32>
    "tpu.trace_stop"() : () -> ()
    %cst_91 = arith.constant dense<0xFF800000> : vector<2x8xf32>
    %191 = vector.multi_reduction <maximumf>, %190, %cst_91 [2] : vector<2x8x16xf32> to vector<2x8xf32>
    %192 = vector.shape_cast %191 : vector<2x8xf32> to vector<2x8x1xf32>
    %193 = vector.broadcast %192 : vector<2x8x1xf32> to vector<2x8x16xf32>
    %194 = arith.subf %190, %193 : vector<2x8x16xf32>
    %195 = math.exp %194 : vector<2x8x16xf32>
    %cst_92 = arith.constant dense<0.000000e+00> : vector<2x8xf32>
    %196 = vector.multi_reduction <add>, %195, %cst_92 [2] : vector<2x8x16xf32> to vector<2x8xf32>
    %197 = vector.shape_cast %196 : vector<2x8xf32> to vector<2x8x1xf32>
    %198 = tpu.reciprocal %197 {approx = true} : vector<2x8x1xf32> -> vector<2x8x1xf32>
    %199 = vector.broadcast %198 : vector<2x8x1xf32> to vector<2x8x16xf32>
    %200 = arith.mulf %195, %199 : vector<2x8x16xf32>
    %201 = arith.truncf %200 : vector<2x8x16xf32> to vector<2x8x16xbf16>
    %202 = vector.extract_strided_slice %171 {offsets = [0, 0, 8], sizes = [2, 16, 8], strides = [1, 1, 1]} : vector<2x16x32xbf16> to vector<2x16x8xbf16>
    "tpu.trace_start"() <{level = 10 : i32, message = "bqk,bkd->bqd"}> : () -> ()
    %cst_93 = arith.constant dense<0.000000e+00> : vector<2x8x8xf32>
    %203 = tpu.matmul %201, %202, %cst_93 {dimension_numbers = #tpu.dot_dimension_numbers<[2], [1], [1], [2], [0, 0, 0, 1, 1, 2], [0], [0]>} : vector<2x8x16xbf16>, vector<2x16x8xbf16>, vector<2x8x8xf32> -> vector<2x8x8xf32>
    "tpu.trace_stop"() : () -> ()
    %204 = vector.extract_strided_slice %167 {offsets = [0, 0, 16], sizes = [2, 8, 8], strides = [1, 1, 1]} : vector<2x8x32xbf16> to vector<2x8x8xbf16>
    %205 = vector.extract_strided_slice %169 {offsets = [0, 0, 16], sizes = [2, 16, 8], strides = [1, 1, 1]} : vector<2x16x32xbf16> to vector<2x16x8xbf16>
    "tpu.trace_start"() <{level = 10 : i32, message = "bqd,bkd->bqk"}> : () -> ()
    %cst_94 = arith.constant dense<0.000000e+00> : vector<2x8x16xf32>
    %206 = tpu.matmul %204, %205, %cst_94 {dimension_numbers = #tpu.dot_dimension_numbers<[2], [2], [1], [1], [0, 0, 0, 1, 1, 1], [0], [0]>} : vector<2x8x8xbf16>, vector<2x16x8xbf16>, vector<2x8x16xf32> -> vector<2x8x16xf32>
    "tpu.trace_stop"() : () -> ()
    %cst_95 = arith.constant dense<0xFF800000> : vector<2x8xf32>
    %207 = vector.multi_reduction <maximumf>, %206, %cst_95 [2] : vector<2x8x16xf32> to vector<2x8xf32>
    %208 = vector.shape_cast %207 : vector<2x8xf32> to vector<2x8x1xf32>
    %209 = vector.broadcast %208 : vector<2x8x1xf32> to vector<2x8x16xf32>
    %210 = arith.subf %206, %209 : vector<2x8x16xf32>
    %211 = math.exp %210 : vector<2x8x16xf32>
    %cst_96 = arith.constant dense<0.000000e+00> : vector<2x8xf32>
    %212 = vector.multi_reduction <add>, %211, %cst_96 [2] : vector<2x8x16xf32> to vector<2x8xf32>
    %213 = vector.shape_cast %212 : vector<2x8xf32> to vector<2x8x1xf32>
    %214 = tpu.reciprocal %213 {approx = true} : vector<2x8x1xf32> -> vector<2x8x1xf32>
    %215 = vector.broadcast %214 : vector<2x8x1xf32> to vector<2x8x16xf32>
    %216 = arith.mulf %211, %215 : vector<2x8x16xf32>
    %217 = arith.truncf %216 : vector<2x8x16xf32> to vector<2x8x16xbf16>
    %218 = vector.extract_strided_slice %171 {offsets = [0, 0, 16], sizes = [2, 16, 8], strides = [1, 1, 1]} : vector<2x16x32xbf16> to vector<2x16x8xbf16>
    "tpu.trace_start"() <{level = 10 : i32, message = "bqk,bkd->bqd"}> : () -> ()
    %cst_97 = arith.constant dense<0.000000e+00> : vector<2x8x8xf32>
    %219 = tpu.matmul %217, %218, %cst_97 {dimension_numbers = #tpu.dot_dimension_numbers<[2], [1], [1], [2], [0, 0, 0, 1, 1, 2], [0], [0]>} : vector<2x8x16xbf16>, vector<2x16x8xbf16>, vector<2x8x8xf32> -> vector<2x8x8xf32>
    "tpu.trace_stop"() : () -> ()
    %220 = vector.extract_strided_slice %167 {offsets = [0, 0, 24], sizes = [2, 8, 8], strides = [1, 1, 1]} : vector<2x8x32xbf16> to vector<2x8x8xbf16>
    %221 = vector.extract_strided_slice %169 {offsets = [0, 0, 24], sizes = [2, 16, 8], strides = [1, 1, 1]} : vector<2x16x32xbf16> to vector<2x16x8xbf16>
    "tpu.trace_start"() <{level = 10 : i32, message = "bqd,bkd->bqk"}> : () -> ()
    %cst_98 = arith.constant dense<0.000000e+00> : vector<2x8x16xf32>
    %222 = tpu.matmul %220, %221, %cst_98 {dimension_numbers = #tpu.dot_dimension_numbers<[2], [2], [1], [1], [0, 0, 0, 1, 1, 1], [0], [0]>} : vector<2x8x8xbf16>, vector<2x16x8xbf16>, vector<2x8x16xf32> -> vector<2x8x16xf32>
    "tpu.trace_stop"() : () -> ()
    %cst_99 = arith.constant dense<0xFF800000> : vector<2x8xf32>
    %223 = vector.multi_reduction <maximumf>, %222, %cst_99 [2] : vector<2x8x16xf32> to vector<2x8xf32>
    %224 = vector.shape_cast %223 : vector<2x8xf32> to vector<2x8x1xf32>
    %225 = vector.broadcast %224 : vector<2x8x1xf32> to vector<2x8x16xf32>
    %226 = arith.subf %222, %225 : vector<2x8x16xf32>
    %227 = math.exp %226 : vector<2x8x16xf32>
    %cst_100 = arith.constant dense<0.000000e+00> : vector<2x8xf32>
    %228 = vector.multi_reduction <add>, %227, %cst_100 [2] : vector<2x8x16xf32> to vector<2x8xf32>
    %229 = vector.shape_cast %228 : vector<2x8xf32> to vector<2x8x1xf32>
    %230 = tpu.reciprocal %229 {approx = true} : vector<2x8x1xf32> -> vector<2x8x1xf32>
    %231 = vector.broadcast %230 : vector<2x8x1xf32> to vector<2x8x16xf32>
    %232 = arith.mulf %227, %231 : vector<2x8x16xf32>
    %233 = arith.truncf %232 : vector<2x8x16xf32> to vector<2x8x16xbf16>
    %234 = vector.extract_strided_slice %171 {offsets = [0, 0, 24], sizes = [2, 16, 8], strides = [1, 1, 1]} : vector<2x16x32xbf16> to vector<2x16x8xbf16>
    "tpu.trace_start"() <{level = 10 : i32, message = "bqk,bkd->bqd"}> : () -> ()
    %cst_101 = arith.constant dense<0.000000e+00> : vector<2x8x8xf32>
    %235 = tpu.matmul %233, %234, %cst_101 {dimension_numbers = #tpu.dot_dimension_numbers<[2], [1], [1], [2], [0, 0, 0, 1, 1, 2], [0], [0]>} : vector<2x8x16xbf16>, vector<2x16x8xbf16>, vector<2x8x8xf32> -> vector<2x8x8xf32>
    "tpu.trace_stop"() : () -> ()
    %236 = tpu.concatenate %187, %203, %219, %235 in 2 : vector<2x8x8xf32>, vector<2x8x8xf32>, vector<2x8x8xf32>, vector<2x8x8xf32> -> vector<2x8x32xf32>
    %237 = vector.shape_cast %236 : vector<2x8x32xf32> to vector<16x32xf32>
    %238 = arith.truncf %237 : vector<16x32xf32> to vector<16x32xbf16>
    %cst_102 = arith.constant dense<0.000000e+00> : vector<16x32xf32>
    %239 = tpu.matmul %238, %163, %cst_102 {dimension_numbers = #tpu.dot_dimension_numbers<[1], [0], [0], [1], [0, 0, 1, 1], [], []>} : vector<16x32xbf16>, vector<32x32xbf16>, vector<16x32xf32> -> vector<16x32xf32>
    %240 = vector.broadcast %165 : vector<1x32xf32> to vector<16x32xf32>
    %241 = arith.addf %239, %240 : vector<16x32xf32>
    %242 = arith.addf %134, %241 : vector<16x32xf32>
    %243 = vector.extract_strided_slice %8 {offsets = [1, 0], sizes = [1, 32], strides = [1, 1]} : vector<3x32xf32> to vector<1x32xf32>
    %244 = vector.extract_strided_slice %10 {offsets = [1, 0], sizes = [1, 32], strides = [1, 1]} : vector<3x32xf32> to vector<1x32xf32>
    %cst_103 = arith.constant dense<0.000000e+00> : vector<16xf32>
    %245 = vector.multi_reduction <add>, %242, %cst_103 [1] : vector<16x32xf32> to vector<16xf32>
    %246 = vector.shape_cast %245 : vector<16xf32> to vector<16x1xf32>
    %cst_104 = arith.constant 3.200000e+01 : f32
    %247 = vector.broadcast %cst_104 : f32 to vector<16x1xf32>
    %248 = arith.divf %246, %247 : vector<16x1xf32>
    %249 = arith.mulf %242, %242 : vector<16x32xf32>
    %cst_105 = arith.constant dense<0.000000e+00> : vector<16xf32>
    %250 = vector.multi_reduction <add>, %249, %cst_105 [1] : vector<16x32xf32> to vector<16xf32>
    %251 = vector.shape_cast %250 : vector<16xf32> to vector<16x1xf32>
    %cst_106 = arith.constant 3.200000e+01 : f32
    %252 = vector.broadcast %cst_106 : f32 to vector<16x1xf32>
    %253 = arith.divf %251, %252 : vector<16x1xf32>
    %254 = arith.mulf %248, %248 : vector<16x1xf32>
    %255 = arith.subf %253, %254 : vector<16x1xf32>
    %256 = vector.broadcast %248 : vector<16x1xf32> to vector<16x32xf32>
    %257 = arith.subf %242, %256 : vector<16x32xf32>
    %cst_107 = arith.constant 9.99999974E-6 : f32
    %258 = vector.broadcast %cst_107 : f32 to vector<16x1xf32>
    %259 = arith.addf %255, %258 : vector<16x1xf32>
    %260 = math.rsqrt %259 : vector<16x1xf32>
    %261 = vector.broadcast %260 : vector<16x1xf32> to vector<16x32xf32>
    %262 = arith.mulf %257, %261 : vector<16x32xf32>
    %263 = vector.broadcast %243 : vector<1x32xf32> to vector<16x32xf32>
    %264 = arith.mulf %262, %263 : vector<16x32xf32>
    %265 = vector.broadcast %244 : vector<1x32xf32> to vector<16x32xf32>
    %266 = arith.addf %264, %265 : vector<16x32xf32>
    %c0_108 = arith.constant 0 : index
    %c0_109 = arith.constant 0 : index
    %c0_110 = arith.constant 0 : index
    %267 = vector.load %arg24[%c0_108, %c0_109, %c0_110] : memref<1x32x64xbf16, #tpu.memory_space<vmem>>, vector<1x32x64xbf16>
    %268 = vector.shape_cast %267 : vector<1x32x64xbf16> to vector<32x64xbf16>
    %c0_111 = arith.constant 0 : index
    %c0_112 = arith.constant 0 : index
    %c0_113 = arith.constant 0 : index
    %269 = vector.load %arg25[%c0_111, %c0_112, %c0_113] : memref<1x1x64xf32, #tpu.memory_space<vmem>>, vector<1x1x64xf32>
    %270 = vector.shape_cast %269 : vector<1x1x64xf32> to vector<1x64xf32>
    %271 = arith.truncf %266 : vector<16x32xf32> to vector<16x32xbf16>
    %cst_114 = arith.constant dense<0.000000e+00> : vector<16x64xf32>
    %272 = tpu.matmul %271, %268, %cst_114 {dimension_numbers = #tpu.dot_dimension_numbers<[1], [0], [0], [1], [0, 0, 1, 1], [], []>} : vector<16x32xbf16>, vector<32x64xbf16>, vector<16x64xf32> -> vector<16x64xf32>
    %273 = vector.broadcast %270 : vector<1x64xf32> to vector<16x64xf32>
    %274 = arith.addf %272, %273 : vector<16x64xf32>
    %cst_115 = arith.constant 0.000000e+00 : f32
    %275 = vector.broadcast %cst_115 : f32 to vector<16x64xf32>
    %276 = arith.maximumf %274, %275 : vector<16x64xf32>
    %277 = arith.truncf %276 : vector<16x64xf32> to vector<16x64xbf16>
    %c0_116 = arith.constant 0 : index
    %c0_117 = arith.constant 0 : index
    %c0_118 = arith.constant 0 : index
    %278 = vector.load %arg26[%c0_116, %c0_117, %c0_118] : memref<1x64x32xbf16, #tpu.memory_space<vmem>>, vector<1x64x32xbf16>
    %279 = vector.shape_cast %278 : vector<1x64x32xbf16> to vector<64x32xbf16>
    %cst_119 = arith.constant dense<0.000000e+00> : vector<16x32xf32>
    %280 = tpu.matmul %277, %279, %cst_119 {dimension_numbers = #tpu.dot_dimension_numbers<[1], [0], [0], [1], [0, 0, 1, 1], [], []>} : vector<16x64xbf16>, vector<64x32xbf16>, vector<16x32xf32> -> vector<16x32xf32>
    %c0_120 = arith.constant 0 : index
    %c0_121 = arith.constant 0 : index
    %c0_122 = arith.constant 0 : index
    %281 = vector.load %arg27[%c0_120, %c0_121, %c0_122] : memref<1x1x32xf32, #tpu.memory_space<vmem>>, vector<1x1x32xf32>
    %282 = vector.shape_cast %281 : vector<1x1x32xf32> to vector<1x32xf32>
    %283 = vector.broadcast %282 : vector<1x32xf32> to vector<16x32xf32>
    %284 = arith.addf %280, %283 : vector<16x32xf32>
    %285 = arith.addf %266, %284 : vector<16x32xf32>
    %286 = vector.extract_strided_slice %8 {offsets = [2, 0], sizes = [1, 32], strides = [1, 1]} : vector<3x32xf32> to vector<1x32xf32>
    %287 = vector.extract_strided_slice %10 {offsets = [2, 0], sizes = [1, 32], strides = [1, 1]} : vector<3x32xf32> to vector<1x32xf32>
    %cst_123 = arith.constant dense<0.000000e+00> : vector<16xf32>
    %288 = vector.multi_reduction <add>, %285, %cst_123 [1] : vector<16x32xf32> to vector<16xf32>
    %289 = vector.shape_cast %288 : vector<16xf32> to vector<16x1xf32>
    %cst_124 = arith.constant 3.200000e+01 : f32
    %290 = vector.broadcast %cst_124 : f32 to vector<16x1xf32>
    %291 = arith.divf %289, %290 : vector<16x1xf32>
    %292 = arith.mulf %285, %285 : vector<16x32xf32>
    %cst_125 = arith.constant dense<0.000000e+00> : vector<16xf32>
    %293 = vector.multi_reduction <add>, %292, %cst_125 [1] : vector<16x32xf32> to vector<16xf32>
    %294 = vector.shape_cast %293 : vector<16xf32> to vector<16x1xf32>
    %cst_126 = arith.constant 3.200000e+01 : f32
    %295 = vector.broadcast %cst_126 : f32 to vector<16x1xf32>
    %296 = arith.divf %294, %295 : vector<16x1xf32>
    %297 = arith.mulf %291, %291 : vector<16x1xf32>
    %298 = arith.subf %296, %297 : vector<16x1xf32>
    %299 = vector.broadcast %291 : vector<16x1xf32> to vector<16x32xf32>
    %300 = arith.subf %285, %299 : vector<16x32xf32>
    %cst_127 = arith.constant 9.99999974E-6 : f32
    %301 = vector.broadcast %cst_127 : f32 to vector<16x1xf32>
    %302 = arith.addf %298, %301 : vector<16x1xf32>
    %303 = math.rsqrt %302 : vector<16x1xf32>
    %304 = vector.broadcast %303 : vector<16x1xf32> to vector<16x32xf32>
    %305 = arith.mulf %300, %304 : vector<16x32xf32>
    %306 = vector.broadcast %286 : vector<1x32xf32> to vector<16x32xf32>
    %307 = arith.mulf %305, %306 : vector<16x32xf32>
    %308 = vector.broadcast %287 : vector<1x32xf32> to vector<16x32xf32>
    %309 = arith.addf %307, %308 : vector<16x32xf32>
    %310 = vector.shape_cast %309 : vector<16x32xf32> to vector<2x8x32xf32>
    %c0_128 = arith.constant 0 : index
    %c0_129 = arith.constant 0 : index
    %c0_130 = arith.constant 0 : index
    %311 = vector.load %arg29[%c0_128, %c0_129, %c0_130] : memref<2x8x32xf32, #tpu.memory_space<vmem>>, vector<2x8x32xf32>
    tpu.vector_store %arg29[%c0_128, %c0_129, %c0_130], %310 {strides = array<i32>} : memref<2x8x32xf32, #tpu.memory_space<vmem>>, vector<2x8x32xf32>,
    %c1_i32 = arith.constant 1 : i32
    %312 = arith.cmpi eq, %arg1, %c1_i32 : i32
    %313 = arith.extui %312 : i1 to i32
    %c0_i32_131 = arith.constant 0 : i32
    %314 = arith.cmpi ne, %313, %c0_i32_131 : i32
    scf.if %314 {
      %c0_132 = arith.constant 0 : index
      %c0_133 = arith.constant 0 : index
      %315 = vector.load %arg6[%c0_132, %c0_133] : memref<1x32xf32, #tpu.memory_space<vmem>>, vector<1x32xf32>
      %c0_134 = arith.constant 0 : index
      %c0_135 = arith.constant 0 : index
      %316 = vector.load %arg7[%c0_134, %c0_135] : memref<1x32xf32, #tpu.memory_space<vmem>>, vector<1x32xf32>
      %cst_136 = arith.constant dense<0.000000e+00> : vector<16xf32>
      %317 = vector.multi_reduction <add>, %309, %cst_136 [1] : vector<16x32xf32> to vector<16xf32>
      %318 = vector.shape_cast %317 : vector<16xf32> to vector<16x1xf32>
      %cst_137 = arith.constant 3.200000e+01 : f32
      %319 = vector.broadcast %cst_137 : f32 to vector<16x1xf32>
      %320 = arith.divf %318, %319 : vector<16x1xf32>
      %321 = arith.mulf %309, %309 : vector<16x32xf32>
      %cst_138 = arith.constant dense<0.000000e+00> : vector<16xf32>
      %322 = vector.multi_reduction <add>, %321, %cst_138 [1] : vector<16x32xf32> to vector<16xf32>
      %323 = vector.shape_cast %322 : vector<16xf32> to vector<16x1xf32>
      %cst_139 = arith.constant 3.200000e+01 : f32
      %324 = vector.broadcast %cst_139 : f32 to vector<16x1xf32>
      %325 = arith.divf %323, %324 : vector<16x1xf32>
      %326 = arith.mulf %320, %320 : vector<16x1xf32>
      %327 = arith.subf %325, %326 : vector<16x1xf32>
      %328 = vector.broadcast %320 : vector<16x1xf32> to vector<16x32xf32>
      %329 = arith.subf %309, %328 : vector<16x32xf32>
      %cst_140 = arith.constant 9.99999974E-6 : f32
      %330 = vector.broadcast %cst_140 : f32 to vector<16x1xf32>
      %331 = arith.addf %327, %330 : vector<16x1xf32>
      %332 = math.rsqrt %331 : vector<16x1xf32>
      %333 = vector.broadcast %332 : vector<16x1xf32> to vector<16x32xf32>
      %334 = arith.mulf %329, %333 : vector<16x32xf32>
      %335 = vector.broadcast %315 : vector<1x32xf32> to vector<16x32xf32>
      %336 = arith.mulf %334, %335 : vector<16x32xf32>
      %337 = vector.broadcast %316 : vector<1x32xf32> to vector<16x32xf32>
      %338 = arith.addf %336, %337 : vector<16x32xf32>
      %339 = vector.shape_cast %338 : vector<16x32xf32> to vector<2x8x32xf32>
      %c0_141 = arith.constant 0 : index
      %c0_142 = arith.constant 0 : index
      %c0_143 = arith.constant 0 : index
      %340 = vector.load %arg28[%c0_141, %c0_142, %c0_143] : memref<2x8x32xf32, #tpu.memory_space<vmem>>, vector<2x8x32xf32>
      tpu.vector_store %arg28[%c0_141, %c0_142, %c0_143], %339 {strides = array<i32>} : memref<2x8x32xf32, #tpu.memory_space<vmem>>, vector<2x8x32xf32>,
    } else {
    }
    return
  }
  func.func @transform_0(%arg0: i32, %arg1: i32) -> (i32, i32, i32) {
    %c0_i32 = arith.constant 0 : i32
    %c0_i32_0 = arith.constant 0 : i32
    %c0_i32_1 = arith.constant 0 : i32
    return %arg0, %c0_i32, %c0_i32_0 : i32, i32, i32
  }
  func.func @transform_1(%arg0: i32, %arg1: i32) -> (i32, i32, i32) {
    %c0_i32 = arith.constant 0 : i32
    %c0_i32_0 = arith.constant 0 : i32
    %c0_i32_1 = arith.constant 0 : i32
    return %arg0, %c0_i32, %c0_i32_0 : i32, i32, i32
  }
  func.func @transform_2(%arg0: i32, %arg1: i32) -> (i32, i32, i32) {
    %c0_i32 = arith.constant 0 : i32
    %c0_i32_0 = arith.constant 0 : i32
    %c0_i32_1 = arith.constant 0 : i32
    return %arg0, %c0_i32, %c0_i32_0 : i32, i32, i32
  }
  func.func @transform_3(%arg0: i32, %arg1: i32) -> (i32, i32, i32) {
    %c0_i32 = arith.constant 0 : i32
    %c0_i32_0 = arith.constant 0 : i32
    %c0_i32_1 = arith.constant 0 : i32
    return %arg0, %c0_i32, %c0_i32_0 : i32, i32, i32
  }
  func.func @transform_4(%arg0: i32, %arg1: i32) -> (i32, i32) {
    %c0_i32 = arith.constant 0 : i32
    %c0_i32_0 = arith.constant 0 : i32
    %c0_i32_1 = arith.constant 0 : i32
    return %c0_i32, %c0_i32_0 : i32, i32
  }
  func.func @transform_5(%arg0: i32, %arg1: i32) -> (i32, i32) {
    %c0_i32 = arith.constant 0 : i32
    %c0_i32_0 = arith.constant 0 : i32
    %c0_i32_1 = arith.constant 0 : i32
    return %c0_i32, %c0_i32_0 : i32, i32
  }
  func.func @transform_6(%arg0: i32, %arg1: i32) -> (i32, i32, i32) {
    %c0_i32 = arith.constant 0 : i32
    %c0_i32_0 = arith.constant 0 : i32
    %c0_i32_1 = arith.constant 0 : i32
    return %arg1, %c0_i32, %c0_i32_0 : i32, i32, i32
  }
  func.func @transform_7(%arg0: i32, %arg1: i32) -> (i32, i32, i32) {
    %c0_i32 = arith.constant 0 : i32
    %c0_i32_0 = arith.constant 0 : i32
    %c0_i32_1 = arith.constant 0 : i32
    return %arg1, %c0_i32, %c0_i32_0 : i32, i32, i32
  }
  func.func @transform_8(%arg0: i32, %arg1: i32) -> (i32, i32, i32) {
    %c0_i32 = arith.constant 0 : i32
    %c0_i32_0 = arith.constant 0 : i32
    %c0_i32_1 = arith.constant 0 : i32
    return %arg1, %c0_i32, %c0_i32_0 : i32, i32, i32
  }
  func.func @transform_9(%arg0: i32, %arg1: i32) -> (i32, i32, i32) {
    %c0_i32 = arith.constant 0 : i32
    %c0_i32_0 = arith.constant 0 : i32
    %c0_i32_1 = arith.constant 0 : i32
    return %arg1, %c0_i32, %c0_i32_0 : i32, i32, i32
  }
  func.func @transform_10(%arg0: i32, %arg1: i32) -> (i32, i32, i32) {
    %c0_i32 = arith.constant 0 : i32
    %c0_i32_0 = arith.constant 0 : i32
    %c0_i32_1 = arith.constant 0 : i32
    return %arg1, %c0_i32, %c0_i32_0 : i32, i32, i32
  }
  func.func @transform_11(%arg0: i32, %arg1: i32) -> (i32, i32, i32) {
    %c0_i32 = arith.constant 0 : i32
    %c0_i32_0 = arith.constant 0 : i32
    %c0_i32_1 = arith.constant 0 : i32
    return %arg1, %c0_i32, %c0_i32_0 : i32, i32, i32
  }
  func.func @transform_12(%arg0: i32, %arg1: i32) -> (i32, i32, i32) {
    %c0_i32 = arith.constant 0 : i32
    %c0_i32_0 = arith.constant 0 : i32
    %c0_i32_1 = arith.constant 0 : i32
    return %arg1, %c0_i32, %c0_i32_0 : i32, i32, i32
  }
  func.func @transform_13(%arg0: i32, %arg1: i32) -> (i32, i32, i32) {
    %c0_i32 = arith.constant 0 : i32
    %c0_i32_0 = arith.constant 0 : i32
    %c0_i32_1 = arith.constant 0 : i32
    return %arg1, %c0_i32, %c0_i32_0 : i32, i32, i32
  }
  func.func @transform_14(%arg0: i32, %arg1: i32) -> (i32, i32, i32) {
    %c0_i32 = arith.constant 0 : i32
    %c0_i32_0 = arith.constant 0 : i32
    %c0_i32_1 = arith.constant 0 : i32
    return %arg1, %c0_i32, %c0_i32_0 : i32, i32, i32
  }
  func.func @transform_15(%arg0: i32, %arg1: i32) -> (i32, i32, i32) {
    %c0_i32 = arith.constant 0 : i32
    %c0_i32_0 = arith.constant 0 : i32
    %c0_i32_1 = arith.constant 0 : i32
    return %arg1, %c0_i32, %c0_i32_0 : i32, i32, i32
  }
  func.func @transform_16(%arg0: i32, %arg1: i32) -> (i32, i32, i32) {
    %c0_i32 = arith.constant 0 : i32
    %c0_i32_0 = arith.constant 0 : i32
    %c0_i32_1 = arith.constant 0 : i32
    return %arg1, %c0_i32, %c0_i32_0 : i32, i32, i32
  }
  func.func @transform_17(%arg0: i32, %arg1: i32) -> (i32, i32, i32) {
    %c0_i32 = arith.constant 0 : i32
    %c0_i32_0 = arith.constant 0 : i32
    %c0_i32_1 = arith.constant 0 : i32
    return %arg1, %c0_i32, %c0_i32_0 : i32, i32, i32
  }
  func.func @transform_18(%arg0: i32, %arg1: i32) -> (i32, i32, i32) {
    %c0_i32 = arith.constant 0 : i32
    %c0_i32_0 = arith.constant 0 : i32
    %c0_i32_1 = arith.constant 0 : i32
    return %arg1, %c0_i32, %c0_i32_0 : i32, i32, i32
  }
  func.func @transform_19(%arg0: i32, %arg1: i32) -> (i32, i32, i32) {
    %c0_i32 = arith.constant 0 : i32
    %c0_i32_0 = arith.constant 0 : i32
    %c0_i32_1 = arith.constant 0 : i32
    return %arg1, %c0_i32, %c0_i32_0 : i32, i32, i32
  }
  func.func @transform_20(%arg0: i32, %arg1: i32) -> (i32, i32, i32) {
    %c0_i32 = arith.constant 0 : i32
    %c0_i32_0 = arith.constant 0 : i32
    %c0_i32_1 = arith.constant 0 : i32
    return %arg1, %c0_i32, %c0_i32_0 : i32, i32, i32
  }
  func.func @transform_21(%arg0: i32, %arg1: i32) -> (i32, i32, i32) {
    %c0_i32 = arith.constant 0 : i32
    %c0_i32_0 = arith.constant 0 : i32
    %c0_i32_1 = arith.constant 0 : i32
    return %arg1, %c0_i32, %c0_i32_0 : i32, i32, i32
  }
  func.func @transform_22(%arg0: i32, %arg1: i32) -> (i32, i32, i32) {
    %c0_i32 = arith.constant 0 : i32
    %c0_i32_0 = arith.constant 0 : i32
    %c0_i32_1 = arith.constant 0 : i32
    return %arg1, %c0_i32, %c0_i32_0 : i32, i32, i32
  }
  func.func @transform_23(%arg0: i32, %arg1: i32) -> (i32, i32, i32) {
    %c0_i32 = arith.constant 0 : i32
    %c0_i32_0 = arith.constant 0 : i32
    %c0_i32_1 = arith.constant 0 : i32
    return %arg1, %c0_i32, %c0_i32_0 : i32, i32, i32
  }
  func.func @transform_24(%arg0: i32, %arg1: i32) -> (i32, i32, i32) {
    %c0_i32 = arith.constant 0 : i32
    %c0_i32_0 = arith.constant 0 : i32
    %c0_i32_1 = arith.constant 0 : i32
    return %arg1, %c0_i32, %c0_i32_0 : i32, i32, i32
  }
  func.func @transform_25(%arg0: i32, %arg1: i32) -> (i32, i32, i32) {
    %c0_i32 = arith.constant 0 : i32
    %c0_i32_0 = arith.constant 0 : i32
    %c0_i32_1 = arith.constant 0 : i32
    return %arg1, %c0_i32, %c0_i32_0 : i32, i32, i32
  }
  func.func @transform_26(%arg0: i32, %arg1: i32) -> (i32, i32, i32) {
    %c0_i32 = arith.constant 0 : i32
    %c0_i32_0 = arith.constant 0 : i32
    %c0_i32_1 = arith.constant 0 : i32
    return %arg0, %c0_i32, %c0_i32_0 : i32, i32, i32
  }
}

</mosaic_0001>

<bundles_post_ra>
// kernel: tpu_custom_call.1
= control target key start
LH: loop header
LB: loop body
LE: loop exit
PB: predicated region body
PF: predicated region fallthrough
CT: control target
= control target key end

     0   :  { %s7052_s0 = inlined_call_operand.hbm [shape: f32[2,8,32], index: 0, kind: input, shape index: {}]   ;;  %s7053_s1 = inlined_call_operand.hbm [shape: f32[2,8,32], index: 1, kind: input, shape index: {}]   ;;  %s7054_s2 = inlined_call_operand.hbm [shape: bf16[2,16,32], index: 2, kind: input, shape index: {}]   ;;  %s7055_s3 = inlined_call_operand.hbm [shape: bf16[2,16,32], index: 3, kind: input, shape index: {}]   ;;  %s7056_s4 = inlined_call_operand.hbm [shape: f32[1,32], index: 4, kind: input, shape index: {}]   ;;  %s7057_s5 = inlined_call_operand.hbm [shape: f32[1,32], index: 5, kind: input, shape index: {}]   ;;  %s7058_s6 = inlined_call_operand.vmem [shape: f32[2,3,32], index: 6, kind: input, shape index: {}]   ;;  %s7059_s7 = inlined_call_operand.vmem [shape: f32[2,3,32], index: 7, kind: input, shape index: {}]   ;;  %s7060_s8 = inlined_call_operand.vmem [shape: bf16[2,32,64], index: 8, kind: input, shape index: {}]   ;;  %s7061_s9 = inlined_call_operand.hbm [shape: f32[2,1,64], index: 9, kind: input, shape index: {}]   ;;  %s7062_s10 = inlined_call_operand.vmem [shape: bf16[2,32,32], index: 10, kind: input, shape index: {}]   ;;  %s7063_s11 = inlined_call_operand.hbm [shape: f32[2,1,32], index: 11, kind: input, shape index: {}]   ;;  %s7064_s12 = inlined_call_operand.vmem [shape: bf16[2,32,32], index: 12, kind: input, shape index: {}]   ;;  %s7065_s13 = inlined_call_operand.hbm [shape: f32[2,1,32], index: 13, kind: input, shape index: {}]   ;;  %s7066_s14 = inlined_call_operand.vmem [shape: bf16[2,32,32], index: 14, kind: input, shape index: {}]   ;;  %s7067_s15 = inlined_call_operand.hbm [shape: f32[2,1,32], index: 15, kind: input, shape index: {}]   ;;  %s7068_s16 = inlined_call_operand.hbm [shape: bf16[2,32,32], index: 16, kind: input, shape index: {}]   ;;  %s7069_s17 = inlined_call_operand.hbm [shape: f32[2,1,32], index: 17, kind: input, shape index: {}]   ;;  %s7070_s18 = inlined_call_operand.vmem [shape: bf16[2,32,32], index: 18, kind: input, shape index: {}]   ;;  %s7071_s19 = inlined_call_operand.vmem [shape: f32[2,1,32], index: 19, kind: input, shape index: {}]   ;;  %s7072_s20 = inlined_call_operand.hbm [shape: bf16[2,32,32], index: 20, kind: input, shape index: {}]   ;;  %s7073_s21 = inlined_call_operand.vmem [shape: f32[2,1,32], index: 21, kind: input, shape index: {}]   ;;  %s7074_s22 = inlined_call_operand.hbm [shape: bf16[2,32,64], index: 22, kind: input, shape index: {}]   ;;  %s7075_s23 = inlined_call_operand.vmem [shape: f32[2,1,64], index: 23, kind: input, shape index: {}]   ;;  %s7076_s24 = inlined_call_operand.vmem [shape: bf16[2,64,32], index: 24, kind: input, shape index: {}]   ;;  %s7077_s25 = inlined_call_operand.vmem [shape: f32[2,1,32], index: 25, kind: input, shape index: {}]   ;;  %s7078_s26 = inlined_call_operand.hbm [shape: f32[2,8,32], index: 26, kind: output, shape index: {}]  }
   0x1   :  { %7122 = sst [smem:[#allocation38_spill]] %s7052_s0 }
   0x2   :  { %7123 = sst [smem:[#allocation39_spill]] %s7053_s1 }
   0x3   :  { %7124 = sst [smem:[#allocation40_spill]] %s7054_s2 }
   0x4   :  { %7125 = sst [smem:[#allocation41_spill]] %s7055_s3 }
   0x5   :  { %7126 = sst [smem:[#allocation42_spill]] %s7056_s4 }
   0x6   :  { %7127 = sst [smem:[#allocation43_spill]] %s7057_s5 }
   0x7   :  { %7128 = sst [smem:[#allocation44_spill]] %s7058_s6 }
   0x8   :  { %7129 = sst [smem:[#allocation45_spill]] %s7059_s7 }
   0x9   :  { %7130 = sst [smem:[#allocation46_spill]] %s7060_s8 }
   0xa   :  { %7131 = sst [smem:[#allocation47_spill]] %s7061_s9 }
   0xb   :  { %7132 = sst [smem:[#allocation48_spill]] %s7062_s10 }
   0xc   :  { %7133 = sst [smem:[#allocation49_spill]] %s7063_s11 }
   0xd   :  { %7134 = sst [smem:[#allocation50_spill]] %s7064_s12 }
   0xe   :  { %7135 = sst [smem:[#allocation51_spill]] %s7065_s13 }
   0xf   :  { %7136 = sst [smem:[#allocation52_spill]] %s7066_s14 }
  0x10   :  { %7137 = sst [smem:[#allocation53_spill]] %s7067_s15 }
  0x11   :  { %7138 = sst [smem:[#allocation54_spill]] %s7068_s16 }
  0x12   :  { %7139 = sst [smem:[#allocation55_spill]] %s7069_s17 }
  0x13   :  { %7140 = sst [smem:[#allocation56_spill]] %s7070_s18 }
  0x14   :  { %7141 = sst [smem:[#allocation57_spill]] %s7071_s19 }
  0x15   :  { %7142 = sst [smem:[#allocation58_spill]] %s7072_s20 }
  0x16   :  { %7143 = sst [smem:[#allocation59_spill]] %s7073_s21 }
  0x17   :  { %7144 = sst [smem:[#allocation60_spill]] %s7074_s22 }
  0x18   :  { %7145 = sst [smem:[#allocation61_spill]] %s7075_s23 }
  0x19   :  { %7146 = sst [smem:[#allocation62_spill]] %s7076_s24 }
  0x1a   :  { %7147 = sst [smem:[#allocation63_spill]] %s7077_s25 }
  0x1b   :  { %7148 = sst [smem:[#allocation64_spill]] %s7078_s26 }
  0x1c   :  { %31 = vsyncpa [#allocation4], 0 }
  0x1d   :  { %32 = vsyncpa [#allocation7], 0 }
  0x1e   :  { %33 = vsyncpa [#allocation10], 0 }
  0x1f   :  { %34 = vsyncpa [#allocation13], 0 }
  0x20   :  { %35 = vsyncpa [#allocation5], 0  ;;  %s5949_s27 = smov 0   ;;  %s5951_s3 = smov 0  }
  0x21   :  { %s5953_s7 = smov 0   ;;  %s5955_s28 = smov 0  }
  0x22   :  { %s5957_s8 = smov 0   ;;  %s5959_s4 = smov 0  }
  0x23 LB: > { %7149 = sst [smem:[#allocation29_spill]] %s5764_s3  ;;  %s5980_s29 = sadd.s32 4294967295, %s5780_s4   ;;  %s5780_s4 = sphi %s5959_s4, %s41_s4   ;;  %s5776_s8 = sphi %s5957_s8, %s7232_s8   ;;  %s5772_s28 = sphi %s5955_s28, %s7231_s28   ;;  %s5768_s7 = sphi %s5953_s7, %s7230_s7   ;;  %s5764_s3 = sphi %s5951_s3, %s7229_s3   ;;  %s5760_s27 = sphi %s5949_s27, %s7228_s27  }
  0x24   : > { %7150 = sst [smem:[#allocation30_spill]] %s5768_s7  ;;  %p4465_p0 = scmp.ge.s32.totalorder %s5780_s4, 1 }
  0x25   : > { %7151 = sst [smem:[#allocation31_spill]] %s5772_s28  ;;  %p7087_p1 = scmp.eq.s32.totalorder %s5980_s29, 0 }
  0x26   : > { %7152 = sst [smem:[#allocation32_spill]] %s5776_s8  ;;  %p750_p2 = scmp.lt.s32.totalorder %s5780_s4, 3 }
  0x27   : > { %7153 = sst [smem:[#allocation33_spill]] %s5780_s4  ;;  %s5782_s9 = smov [#allocation3]  }
  0x28   : > { %7154 = sst [smem:[#allocation34_spill]] %s5980_s29  ;;  %p5985_p3 = pnand %p4465_p0, %p750_p2 }
  0x29   : > { %s765_s30 = sshll.u32 %s5782_s9, 4  ;;  %s7157_s6 = sld [smem:[#allocation38_spill]]  ;;  %s766_s30 = int_to_ptr.vmem [resolvable:$true] %s765_s30 }
  0x2a   : > { %s7155_s0 = scalar_select %p5985_p3, 1, 0 }
  0x2b   : > { %p5011_p4 = pneg %p5985_p3 }
  0x2d   : > { %p5993_p5 = pnand %p5011_p4, %p7087_p1 }
  0x2f   : > { %s7156_s2 = scalar_select %p5993_p5, 1, 0 }
  0x30   : > { %s5276_s1 = scalar_lea.hbm %s7157_s6, 256  ;;  %p6005_p7 = pneg %p5993_p5 }
  0x31   : > { %p5277_p6 = scmp.ne.s32.totalorder %s7157_s6, %s5276_s1  ;;  %p5283_p10 = scmp.lt.u32.totalorder %s5276_s1, %s7157_s6 }
  0x32   : > { %s7158_s9 = scalar_select %p6005_p7, 1, 0 }
  0x33   : > { %p5279_p8 = pnand %p6005_p7, %p5277_p6 }
  0x35   : > { %p5280_p9 = pneg %p5279_p8 }
  0x37   : > { %p5285_p11 = pnand %p5283_p10, %p5280_p9 }
  0x39   : > { %5288 = shalt.err (!%p5285_p11)
}
  0x3a   : > { %s5289_s5 = scalar_lea.vmem %s766_s30, 256  ;;  %p5297_p2 = scmp.lt.s32.totalorder %s766_s30, %s766_s30 }
  0x3b   : > { %p5290_p12 = scmp.ne.s32.totalorder %s766_s30, %s5289_s5  ;;  %p5298_p4 = scmp.lt.s32.totalorder %s5289_s5, %s5289_s5 }
  0x3d   : > { %p5292_p13 = pnand %p5290_p12, %p6005_p7  ;;  %p5299_p1 = por %p5298_p4, %p5297_p2 }
  0x3f   : > { %p5293_p0 = pneg %p5292_p13 }
  0x41   : > { %p5300_p3 = pnand %p5299_p1, %p5293_p0 }
  0x43   : > { %5303 = shalt.err (!%p5300_p3)
}
  0x44   : > { %s7089_s24 = smov 128   ;;  %s7090_s23 = smov 8  }
  0x45   : > { %5014 = dma.hbm_to_vmem [thread:$0]  (!%p5993_p5), %s7157_s6, 256, %s766_s30, [#allocation4], %s7089_s24, %s7089_s24, %s7090_s23  }
  0x46   : > { %s50_s10 = sadd.s32 1, %s5776_s8  ;;  %s284_s1 = sadd.s32 1, %s5768_s7 }
  0x47   : > { %p51_p1 = scmp.ge.s32.totalorder %s50_s10, 2  ;;  %p291_p3 = scmp.ne.s32.totalorder %s5768_s7, %s5764_s3 }
  0x48   : > { %p292_p6 = scmp.eq.s32.totalorder %s5780_s4, 0  ;;  %p297_p9 = scmp.ne.s32.totalorder %s5764_s3, %s5760_s27 }
  0x49   : > { %s7234_s10 = smov (%p51_p1, %s50_s10), 0  ;;  %p5061_p10 = scmp.lt.s32.totalorder %s5780_s4, 2 }
  0x4a   : > { %7159 = sst [smem:[#allocation35_spill]] %s7234_s10  ;;  %p6031_p8 = por %p292_p6, %p291_p3 }
  0x4b   : > { %s281_s21 = ssub.s32 %s5776_s8, %s7234_s10  ;;  %p7161_p12 = scmp.eq.s32.totalorder %s5980_s29, 0 }
  0x4c   : > { %p282_p11 = scmp.eq.s32.totalorder %s281_s21, 0  ;;  %s873_s25 = sand.u32 1, %s5780_s4  }
  0x4d   : > { %p6042_p13 = por %p7161_p12, %p297_p9  ;;  %s6048_s26 = sand.u32 1, %s5768_s7  }
  0x4e   : > { %s6051_s24 = scalar_select %p282_p11, %s5768_s7, %s284_s1  }
  0x4f   : > { %s7162_s30 = scalar_select %p6042_p13, 1, 0 }
  0x50   : > { %7163 = sst [smem:[#allocation36_spill]] %s6051_s24  ;;  %s6054_s23 = sshll.u32 %s5776_s8, 4 }
  0x51   : > { %s876_s27 = scalar_lea.vmem [#allocation14], %s6048_s26  ;;  %s7164_s19 = sld [smem:[#allocation47_spill]] }
  0x52   : > { %s883_s6 = sshll.u32 %s876_s27, 4  ;;  %p6067_p0 = pnand %p5061_p10, %p6031_p8  ;;  %s6063_s6 = int_to_ptr.vmem [resolvable:$true] %s883_s6 }
  0x53   : > { %s7166_s11 = sld [smem:[#allocation49_spill]]  ;;  %s901_s10 = scalar_lea.vmem [#allocation15], %s6048_s26 }
  0x54   : > { %s7165_s1 = scalar_select %p6067_p0, 1, 0 }
  0x55   : > { %s908_s21 = sshll.u32 %s901_s10, 4  ;;  %s6080_s4 = scalar_lea.sflag [#allocation4], %s873_s25  ;;  %s6078_s21 = int_to_ptr.vmem [resolvable:$true] %s908_s21 }
  0x56   : > { %p6086_p4 = pneg %p6067_p0 }
  0x57   : > { %s6061_s18 = scalar_lea.hbm %s7164_s19, %s6054_s23  ;;  %s5309_s12 = scalar_lea.hbm %s7164_s19, 32 }
  0x58   : > { %s5304_s14 = scalar_lea.hbm %s6061_s18, 16  ;;  %p5310_p6 = scmp.lt.u32.totalorder %s6061_s18, %s7164_s19 }
  0x59   : > { %s6075_s27 = scalar_lea.hbm %s7166_s11, %s6054_s23  ;;  %p5305_p2 = scmp.ne.s32.totalorder %s6061_s18, %s5304_s14 }
  0x5a   : > { %s7167_s5 = scalar_select %p6086_p4, 1, 0 }
  0x5b   : > { %p5307_p1 = pnand %p6086_p4, %p5305_p2  ;;  %p5311_p8 = scmp.lt.u32.totalorder %s5309_s12, %s5304_s14 }
  0x5c   : > { %p5313_p10 = scmp.lt.u32.totalorder %s5304_s14, %s6061_s18 }
  0x5d   : > { %p5308_p3 = pneg %p5307_p1  ;;  %p5312_p9 = por %p5311_p8, %p5310_p6 }
  0x5f   : > { %p5314_p11 = por %p5313_p10, %p5312_p9 }
  0x61   : > { %p5315_p12 = pnand %p5314_p11, %p5308_p3 }
  0x63   : > { %5318 = shalt.err (!%p5315_p12)
}
  0x64   : > { %s5319_s25 = scalar_lea.vmem %s6063_s6, 16  ;;  %s5785_s7 = smov [#allocation14]  }
  0x65   : > { %p5320_p2 = scmp.ne.s32.totalorder %s6063_s6, %s5319_s25  ;;  %s5324_s24 = sshll.u32 %s5785_s7, 4  ;;  %s5325_s24 = int_to_ptr.vmem [resolvable:$false] %s5324_s24 }
  0x66   : > { %s5326_s28 = scalar_lea.vmem %s5325_s24, 32  ;;  %p5327_p5 = scmp.lt.s32.totalorder %s6063_s6, %s5325_s24 }
  0x67   : > { %p5322_p1 = pnand %p5320_p2, %p6086_p4  ;;  %p5328_p7 = scmp.lt.s32.totalorder %s5326_s28, %s5319_s25 }
  0x69   : > { %p5323_p13 = pneg %p5322_p1  ;;  %p5329_p6 = por %p5328_p7, %p5327_p5 }
  0x6b   : > { %p5330_p8 = pnand %p5329_p6, %p5323_p13 }
  0x6d   : > { %5333 = shalt.err (!%p5330_p8)
}
  0x6e   : > { %5033 = dma.hbm_to_vmem [thread:$0]  (!%p6067_p0), %s6061_s18, 16, %s6063_s6, %s6080_s4  }
  0x6f   : > { %s5334_s12 = scalar_lea.hbm %s6075_s27, 16  ;;  %s5339_s25 = scalar_lea.hbm %s7166_s11, 32 }
  0x70   : > { %p5335_p3 = scmp.ne.s32.totalorder %s6075_s27, %s5334_s12  ;;  %p5340_p5 = scmp.lt.u32.totalorder %s6075_s27, %s7166_s11 }
  0x71   : > { %p5341_p7 = scmp.lt.u32.totalorder %s5339_s25, %s5334_s12  ;;  %p5343_p11 = scmp.lt.u32.totalorder %s5334_s12, %s6075_s27 }
  0x72   : > { %p5337_p9 = pnand %p5335_p3, %p6086_p4 }
  0x73   : > { %p5342_p13 = por %p5341_p7, %p5340_p5 }
  0x74   : > { %p5338_p10 = pneg %p5337_p9 }
  0x75   : > { %p5344_p12 = por %p5343_p11, %p5342_p13 }
  0x77   : > { %p5345_p2 = pnand %p5344_p12, %p5338_p10 }
  0x79   : > { %5348 = shalt.err (!%p5345_p2)
}
  0x7a   : > { %s5349_s18 = scalar_lea.vmem %s6078_s21, 16  ;;  %s5786_s6 = smov [#allocation15]  }
  0x7b   : > { %p5350_p1 = scmp.ne.s32.totalorder %s6078_s21, %s5349_s18  ;;  %s5354_s28 = sshll.u32 %s5786_s6, 4  ;;  %s5355_s28 = int_to_ptr.vmem [resolvable:$false] %s5354_s28 }
  0x7c   : > { %s5356_s14 = scalar_lea.vmem %s5355_s28, 32  ;;  %p5357_p3 = scmp.lt.s32.totalorder %s6078_s21, %s5355_s28 }
  0x7d   : > { %p5352_p6 = pnand %p5350_p1, %p6086_p4  ;;  %p5358_p9 = scmp.lt.s32.totalorder %s5356_s14, %s5349_s18 }
  0x7f   : > { %p5353_p8 = pneg %p5352_p6  ;;  %p5359_p5 = por %p5358_p9, %p5357_p3 }
  0x81   : > { %p5360_p7 = pnand %p5359_p5, %p5353_p8 }
  0x83   : > { %5363 = shalt.err (!%p5360_p7)
}
  0x84   : > { %5036 = dma.hbm_to_vmem [thread:$0]  (!%p6067_p0), %s6075_s27, 16, %s6078_s21, %s6080_s4  }
  0x85   : > { %s7168_s13 = sld [smem:[#allocation51_spill]]  ;;  %s926_s7 = scalar_lea.vmem [#allocation16], %s6048_s26 }
  0x86   : > { %s933_s24 = sshll.u32 %s926_s7, 4  ;;  %s7169_s15 = sld [smem:[#allocation53_spill]]  ;;  %s934_s24 = int_to_ptr.vmem [resolvable:$true] %s933_s24 }
  0x8b   : > { %s6136_s25 = scalar_lea.hbm %s7168_s13, %s6054_s23  ;;  %s5369_s12 = scalar_lea.hbm %s7168_s13, 32 }
  0x8c   : > { %s6143_s28 = scalar_lea.hbm %s7169_s15, %s6054_s23  ;;  %s5364_s14 = scalar_lea.hbm %s6136_s25, 16 }
  0x8d   : > { %p5365_p10 = scmp.ne.s32.totalorder %s6136_s25, %s5364_s14  ;;  %p5370_p12 = scmp.lt.u32.totalorder %s6136_s25, %s7168_s13 }
  0x8e   : > { %p5371_p2 = scmp.lt.u32.totalorder %s5369_s12, %s5364_s14  ;;  %p5373_p6 = scmp.lt.u32.totalorder %s5364_s14, %s6136_s25 }
  0x8f   : > { %p5367_p13 = pnand %p5365_p10, %p6086_p4 }
  0x90   : > { %p5372_p1 = por %p5371_p2, %p5370_p12 }
  0x91   : > { %p5368_p11 = pneg %p5367_p13 }
  0x92   : > { %p5374_p8 = por %p5373_p6, %p5372_p1 }
  0x94   : > { %p5375_p3 = pnand %p5374_p8, %p5368_p11 }
  0x96   : > { %5378 = shalt.err (!%p5375_p3)
}
  0x97   : > { %s5379_s7 = scalar_lea.vmem %s934_s24, 16  ;;  %s5787_s18 = smov [#allocation16]  }
  0x98   : > { %p5380_p9 = scmp.ne.s32.totalorder %s934_s24, %s5379_s7  ;;  %s5384_s6 = sshll.u32 %s5787_s18, 4  ;;  %s5385_s6 = int_to_ptr.vmem [resolvable:$false] %s5384_s6 }
  0x99   : > { %s5386_s27 = scalar_lea.vmem %s5385_s6, 32  ;;  %p5387_p10 = scmp.lt.s32.totalorder %s934_s24, %s5385_s6 }
  0x9a   : > { %p5382_p5 = pnand %p5380_p9, %p6086_p4  ;;  %p5388_p13 = scmp.lt.s32.totalorder %s5386_s27, %s5379_s7 }
  0x9c   : > { %p5383_p7 = pneg %p5382_p5  ;;  %p5389_p0 = por %p5388_p13, %p5387_p10 }
  0x9e   : > { %p5390_p2 = pnand %p5389_p0, %p5383_p7 }
  0xa0   : > { %5393 = shalt.err (!%p5390_p2)
}
  0xa1   : > { %p7170_p12 = scmp.ne.s32.totalorder %s7165_s1, 0  ;;  %s951_s11 = scalar_lea.vmem [#allocation17], %s6048_s26 }
  0xa2   : > { %s958_s14 = sshll.u32 %s951_s11, 4  ;;  %s5394_s21 = scalar_lea.hbm %s6143_s28, 16  ;;  %s959_s14 = int_to_ptr.vmem [resolvable:$true] %s958_s14 }
  0xa3   : > { %5039 = dma.hbm_to_vmem [thread:$0]  (!%p7170_p12), %s6136_s25, 16, %s934_s24, %s6080_s4  }
  0xa4   : > { %p5395_p11 = scmp.ne.s32.totalorder %s6143_s28, %s5394_s21  ;;  %s5399_s7 = scalar_lea.hbm %s7169_s15, 32 }
  0xa5   : > { %p5400_p6 = scmp.lt.u32.totalorder %s6143_s28, %s7169_s15  ;;  %p5401_p8 = scmp.lt.u32.totalorder %s5399_s7, %s5394_s21 }
  0xa6   : > { %p5397_p1 = pnand %p5395_p11, %p6086_p4  ;;  %p5403_p9 = scmp.lt.u32.totalorder %s5394_s21, %s6143_s28 }
  0xa7   : > { %p5402_p3 = por %p5401_p8, %p5400_p6 }
  0xa8   : > { %p5398_p0 = pneg %p5397_p1 }
  0xa9   : > { %p5404_p5 = por %p5403_p9, %p5402_p3 }
  0xab   : > { %p5405_p7 = pnand %p5404_p5, %p5398_p0 }
  0xad   : > { %5408 = shalt.err (!%p5405_p7)
}
  0xae   : > { %s5409_s25 = scalar_lea.vmem %s959_s14, 16  ;;  %s5788_s24 = smov [#allocation17]  }
  0xaf   : > { %p5410_p10 = scmp.ne.s32.totalorder %s959_s14, %s5409_s25  ;;  %s5414_s27 = sshll.u32 %s5788_s24, 4  ;;  %s5415_s27 = int_to_ptr.vmem [resolvable:$false] %s5414_s27 }
  0xb0   : > { %s5416_s11 = scalar_lea.vmem %s5415_s27, 32  ;;  %p5417_p11 = scmp.lt.s32.totalorder %s959_s14, %s5415_s27 }
  0xb1   : > { %p5412_p13 = pnand %p5410_p10, %p6086_p4  ;;  %p5418_p1 = scmp.lt.s32.totalorder %s5416_s11, %s5409_s25 }
  0xb3   : > { %p5413_p2 = pneg %p5412_p13  ;;  %p5419_p12 = por %p5418_p1, %p5417_p11 }
  0xb5   : > { %p5420_p6 = pnand %p5419_p12, %p5413_p2 }
  0xb7   : > { %5423 = shalt.err (!%p5420_p6)
}
  0xb8   : > { %p7171_p8 = scmp.ne.s32.totalorder %s7165_s1, 0  ;;  %s6183_s21 = sshll.u32 %s6048_s26, 4 }
  0xb9   : > { %s6186_s12 = sshll.u32 %s5776_s8, 8  ;;  %s7172_s16 = sld [smem:[#allocation54_spill]] }
  0xba   : > { %5042 = dma.hbm_to_vmem [thread:$0]  (!%p7171_p8), %s6143_s28, 16, %s959_s14, %s6080_s4  }
  0xbb   : > { %s969_s6 = scalar_lea.vmem [#allocation18], %s6183_s21  ;;  %s7173_s17 = sld [smem:[#allocation55_spill]] }
  0xbc   : > { %s976_s25 = sshll.u32 %s969_s6, 4  ;;  %s6195_s25 = int_to_ptr.vmem [resolvable:$true] %s976_s25 }
  0xbf   : > { %s6192_s18 = scalar_lea.hbm %s7172_s16, %s6186_s12  ;;  %s5429_s7 = scalar_lea.hbm %s7172_s16, 512 }
  0xc0   : > { %s5424_s27 = scalar_lea.hbm %s6192_s18, 256  ;;  %p5430_p9 = scmp.lt.u32.totalorder %s6192_s18, %s7172_s16 }
  0xc1   : > { %s6201_s24 = scalar_lea.hbm %s7173_s17, %s6054_s23  ;;  %p5425_p12 = scmp.ne.s32.totalorder %s6192_s18, %s5424_s27 }
  0xc2   : > { %p5431_p5 = scmp.lt.u32.totalorder %s5429_s7, %s5424_s27  ;;  %p5433_p10 = scmp.lt.u32.totalorder %s5424_s27, %s6192_s18 }
  0xc3   : > { %p5427_p0 = pnand %p5425_p12, %p6086_p4 }
  0xc4   : > { %p5432_p7 = por %p5431_p5, %p5430_p9 }
  0xc5   : > { %p5428_p3 = pneg %p5427_p0 }
  0xc6   : > { %p5434_p13 = por %p5433_p10, %p5432_p7 }
  0xc8   : > { %p5435_p2 = pnand %p5434_p13, %p5428_p3 }
  0xca   : > { %5438 = shalt.err (!%p5435_p2)
}
  0xcb   : > { %s5439_s23 = scalar_lea.vmem %s6195_s25, 256  ;;  %s5789_s6 = smov [#allocation18]  }
  0xcc   : > { %p5440_p11 = scmp.ne.s32.totalorder %s6195_s25, %s5439_s23  ;;  %s5444_s28 = sshll.u32 %s5789_s6, 4  ;;  %s5445_s28 = int_to_ptr.vmem [resolvable:$false] %s5444_s28 }
  0xcd   : > { %s5446_s13 = scalar_lea.vmem %s5445_s28, 512  ;;  %p5447_p12 = scmp.lt.s32.totalorder %s6195_s25, %s5445_s28 }
  0xce   : > { %p5442_p1 = pnand %p5440_p11, %p6086_p4  ;;  %p5448_p0 = scmp.lt.s32.totalorder %s5446_s13, %s5439_s23 }
  0xd0   : > { %p5443_p6 = pneg %p5442_p1  ;;  %p5449_p9 = por %p5448_p0, %p5447_p12 }
  0xd2   : > { %p5450_p5 = pnand %p5449_p9, %p5443_p6 }
  0xd4   : > { %5453 = shalt.err (!%p5450_p5)
}
  0xd5   : > { %s7105_s15 = smov 64   ;;  %s7107_s14 = smov 4  }
  0xd6   : > { %5045 = dma.hbm_to_vmem [thread:$0]  (!%p7171_p8), %s6192_s18, 256, %s6195_s25, %s6080_s4, %s7105_s15, %s7105_s15, %s7107_s14  }
  0xd7   : > { %s989_s27 = scalar_lea.vmem [#allocation19], %s6048_s26  ;;  %s5792_s10 = smov [#allocation6]  }
  0xd8   : > { %s996_s11 = sshll.u32 %s989_s27, 4  ;;  %s781_s7 = sshll.u32 %s5792_s10, 4  ;;  %s6229_s11 = int_to_ptr.vmem [resolvable:$true] %s996_s11  ;;  %s782_s7 = int_to_ptr.vmem [resolvable:$true] %s781_s7 }
  0xd9   : > { %s5454_s23 = scalar_lea.hbm %s6201_s24, 16  ;;  %s5459_s13 = scalar_lea.hbm %s7173_s17, 32 }
  0xda   : > { %p5455_p3 = scmp.ne.s32.totalorder %s6201_s24, %s5454_s23  ;;  %p5460_p13 = scmp.lt.u32.totalorder %s6201_s24, %s7173_s17 }
  0xdb   : > { %p5461_p2 = scmp.lt.u32.totalorder %s5459_s13, %s5454_s23  ;;  %p5463_p1 = scmp.lt.u32.totalorder %s5454_s23, %s6201_s24 }
  0xdc   : > { %p5457_p7 = pnand %p5455_p3, %p6086_p4 }
  0xdd   : > { %p5462_p11 = por %p5461_p2, %p5460_p13 }
  0xde   : > { %p5458_p10 = pneg %p5457_p7 }
  0xdf   : > { %p5464_p6 = por %p5463_p1, %p5462_p11 }
  0xe1   : > { %p5465_p12 = pnand %p5464_p6, %p5458_p10 }
  0xe3   : > { %5468 = shalt.err (!%p5465_p12)
}
  0xe4   : > { %s5469_s26 = scalar_lea.vmem %s6229_s11, 16  ;;  %s5793_s18 = smov [#allocation19]  }
  0xe5   : > { %p5470_p0 = scmp.ne.s32.totalorder %s6229_s11, %s5469_s26  ;;  %s5474_s25 = sshll.u32 %s5793_s18, 4  ;;  %s5475_s25 = int_to_ptr.vmem [resolvable:$false] %s5474_s25 }
  0xe6   : > { %s5476_s16 = scalar_lea.vmem %s5475_s25, 32  ;;  %p5477_p3 = scmp.lt.s32.totalorder %s6229_s11, %s5475_s25 }
  0xe7   : > { %p5472_p9 = pnand %p5470_p0, %p6086_p4  ;;  %p5478_p7 = scmp.lt.s32.totalorder %s5476_s16, %s5469_s26 }
  0xe9   : > { %p5473_p5 = pneg %p5472_p9  ;;  %p5479_p13 = por %p5478_p7, %p5477_p3 }
  0xeb   : > { %p5480_p2 = pnand %p5479_p13, %p5473_p5 }
  0xed   : > { %5483 = shalt.err (!%p5480_p2)
}
  0xee   : > { %5048 = dma.hbm_to_vmem [thread:$0]  (!%p7171_p8), %s6201_s24, 16, %s6229_s11, %s6080_s4  }
  0xef   : > { %s7174_s10 = sld [smem:[#allocation39_spill]]  ;;  %p7175_p11 = scmp.ne.s32.totalorder %s7158_s9, 0 }
  0xf5   : > { %s5484_s23 = scalar_lea.hbm %s7174_s10, 256 }
  0xf6   : > { %p5485_p10 = scmp.ne.s32.totalorder %s7174_s10, %s5484_s23  ;;  %p5491_p12 = scmp.lt.u32.totalorder %s5484_s23, %s7174_s10 }
  0xf8   : > { %p5487_p1 = pnand %p5485_p10, %p7175_p11 }
  0xfa   : > { %p5488_p6 = pneg %p5487_p1 }
  0xfc   : > { %p5493_p0 = pnand %p5491_p12, %p5488_p6 }
  0xfe   : > { %5496 = shalt.err (!%p5493_p0)
}
  0xff   : > { %s5497_s18 = scalar_lea.vmem %s782_s7, 256  ;;  %p5505_p7 = scmp.lt.s32.totalorder %s782_s7, %s782_s7 }
 0x100   : > { %p5498_p9 = scmp.ne.s32.totalorder %s782_s7, %s5497_s18  ;;  %p5506_p13 = scmp.lt.s32.totalorder %s5497_s18, %s5497_s18 }
 0x102   : > { %p5500_p5 = pnand %p5498_p9, %p7175_p11  ;;  %p5507_p2 = por %p5506_p13, %p5505_p7 }
 0x104   : > { %p5501_p3 = pneg %p5500_p5 }
 0x106   : > { %p5508_p8 = pnand %p5507_p2, %p5501_p3 }
 0x108   : > { %5511 = shalt.err (!%p5508_p8)
}
 0x109   : > { %p7176_p10 = scmp.ne.s32.totalorder %s7156_s2, 0  ;;  %s7177_s24 = smov 8  }
 0x10a   : > { %s7178_s11 = smov 128   ;;  %s5794_s19 = smov [#allocation9]  }
 0x10b   : > { %5017 = dma.hbm_to_vmem [thread:$0]  (!%p7176_p10), %s7174_s10, 256, %s782_s7, [#allocation7], %s7178_s11, %s7178_s11, %s7177_s24  }
 0x10c   : > { %s815_s27 = sshll.u32 %s5794_s19, 4  ;;  %s7179_s20 = sld [smem:[#allocation58_spill]]  ;;  %s816_s27 = int_to_ptr.vmem [resolvable:$true] %s815_s27 }
 0x10d   : > { %s7180_s18 = sld [smem:[#allocation41_spill]] }
 0x112   : > { %s6278_s28 = scalar_lea.hbm %s7179_s20, %s6186_s12 }
 0x113   : > { %s5512_s15 = scalar_lea.hbm %s7180_s18, 256 }
 0x114   : > { %p5513_p8 = scmp.ne.s32.totalorder %s7180_s18, %s5512_s15  ;;  %p5519_p12 = scmp.lt.u32.totalorder %s5512_s15, %s7180_s18 }
 0x116   : > { %p5515_p1 = pnand %p5513_p8, %p7175_p11 }
 0x118   : > { %p5516_p6 = pneg %p5515_p1 }
 0x11a   : > { %p5521_p0 = pnand %p5519_p12, %p5516_p6 }
 0x11c   : > { %5524 = shalt.err (!%p5521_p0)
}
 0x11d   : > { %s5525_s11 = scalar_lea.vmem %s816_s27, 256  ;;  %p5533_p7 = scmp.lt.s32.totalorder %s816_s27, %s816_s27 }
 0x11e   : > { %p5526_p9 = scmp.ne.s32.totalorder %s816_s27, %s5525_s11  ;;  %p5534_p13 = scmp.lt.s32.totalorder %s5525_s11, %s5525_s11 }
 0x120   : > { %p5528_p5 = pnand %p5526_p9, %p7175_p11  ;;  %p5535_p2 = por %p5534_p13, %p5533_p7 }
 0x122   : > { %p5529_p3 = pneg %p5528_p5 }
 0x124   : > { %p5536_p4 = pnand %p5535_p2, %p5529_p3 }
 0x126   : > { %5539 = shalt.err (!%p5536_p4)
}
 0x127   : > { %s7181_s17 = smov 4   ;;  %s7182_s14 = smov 64  }
 0x128   : > { %5023 = dma.hbm_to_vmem [thread:$0]  (!%p7176_p10), %s7180_s18, 256, %s816_s27, [#allocation10], %s7182_s14, %s7182_s14, %s7181_s17  }
 0x129   : > { %s1021_s16 = scalar_lea.vmem [#allocation20], %s6183_s21  ;;  %s5795_s23 = smov [#allocation8]  }
 0x12a   : > { %s1028_s19 = sshll.u32 %s1021_s16, 4  ;;  %s6304_s6 = sshll.u32 %s5795_s23, 4  ;;  %s6302_s19 = int_to_ptr.vmem [resolvable:$true] %s1028_s19  ;;  %s799_s6 = int_to_ptr.vmem [resolvable:$true] %s6304_s6 }
 0x12b   : > { %s5540_s13 = scalar_lea.hbm %s6278_s28, 256  ;;  %p7183_p8 = scmp.ne.s32.totalorder %s7167_s5, 0 }
 0x12c   : > { %p5541_p4 = scmp.ne.s32.totalorder %s6278_s28, %s5540_s13  ;;  %s5545_s24 = scalar_lea.hbm %s7179_s20, 512 }
 0x12d   : > { %p5546_p12 = scmp.lt.u32.totalorder %s6278_s28, %s7179_s20  ;;  %p5547_p0 = scmp.lt.u32.totalorder %s5545_s24, %s5540_s13 }
 0x12e   : > { %p5543_p1 = pnand %p5541_p4, %p7183_p8  ;;  %p5549_p5 = scmp.lt.u32.totalorder %s5540_s13, %s6278_s28 }
 0x12f   : > { %p5548_p9 = por %p5547_p0, %p5546_p12 }
 0x130   : > { %p5544_p6 = pneg %p5543_p1 }
 0x131   : > { %p5550_p3 = por %p5549_p5, %p5548_p9 }
 0x133   : > { %p5551_p7 = pnand %p5550_p3, %p5544_p6 }
 0x135   : > { %5554 = shalt.err (!%p5551_p7)
}
 0x136   : > { %s5555_s27 = scalar_lea.vmem %s6302_s19, 256  ;;  %s5796_s15 = smov [#allocation20]  }
 0x137   : > { %p5556_p13 = scmp.ne.s32.totalorder %s6302_s19, %s5555_s27  ;;  %s5560_s16 = sshll.u32 %s5796_s15, 4  ;;  %s5561_s16 = int_to_ptr.vmem [resolvable:$false] %s5560_s16 }
 0x138   : > { %s5562_s23 = scalar_lea.vmem %s5561_s16, 512  ;;  %p5563_p1 = scmp.lt.s32.totalorder %s6302_s19, %s5561_s16 }
 0x139   : > { %p5558_p2 = pnand %p5556_p13, %p7183_p8  ;;  %p5564_p10 = scmp.lt.s32.totalorder %s5562_s23, %s5555_s27 }
 0x13b   : > { %p5559_p4 = pneg %p5558_p2  ;;  %p5565_p12 = por %p5564_p10, %p5563_p1 }
 0x13d   : > { %p5566_p0 = pnand %p5565_p12, %p5559_p4 }
 0x13f   : > { %5569 = shalt.err (!%p5566_p0)
}
 0x140   : > { %p7184_p6 = scmp.ne.s32.totalorder %s7165_s1, 0  ;;  %s7185_s7 = sld [smem:[#allocation40_spill]] }
 0x142   : > { %5051 = dma.hbm_to_vmem [thread:$0]  (!%p7184_p6), %s6278_s28, 256, %s6302_s19, %s6080_s4, %s7182_s14, %s7182_s14, %s7181_s17  }
 0x146   : > { %s7186_s24 = smov %s7185_s7  ;;  %s5570_s11 = scalar_lea.hbm %s7185_s7, 256 }
 0x147   : > { %p5571_p10 = scmp.ne.s32.totalorder %s7186_s24, %s5570_s11  ;;  %p5577_p3 = scmp.lt.u32.totalorder %s5570_s11, %s7186_s24 }
 0x149   : > { %p5573_p9 = pnand %p5571_p10, %p7175_p11 }
 0x14b   : > { %p5574_p5 = pneg %p5573_p9 }
 0x14d   : > { %p5579_p7 = pnand %p5577_p3, %p5574_p5 }
 0x14f   : > { %5582 = shalt.err (!%p5579_p7)
}
 0x150   : > { %s5583_s23 = scalar_lea.vmem %s799_s6, 256  ;;  %p5591_p1 = scmp.lt.s32.totalorder %s799_s6, %s799_s6 }
 0x151   : > { %p5584_p13 = scmp.ne.s32.totalorder %s799_s6, %s5583_s23  ;;  %p5592_p12 = scmp.lt.s32.totalorder %s5583_s23, %s5583_s23 }
 0x153   : > { %p5586_p2 = pnand %p5584_p13, %p7175_p11  ;;  %p5593_p0 = por %p5592_p12, %p5591_p1 }
 0x155   : > { %p5587_p4 = pneg %p5586_p2 }
 0x157   : > { %p5594_p6 = pnand %p5593_p0, %p5587_p4 }
 0x159   : > { %5597 = shalt.err (!%p5594_p6)
}
 0x15a   : > { %p7187_p10 = scmp.ne.s32.totalorder %s7156_s2, 0  ;;  %s5797_s13 = smov [#allocation11]  }
 0x15b   : > { %s829_s26 = sshll.u32 %s5797_s13, 4  ;;  %s5798_s7 = smov [#allocation12]   ;;  %s830_s26 = int_to_ptr.vmem [resolvable:$true] %s829_s26 }
 0x15c   : > { %5020 = dma.hbm_to_vmem [thread:$0]  (!%p7187_p10), %s7186_s24, 256, %s799_s6, [#allocation7], %s7182_s14, %s7182_s14, %s7181_s17  }
 0x15d   : > { %s840_s11 = sshll.u32 %s5798_s7, 4  ;;  %s7188_s15 = sld [smem:[#allocation42_spill]]  ;;  %s841_s11 = int_to_ptr.vmem [resolvable:$true] %s840_s11 }
 0x163   : > { %s5598_s16 = scalar_lea.hbm %s7188_s15, 16 }
 0x164   : > { %p5599_p6 = scmp.ne.s32.totalorder %s7188_s15, %s5598_s16  ;;  %p5605_p3 = scmp.lt.u32.totalorder %s5598_s16, %s7188_s15 }
 0x166   : > { %p5601_p9 = pnand %p5599_p6, %p7175_p11 }
 0x168   : > { %p5602_p5 = pneg %p5601_p9 }
 0x16a   : > { %p5607_p7 = pnand %p5605_p3, %p5602_p5 }
 0x16c   : > { %5610 = shalt.err (!%p5607_p7)
}
 0x16d   : > { %s5611_s6 = scalar_lea.vmem %s830_s26, 16  ;;  %s5618_s19 = scalar_lea.vmem %s830_s26, 32 }
 0x16e   : > { %p5612_p13 = scmp.ne.s32.totalorder %s830_s26, %s5611_s6  ;;  %p5619_p1 = scmp.lt.s32.totalorder %s830_s26, %s830_s26 }
 0x16f   : > { %p5620_p12 = scmp.lt.s32.totalorder %s5618_s19, %s5611_s6 }
 0x170   : > { %p5614_p2 = pnand %p5612_p13, %p7175_p11 }
 0x171   : > { %p5621_p0 = por %p5620_p12, %p5619_p1 }
 0x172   : > { %p5615_p4 = pneg %p5614_p2 }
 0x174   : > { %p5622_p8 = pnand %p5621_p0, %p5615_p4 }
 0x176   : > { %5625 = shalt.err (!%p5622_p8)
}
 0x177   : > { %5026 = dma.hbm_to_vmem [thread:$0]  (!%p7187_p10), %s7188_s15, 16, %s830_s26, [#allocation10]  }
 0x178   : > { %s7189_s25 = sld [smem:[#allocation43_spill]] }
 0x17e   : > { %s5626_s27 = scalar_lea.hbm %s7189_s25, 16 }
 0x17f   : > { %p5627_p6 = scmp.ne.s32.totalorder %s7189_s25, %s5626_s27  ;;  %p5633_p8 = scmp.lt.u32.totalorder %s5626_s27, %s7189_s25 }
 0x181   : > { %p5629_p9 = pnand %p5627_p6, %p7175_p11 }
 0x183   : > { %p5630_p5 = pneg %p5629_p9 }
 0x185   : > { %p5635_p3 = pnand %p5633_p8, %p5630_p5 }
 0x187   : > { %5638 = shalt.err (!%p5635_p3)
}
 0x188   : > { %s5639_s19 = scalar_lea.vmem %s841_s11, 16  ;;  %s5646_s26 = scalar_lea.vmem %s841_s11, 32 }
 0x189   : > { %p5640_p7 = scmp.ne.s32.totalorder %s841_s11, %s5639_s19  ;;  %p5647_p4 = scmp.lt.s32.totalorder %s841_s11, %s841_s11 }
 0x18a   : > { %p5648_p1 = scmp.lt.s32.totalorder %s5646_s26, %s5639_s19 }
 0x18b   : > { %p5642_p13 = pnand %p5640_p7, %p7175_p11 }
 0x18c   : > { %p5649_p12 = por %p5648_p1, %p5647_p4 }
 0x18d   : > { %p5643_p2 = pneg %p5642_p13 }
 0x18f   : > { %p5650_p0 = pnand %p5649_p12, %p5643_p2 }
 0x191   : > { %5653 = shalt.err (!%p5650_p0)
}
 0x192   : > { %5029 = dma.hbm_to_vmem [thread:$0]  (!%p7187_p10), %s7189_s25, 16, %s841_s11, [#allocation13]  }
 0x193   : > { %s7190_s22 = sld [smem:[#allocation60_spill]]  ;;  %s1048_s27 = scalar_lea.vmem [#allocation21], %s6183_s21 }
 0x194   : > { %s1055_s16 = sshll.u32 %s1048_s27, 4  ;;  %p7191_p6 = scmp.ne.s32.totalorder %s7167_s5, 0  ;;  %s6396_s16 = int_to_ptr.vmem [resolvable:$true] %s1055_s16 }
 0x199   : > { %s6393_s9 = scalar_lea.hbm %s7190_s22, %s6186_s12  ;;  %s5659_s28 = scalar_lea.hbm %s7190_s22, 512 }
 0x19a   : > { %s5654_s2 = scalar_lea.hbm %s6393_s9, 256  ;;  %p5660_p10 = scmp.lt.u32.totalorder %s6393_s9, %s7190_s22 }
 0x19b   : > { %p5655_p11 = scmp.ne.s32.totalorder %s6393_s9, %s5654_s2  ;;  %p5661_p8 = scmp.lt.u32.totalorder %s5659_s28, %s5654_s2 }
 0x19c   : > { %p5663_p7 = scmp.lt.u32.totalorder %s5654_s2, %s6393_s9 }
 0x19d   : > { %p5657_p9 = pnand %p5655_p11, %p7191_p6  ;;  %p5662_p3 = por %p5661_p8, %p5660_p10 }
 0x19f   : > { %p5658_p5 = pneg %p5657_p9  ;;  %p5664_p13 = por %p5663_p7, %p5662_p3 }
 0x1a1   : > { %p5665_p2 = pnand %p5664_p13, %p5658_p5 }
 0x1a3   : > { %5668 = shalt.err (!%p5665_p2)
}
 0x1a4   : > { %s5669_s21 = scalar_lea.vmem %s6396_s16, 256  ;;  %s5799_s19 = smov [#allocation21]  }
 0x1a5   : > { %p5670_p4 = scmp.ne.s32.totalorder %s6396_s16, %s5669_s21  ;;  %s5674_s26 = sshll.u32 %s5799_s19, 4  ;;  %s5675_s26 = int_to_ptr.vmem [resolvable:$false] %s5674_s26 }
 0x1a6   : > { %s5676_s10 = scalar_lea.vmem %s5675_s26, 512  ;;  %p5677_p0 = scmp.lt.s32.totalorder %s6396_s16, %s5675_s26 }
 0x1a7   : > { %p5672_p1 = pnand %p5670_p4, %p7191_p6  ;;  %p5678_p11 = scmp.lt.s32.totalorder %s5676_s10, %s5669_s21 }
 0x1a9   : > { %p5673_p12 = pneg %p5672_p1  ;;  %p5679_p9 = por %p5678_p11, %p5677_p0 }
 0x1ab   : > { %p5680_p10 = pnand %p5679_p9, %p5673_p12 }
 0x1ad   : > { %5683 = shalt.err (!%p5680_p10)
}
 0x1ae   : > { %p7192_p5 = scmp.ne.s32.totalorder %s7165_s1, 0  ;;  %p7193_p6 = scmp.ne.s32.totalorder %s7155_s0, 0 }
 0x1b0   : > { %5054 = dma.hbm_to_vmem [thread:$0]  (!%p7192_p5), %s6393_s9, 256, %s6396_s16, %s6080_s4, %s7182_s14, %s7182_s14, %s7181_s17  }
 0x1b1   : > { %1087 = sbr.rel (%p7193_p6) target bundleno = 7592 (0x1da8), region = 124 }
 0x1b8   : > { %p7194_p8 = scmp.eq.s32.totalorder %s5980_s29, 0 }
 0x1ba   : > { %5735 = dma.done.wait (%p7194_p8), [#allocation4], 256   ;;  %p7195_p3 = pmov %p7194_p8 }
 0x1bc   : > { %5737 = vsyncadd (%p7195_p3), [#allocation4], 4294967040  ;;  %p7196_p7 = pmov %p7195_p3 }
 0x1bd   : > { %p7197_p13 = pmov %p7195_p3 }
 0x1be   : > { %5739 = dma.done.wait (%p7196_p7), [#allocation7], 512  }
 0x1bf   : > { %5741 = vsyncadd (%p7197_p13), [#allocation7], 4294966784  ;;  %p7198_p2 = pmov %p7195_p3 }
 0x1c1   : > { %5743 = dma.done.wait (%p7198_p2), [#allocation10], 272   ;;  %p7199_p4 = pmov %p7198_p2 }
 0x1c2   : > { %p7200_p1 = pmov %p7198_p2 }
 0x1c3   : > { %5745 = vsyncadd (%p7199_p4), [#allocation10], 4294967024 }
 0x1c4   : > { %5747 = dma.done.wait (%p7200_p1), [#allocation13], 16   ;;  %p7201_p12 = pmov %p7200_p1 }
 0x1c5   : > { %s1113_s4 = sand.u32 1, %s5980_s29   ;;  %s6443_s0 = sand.u32 1, %s5764_s3  }
 0x1c6   : > { %5749 = vsyncadd (%p7201_p12), [#allocation13], 4294967280  ;;  %s1114_s1 = scalar_lea.sflag [#allocation4], %s1113_s4  ;;  %p7202_p0 = scmp.ne.s32.totalorder %s7162_s30, 0 }
 0x1c8   : > { %5751 = dma.done.wait (%p7202_p0), %s1114_s1, 848  }
 0x1c9   : > { %5753 = vsyncadd (%p7202_p0), %s1114_s1, 4294966448  ;;  %s7203_s17 = sld [smem:[#allocation31_spill]]  ;;  %s6451_s14 = sshll.u32 %s6443_s0, 4 }
 0x1ca   : > { %s7204_s27 = sld [smem:[#allocation44_spill]]  ;;  %s7205_s11 = sld [smem:[#allocation45_spill]] }
 0x1cb   : > { %s7207_s21 = sld [smem:[#allocation46_spill]]  ;;  %s7208_s4 = sld [smem:[#allocation48_spill]] }
 0x1cc   : > { %s7210_s23 = sld [smem:[#allocation52_spill]]  ;;  %s7213_s7 = sld [smem:[#allocation59_spill]] }
 0x1cd   : > { %s7214_s8 = sld [smem:[#allocation61_spill]]  ;;  %s7215_s29 = sld [smem:[#allocation63_spill]] }
 0x1ce   : > { %s7216_s12 = sld [smem:[#allocation62_spill]]  ;;  %s1124_s26 = scalar_lea.vmem [#allocation15], %s6443_s0 }
 0x1cf   : > { %p1323_p11 = scmp.lt.s32.totalorder %s7203_s17, 1  ;;  %s1132_s10 = scalar_lea.vmem [#allocation16], %s6443_s0 }
 0x1d0   : > { %s1149_s20 = scalar_lea.vmem [#allocation18], %s6451_s14  ;;  %s1157_s22 = scalar_lea.vmem [#allocation19], %s6443_s0 }
 0x1d1   : > { %s6455_s13 = scalar_select %p1323_p11, %s7203_s17, 1 }
 0x1d2   : > { %s1166_s24 = scalar_lea.vmem [#allocation20], %s6451_s14  ;;  %p4511_p9 = scmp.ne.s32.totalorder %s7203_s17, 0 }
 0x1d3   : > { %s4497_s18 = sshll.u32 %s6455_s13, 2  ;;  %s4598_s30 = sshll.u32 %s6455_s13, 4  ;;  %v1379_v0 = vld [vmem:[#allocation3] sm:$0xff] (!%p4511_p9)  ;;  %vm1381_vm0 = vcmask (!%p4511_p9), 261120   ;;  %v1380_v1 = vld [vmem:[#allocation3 + $0x8] sm:$0xff] (!%p4511_p9) }
 0x1d4   : > { %s6462_s16 = scalar_lea.vmem %s7204_s27, %s4497_s18  ;;  %s6467_s28 = scalar_lea.vmem %s7205_s11, %s4497_s18  ;;  %1382 = vst.msk [vmem:[#allocation2] sm:$0xff] (!%p4511_p9), %vm1381_vm0, %v1379_v0  ;;  %1383 = vst.msk [vmem:[#allocation2 + $0x8] sm:$0xff] (!%p4511_p9), %vm1381_vm0, %v1380_v1 }
 0x1d5   : > { %7206 = sst [smem:[#allocation37_spill]] %s6467_s28  ;;  %s1335_s19 = scalar_lea.vmem %s7207_s21, %s4598_s30 }
 0x1d6   : > { %s6475_s1 = scalar_lea.vmem %s7208_s4, %s4598_s30  ;;  %s7209_s27 = sld [smem:[#allocation50_spill]] }
 0x1d7   : > { %s6485_s11 = scalar_lea.vmem %s7210_s23, %s4598_s30  ;;  %s7211_s21 = sld [smem:[#allocation56_spill]] }
 0x1d8   : > { %s1361_s9 = scalar_lea.vmem %s7213_s7, %s6455_s13  ;;  %s1364_s3 = scalar_lea.vmem %s7214_s8, %s6455_s13 }
 0x1d9   : > { %s4603_s2 = sshll.u32 %s6455_s13, 5  ;;  %s1372_s28 = scalar_lea.vmem %s7215_s29, %s6455_s13 }
 0x1da   : > { %s1140_s4 = scalar_lea.vmem [#allocation17], %s6443_s0  ;;  %s1175_s7 = scalar_lea.vmem [#allocation21], %s6451_s14 }
 0x1db   : > { %1378 = sbr.rel (%p4511_p9) target bundleno = 482 (0x1e2), region = 184 }
 0x1dc   : > { %s6480_s5 = scalar_lea.vmem %s7209_s27, %s4598_s30 }
 0x1dd   : > { %s6490_s15 = scalar_lea.vmem %s7211_s21, %s4598_s30  ;;  %s6512_s21 = scalar_lea.vmem %s7216_s12, %s4603_s2 }
 0x1e2 PF: > { %v5172_v2 = vld [vmem:[%s1335_s19] sm:$0xff]   ;;  %v5800_v3 = vmov 0.0   ;;  %v5173_v4 = vld [vmem:[%s1335_s19 + $0x8] sm:$0xff]   ;;  %vm5801_vm1 = vmmov 0   ;;  %vm1416_vm2 = vcmask 261120   ;;  %s7217_s8 = scalar_lea.vmem [#allocation14], %s6443_s0 }
 0x1e3   : > { %4699 = vmatprep.subr.bf16.mxu1 %v5800_v3  ;;  %4715 = vmatprep.subr.bf16.mxu0 %v5800_v3  ;;  %v6526_v5 = vld [vmem:[#allocation2] sm:$0xff]  ;;  %v6528_v6 = vld [vmem:[#allocation2 + $0x8] sm:$0xff]  ;;  %s5802_s29 = smov 96   ;;  %vm1541_vm3 = vcmask 64512   ;;  %vm1664_vm4 = vcmask 1043456   ;;  %s5803_s25 = smov 88  }
 0x1e4   : > { %4700 = vmatpush3.bf16.msra.mxu1 %v5172_v2  ;;  %4703 = vmatprep.mubr.msk.bf16.mxu1 %vm5801_vm1, %v5800_v3  ;;  %v6530_v7 = vld [vmem:[#allocation6] sm:$0xff]  ;;  %v6533_v8 = vld [vmem:[#allocation6 + $0x8] sm:$0xff]  ;;  %v1466_v14 = vpack.c.bf16 %v6528_v6, %v6526_v5  ;;  %s5804_s17 = smov 120   ;;  %s5805_s19 = smov 80   ;;  %vm2442_vm5 = vcmask 130048   ;;  %vm2445_vm6 = vcmask 195584  }
 0x1e5   : > { %4701 = vmatprep.subr.bf16.mxu1 %v5800_v3  ;;  %v1390_v9 = vadd.f32 %v6530_v7, %v6526_v5  ;;  %4717 = vmatprep.mubr.msk.bf16.mxu0 %vm5801_vm1, %v5800_v3  ;;  %v1391_v10 = vadd.f32 %v6533_v8, %v6528_v6  ;;  %v5174_v12 = vld [vmem:[%s6475_s1] sm:$0xff]   ;;  %v5175_v13 = vld [vmem:[%s6475_s1 + $0x8] sm:$0xff]   ;;  %s5806_s1 = smov 112   ;;  %s5807_s27 = smov 72   ;;  %vm3924_vm7 = vcmask 523264  }
 0x1e6   : > { %v4512_v15 = vld [vmem:[%s7217_s8] ss:$0 sm:$0xff]  ;;  %s5808_s2 = smov 104   ;;  %s5809_s18 = smov 8  }
 0x1e7   : > { %v1397_v11 = vpack.c.bf16 %v1391_v10, %v1390_v9  ;;  %v4516_v28 = vld [vmem:[%s1124_s26] ss:$0 sm:$0xff]  ;;  %s5810_s23 = smov 16   ;;  %s5811_s6 = smov 24  }
 0x1e8   : > { %4702 = vmatpush3.bf16.msra.mxu1 %v5173_v4 }
 0x1e9   : > { %4707 = vmatprep.subr.bf16.mxu1 %v5800_v3 }
 0x1eb   : > { %4704 = vmatmul.mubr.msk.bf16.vlgmr.msra.gmra.mrb[0].mxu1 %vm1416_vm2, %v1397_v11 }
 0x1ec   : > { %4711 = vmatprep.mubr.msk.bf16.mxu1 %vm5801_vm1, %v5800_v3  ;;  %4708 = vmatpush3.bf16.msra.mxu1 %v5174_v12 }
 0x1ed   : > { %4709 = vmatprep.subr.bf16.mxu1 %v5800_v3 }
 0x1f0   : > { %4710 = vmatpush3.bf16.msra.mxu1 %v5175_v13 }
 0x1f1   : > { %4721 = vmatprep.subr.bf16.mxu1 %v5800_v3 }
 0x1f3   : > { %4712 = vmatmul.mubr.msk.bf16.vlgmr.msra.gmra.mrb[4].mxu1 %vm1416_vm2, %v1466_v14 }
 0x1f4   : > { %4723 = vmatprep.mubr.msk.bf16.mxu1 %vm5801_vm1, %v5800_v3 }
 0x2be   : > { %v1454_v16 = vpop.f32.mrb[0].mxu1 }
 0x2bf   : > { %v1455_v17 = vadd.f32 %v4512_v15, %v1454_v16  ;;  %v4705_v18 = vpop.f32.mrb[1].mxu1 }
 0x2c0   : > { %v1457_v19 = vpop.f32.mrb[2].mxu1 }
 0x2c1   : > { %v6556_v20 = vpack.c.bf16 %v1455_v17, %v1455_v17  ;;  %v1458_v21 = vadd.f32 %v4512_v15, %v1457_v19  ;;  %v4706_v22 = vpop.f32.mrb[3].mxu1 }
 0x2c3   : > { %1539 = vrot.lane.b32.xlu0 %v6556_v20, %s5802_s29  ;;  %v6559_v23 = vpack.c.bf16 %v1458_v21, %v1458_v21 }
 0x2c6   : > { %v1522_v29 = vpop.f32.mrb[4].mxu1 }
 0x2c7   : > { %1589 = vrot.lane.b32.xlu0 %v6559_v23, %s5802_s29  ;;  %v1523_v30 = vadd.f32 %v4516_v28, %v1522_v29  ;;  %v4713_v31 = vpop.f32.mrb[5].mxu1 }
 0x2c8   : > { %v1525_v32 = vpop.f32.mrb[6].mxu1 }
 0x2c9   : > { %v1526_v33 = vadd.f32 %v4516_v28, %v1525_v32  ;;  %v4714_v34 = vpop.f32.mrb[7].mxu1  ;;  %v6576_v35 = vpack.c.bf16 %v1523_v30, %v1523_v30 }
 0x2cb   : > { %v6578_v36 = vpack.c.bf16 %v1526_v33, %v1526_v33  ;;  %v1666_v37 = vsel %vm1664_vm4, %v6576_v35, 0 }
 0x2cd   : > { %v1712_v38 = vsel %vm1664_vm4, %v6578_v36, 0 }
 0x335   : > { %v1540_v24 = vpop.permute.xlu0 %1539 }
 0x336   : > { %v1546_v25 = vsel %vm1541_vm3, %v1540_v24, 0 }
 0x337   : > { %4716 = vmatpush3.bf16.xpose.msra.mxu0 %v1546_v25 }
 0x338   : > { %4727 = vmatprep.subr.bf16.mxu0 %v5800_v3 }
 0x339   : > { %v1590_v26 = vpop.permute.xlu0 %1589 }
 0x33a   : > { %v1595_v27 = vsel %vm1541_vm3, %v1590_v26, 0 }
 0x33b   : > { %4722 = vmatpush3.bf16.xpose.msra.mxu1 %v1595_v27 }
 0x33c   : > { %4733 = vmatprep.subr.bf16.mxu1 %v5800_v3 }
 0x33e   : > { %4718 = vmatmul.mubr.msk.bf16.vlgmr.msra.gmra.mrb[0].mxu0 %vm1541_vm3, %v6556_v20 }
 0x33f   : > { %4729 = vmatprep.mubr.msk.bf16.mxu0 %vm5801_vm1, %v5800_v3  ;;  %4728 = vmatpush3.bf16.msra.mxu0 %v1666_v37 }
 0x340   : > { %4739 = vmatprep.subr.bf16.mxu0 %v5800_v3 }
 0x342   : > { %4724 = vmatmul.mubr.msk.bf16.vlgmr.msra.gmra.mrb[8].mxu1 %vm1541_vm3, %v6559_v23 }
 0x343   : > { %4735 = vmatprep.mubr.msk.bf16.mxu1 %vm5801_vm1, %v5800_v3  ;;  %4734 = vmatpush3.bf16.msra.mxu1 %v1712_v38 }
 0x344   : > { %4745 = vmatprep.subr.bf16.mxu1 %v5800_v3 }
 0x411   : > { %v1582_v39 = vpop.f32.mrb[0].mxu0 }
 0x412   : > { %v4719_v40 = vpop.f32.mrb[1].mxu0  ;;  %v1637_v41 = vsel %vm1541_vm3, %v1582_v39, -inf }
 0x413   : > { %1638 = vmax.xlane.f32.xlu1 %v1637_v41  ;;  %v1585_v42 = vpop.f32.mrb[2].mxu0 }
 0x414   : > { %v4720_v43 = vpop.f32.mrb[3].mxu0 }
 0x415   : > { %v1631_v44 = vpop.f32.mrb[8].mxu1 }
 0x416   : > { %v4725_v45 = vpop.f32.mrb[9].mxu1  ;;  %v1640_v46 = vsel %vm1541_vm3, %v1631_v44, -inf }
 0x417   : > { %1641 = vmax.xlane.f32.xlu1 %v1640_v46  ;;  %v1634_v47 = vpop.f32.mrb[10].mxu1 }
 0x418   : > { %v4726_v48 = vpop.f32.mrb[11].mxu1 }
 0x428   : > { %1756 = vrot.lane.b32.xlu1 %v6556_v20, %s5803_s25 }
 0x42c   : > { %1806 = vrot.lane.b32.xlu1 %v6559_v23, %s5803_s25 }
 0x4a0   : > { %v1639_v49 = vpop.xlane.xlu1 %1638 }
 0x4a1   : > { %v1643_v50 = vsub.f32 %v1582_v39, %v1639_v49 }
 0x4a3   : > { %v1645_v51 = vmul.f32 1.442695, %v1643_v50 }
 0x4a4   : > { %v1642_v52 = vpop.xlane.xlu1 %1641 }
 0x4a5   : > { %5196 = vpow2.f32 %v1645_v51  ;;  %v1644_v53 = vsub.f32 %v1631_v44, %v1642_v52 }
 0x4a7   : > { %v1647_v54 = vmul.f32 1.442695, %v1644_v53 }
 0x4a8   : > { %v1757_v59 = vpop.permute.xlu1 %1756 }
 0x4a9   : > { %5198 = vpow2.f32 %v1647_v54  ;;  %v1762_v4 = vsel %vm1541_vm3, %v1757_v59, 0 }
 0x4ac   : > { %v1807_v60 = vpop.permute.xlu1 %1806 }
 0x4ad   : > { %v1812_v11 = vsel %vm1541_vm3, %v1807_v60, 0 }
 0x4af   : > { %v5197_v55 = vpop.eup %5196 }
 0x4b0   : > { %v1649_v56 = vsel %vm1541_vm3, %v5197_v55, 0.0 }
 0x4b1   : > { %1650 = vadd.xlane.f32.xlu0 %v1649_v56 }
 0x4b3   : > { %v5199_v57 = vpop.eup %5198 }
 0x4b4   : > { %v1652_v58 = vsel %vm1541_vm3, %v5199_v57, 0.0 }
 0x4b5   : > { %1653 = vadd.xlane.f32.xlu1 %v1652_v58 }
 0x4c6   : > { %1754 = vrot.lane.b32.xlu1 %v6556_v20, %s5804_s17 }
 0x4ca   : > { %1804 = vrot.lane.b32.xlu1 %v6559_v23, %s5804_s17 }
 0x53e   : > { %v1651_v61 = vpop.xlane.xlu0 %1650 }
 0x53f   : > { %5200 = vrcp.f32 %v1651_v61 }
 0x542   : > { %v1654_v62 = vpop.xlane.xlu1 %1653 }
 0x543   : > { %5202 = vrcp.f32 %v1654_v62 }
 0x546   : > { %v1755_v12 = vpop.permute.xlu1 %1754 }
 0x549   : > { %v5201_v63 = vpop.eup %5200 }
 0x54a   : > { %v1657_v0 = vmul.f32 %v5201_v63, %v5197_v55  ;;  %v1805_v13 = vpop.permute.xlu1 %1804 }
 0x54c   : > { %v1659_v1 = vpack.c.bf16 %v1657_v0, %v1657_v0 }
 0x54d   : > { %v5203_v2 = vpop.eup %5202 }
 0x54e   : > { %v1658_v9 = vmul.f32 %v5203_v2, %v5199_v57  ;;  %4730 = vmatmul.mubr.msk.bf16.vlgmr.msra.gmra.mrb[4].mxu0 %vm1541_vm3, %v1659_v1 }
 0x54f   : > { %4740 = vmatpush3.bf16.xpose.msra.mxu0 %v1762_v4  ;;  %4741 = vmatprep.mubr.msk.bf16.mxu0 %vm5801_vm1, %v5800_v3 }
 0x550   : > { %v1660_v10 = vpack.c.bf16 %v1658_v9, %v1658_v9  ;;  %4751 = vmatprep.subr.bf16.mxu0 %v5800_v3 }
 0x552   : > { %4736 = vmatmul.mubr.msk.bf16.vlgmr.msra.gmra.mrb[12].mxu1 %vm1541_vm3, %v1660_v10 }
 0x553   : > { %4746 = vmatpush3.bf16.xpose.msra.mxu1 %v1812_v11  ;;  %4747 = vmatprep.mubr.msk.bf16.mxu1 %vm5801_vm1, %v5800_v3 }
 0x554   : > { %4757 = vmatprep.subr.bf16.mxu1 %v5800_v3 }
 0x556   : > { %4742 = vmatmul.mubr.msk.bf16.vlgmr.msra.gmra.mrb[8].mxu0 %vm1541_vm3, %v1755_v12 }
 0x557   : > { %4753 = vmatprep.mubr.msk.bf16.mxu0 %vm5801_vm1, %v5800_v3 }
 0x55a   : > { %4748 = vmatmul.mubr.msk.bf16.vlgmr.msra.gmra.mrb[16].mxu1 %vm1541_vm3, %v1805_v13 }
 0x55b   : > { %4759 = vmatprep.mubr.msk.bf16.mxu1 %vm5801_vm1, %v5800_v3 }
 0x621   : > { %v6612_v14 = vpop.f32.mrb[4].mxu0 }
 0x622   : > { %v4731_v15 = vpop.f32.mrb[5].mxu0 }
 0x623   : > { %v1705_v16 = vpop.f32.mrb[6].mxu0 }
 0x624   : > { %v4732_v17 = vpop.f32.mrb[7].mxu0 }
 0x625   : > { %v6614_v18 = vpop.f32.mrb[12].mxu1 }
 0x626   : > { %v4737_v19 = vpop.f32.mrb[13].mxu1 }
 0x627   : > { %v1751_v21 = vpop.f32.mrb[14].mxu1 }
 0x628   : > { %v4738_v22 = vpop.f32.mrb[15].mxu1 }
 0x629   : > { %v1798_v24 = vpop.f32.mrb[8].mxu0 }
 0x62a   : > { %v4743_v25 = vpop.f32.mrb[9].mxu0  ;;  %v1854_v26 = vsel %vm1541_vm3, %v1798_v24, -inf }
 0x62b   : > { %1855 = vmax.xlane.f32.xlu0 %v1854_v26  ;;  %v1801_v27 = vpop.f32.mrb[10].mxu0 }
 0x62c   : > { %v4744_v28 = vpop.f32.mrb[11].mxu0 }
 0x62d   : > { %v1848_v29 = vpop.f32.mrb[16].mxu1 }
 0x62e   : > { %v4749_v30 = vpop.f32.mrb[17].mxu1  ;;  %v1857_v31 = vsel %vm1541_vm3, %v1848_v29, -inf }
 0x62f   : > { %1858 = vmax.xlane.f32.xlu1 %v1857_v31  ;;  %v1851_v32 = vpop.f32.mrb[18].mxu1 }
 0x630   : > { %v4750_v33 = vpop.f32.mrb[19].mxu1 }
 0x640   : > { %2028 = vrot.lane.b32.xlu1 %v6559_v23, %s5805_s19 }
 0x641   : > { %1879 = vrot.lane.b32.xlu0 %v6576_v35, %s5804_s17 }
 0x645   : > { %1928 = vrot.lane.b32.xlu0 %v6578_v36, %s5804_s17 }
 0x6b8   : > { %v1856_v34 = vpop.xlane.xlu0 %1855 }
 0x6b9   : > { %v1860_v37 = vsub.f32 %v1798_v24, %v1856_v34 }
 0x6bb   : > { %v1862_v38 = vmul.f32 1.442695, %v1860_v37 }
 0x6bc   : > { %v1880_v39 = vpop.permute.xlu0 %1879  ;;  %v1859_v40 = vpop.xlane.xlu1 %1858 }
 0x6bd   : > { %5204 = vpow2.f32 %v1862_v38  ;;  %v1885_v41 = vsel %vm1664_vm4, %v1880_v39, 0  ;;  %v1861_v42 = vsub.f32 %v1848_v29, %v1859_v40 }
 0x6be   : > { %4752 = vmatpush3.bf16.msra.mxu0 %v1885_v41 }
 0x6bf   : > { %v1864_v43 = vmul.f32 1.442695, %v1861_v42  ;;  %4763 = vmatprep.subr.bf16.mxu0 %v5800_v3 }
 0x6c0   : > { %v1929_v44 = vpop.permute.xlu0 %1928  ;;  %v2029_v59 = vpop.permute.xlu1 %2028 }
 0x6c1   : > { %5206 = vpow2.f32 %v1864_v43  ;;  %v1934_v45 = vsel %vm1664_vm4, %v1929_v44, 0  ;;  %v2034_v61 = vsel %vm1541_vm3, %v2029_v59, 0 }
 0x6c2   : > { %4758 = vmatpush3.bf16.msra.mxu1 %v1934_v45 }
 0x6c3   : > { %4769 = vmatprep.subr.bf16.mxu1 %v5800_v3 }
 0x6c7   : > { %v5205_v46 = vpop.eup %5204 }
 0x6c8   : > { %v1866_v47 = vsel %vm1541_vm3, %v5205_v46, 0.0 }
 0x6c9   : > { %1867 = vadd.xlane.f32.xlu0 %v1866_v47 }
 0x6cb   : > { %v5207_v48 = vpop.eup %5206 }
 0x6cc   : > { %v1869_v49 = vsel %vm1541_vm3, %v5207_v48, 0.0 }
 0x6cd   : > { %1870 = vadd.xlane.f32.xlu0 %v1869_v49 }
 0x6e3   : > { %1978 = vrot.lane.b32.xlu0 %v6556_v20, %s5805_s19 }
 0x6e7   : > { %1976 = vrot.lane.b32.xlu0 %v6556_v20, %s5806_s1 }
 0x6eb   : > { %2026 = vrot.lane.b32.xlu0 %v6559_v23, %s5806_s1 }
 0x756   : > { %v1868_v50 = vpop.xlane.xlu0 %1867 }
 0x757   : > { %5208 = vrcp.f32 %v1868_v50 }
 0x75a   : > { %v1871_v51 = vpop.xlane.xlu0 %1870 }
 0x75b   : > { %5210 = vrcp.f32 %v1871_v51 }
 0x75e   : > { %v1979_v54 = vpop.permute.xlu0 %1978 }
 0x75f   : > { %v1984_v58 = vsel %vm1541_vm3, %v1979_v54, 0 }
 0x761   : > { %v5209_v52 = vpop.eup %5208 }
 0x762   : > { %v1874_v53 = vmul.f32 %v5209_v52, %v5205_v46  ;;  %v1977_v62 = vpop.permute.xlu0 %1976 }
 0x764   : > { %v1876_v55 = vpack.c.bf16 %v1874_v53, %v1874_v53 }
 0x765   : > { %v5211_v56 = vpop.eup %5210 }
 0x766   : > { %v1875_v57 = vmul.f32 %v5211_v56, %v5207_v48  ;;  %4754 = vmatmul.mubr.msk.bf16.vlgmr.msra.gmra.mrb[12].mxu0 %vm1541_vm3, %v1876_v55  ;;  %v2027_v63 = vpop.permute.xlu0 %2026 }
 0x767   : > { %4764 = vmatpush3.bf16.xpose.msra.mxu0 %v1984_v58  ;;  %4765 = vmatprep.mubr.msk.bf16.mxu0 %vm5801_vm1, %v5800_v3 }
 0x768   : > { %v1877_v60 = vpack.c.bf16 %v1875_v57, %v1875_v57  ;;  %4775 = vmatprep.subr.bf16.mxu0 %v5800_v3 }
 0x76a   : > { %4760 = vmatmul.mubr.msk.bf16.vlgmr.msra.gmra.mrb[20].mxu1 %vm1541_vm3, %v1877_v60 }
 0x76b   : > { %4770 = vmatpush3.bf16.xpose.msra.mxu1 %v2034_v61  ;;  %4771 = vmatprep.mubr.msk.bf16.mxu1 %vm5801_vm1, %v5800_v3 }
 0x76c   : > { %4781 = vmatprep.subr.bf16.mxu1 %v5800_v3 }
 0x76e   : > { %4766 = vmatmul.mubr.msk.bf16.vlgmr.msra.gmra.mrb[16].mxu0 %vm1541_vm3, %v1977_v62 }
 0x76f   : > { %4777 = vmatprep.mubr.msk.bf16.mxu0 %vm5801_vm1, %v5800_v3 }
 0x772   : > { %4772 = vmatmul.mubr.msk.bf16.vlgmr.msra.gmra.mrb[24].mxu1 %vm1541_vm3, %v2027_v63 }
 0x773   : > { %4783 = vmatprep.mubr.msk.bf16.mxu1 %vm5801_vm1, %v5800_v3 }
 0x839   : > { %v6650_v0 = vpop.f32.mrb[12].mxu0 }
 0x83a   : > { %v4755_v1 = vpop.f32.mrb[13].mxu0 }
 0x83b   : > { %v1924_v2 = vpop.f32.mrb[14].mxu0 }
 0x83c   : > { %v4756_v4 = vpop.f32.mrb[15].mxu0 }
 0x83d   : > { %v6652_v9 = vpop.f32.mrb[20].mxu1 }
 0x83e   : > { %v5142_v10 = vpack.i.bf16 %v6652_v9, %v6650_v0  ;;  %v4761_v11 = vpop.f32.mrb[21].mxu1 }
 0x83f   : > { %v1973_v12 = vpop.f32.mrb[22].mxu1 }
 0x840   : > { %v4762_v13 = vpop.f32.mrb[23].mxu1 }
 0x841   : > { %v2020_v15 = vpop.f32.mrb[16].mxu0 }
 0x842   : > { %v4767_v16 = vpop.f32.mrb[17].mxu0  ;;  %v2076_v17 = vsel %vm1541_vm3, %v2020_v15, -inf }
 0x843   : > { %2077 = vmax.xlane.f32.xlu0 %v2076_v17  ;;  %v2023_v19 = vpop.f32.mrb[18].mxu0 }
 0x844   : > { %v4768_v21 = vpop.f32.mrb[19].mxu0 }
 0x845   : > { %v2070_v22 = vpop.f32.mrb[24].mxu1 }
 0x846   : > { %v4773_v24 = vpop.f32.mrb[25].mxu1  ;;  %v2079_v25 = vsel %vm1541_vm3, %v2070_v22, -inf }
 0x847   : > { %2080 = vmax.xlane.f32.xlu1 %v2079_v25  ;;  %v2073_v26 = vpop.f32.mrb[26].mxu1 }
 0x848   : > { %v4774_v27 = vpop.f32.mrb[27].mxu1 }
 0x858   : > { %2148 = vrot.lane.b32.xlu1 %v6578_v36, %s5806_s1 }
 0x859   : > { %2100 = vrot.lane.b32.xlu0 %v6576_v35, %s5806_s1 }
 0x85c   : > { %2198 = vrot.lane.b32.xlu1 %v6556_v20, %s5807_s27 }
 0x860   : > { %2196 = vrot.lane.b32.xlu1 %v6556_v20, %s5808_s2 }
 0x8d0   : > { %v2078_v28 = vpop.xlane.xlu0 %2077 }
 0x8d1   : > { %v2082_v29 = vsub.f32 %v2020_v15, %v2078_v28 }
 0x8d3   : > { %v2084_v30 = vmul.f32 1.442695, %v2082_v29 }
 0x8d4   : > { %v2101_v31 = vpop.permute.xlu0 %2100  ;;  %v2081_v32 = vpop.xlane.xlu1 %2080 }
 0x8d5   : > { %5212 = vpow2.f32 %v2084_v30  ;;  %v2106_v33 = vsel %vm1664_vm4, %v2101_v31, 0  ;;  %v2083_v34 = vsub.f32 %v2070_v22, %v2081_v32 }
 0x8d6   : > { %4776 = vmatpush3.bf16.msra.mxu0 %v2106_v33 }
 0x8d7   : > { %v2086_v37 = vmul.f32 1.442695, %v2083_v34  ;;  %4787 = vmatprep.subr.bf16.mxu0 %v5800_v3 }
 0x8d8   : > { %v2149_v38 = vpop.permute.xlu1 %2148 }
 0x8d9   : > { %5214 = vpow2.f32 %v2086_v37  ;;  %v2154_v39 = vsel %vm1664_vm4, %v2149_v38, 0 }
 0x8da   : > { %4782 = vmatpush3.bf16.msra.mxu1 %v2154_v39 }
 0x8db   : > { %4793 = vmatprep.subr.bf16.mxu1 %v5800_v3 }
 0x8dc   : > { %v2199_v47 = vpop.permute.xlu1 %2198 }
 0x8dd   : > { %v2204_v50 = vsel %vm1541_vm3, %v2199_v47, 0 }
 0x8df   : > { %v5213_v20 = vpop.eup %5212 }
 0x8e0   : > { %v2088_v40 = vsel %vm1541_vm3, %v5213_v20, 0.0  ;;  %v2197_v54 = vpop.permute.xlu1 %2196 }
 0x8e1   : > { %2089 = vadd.xlane.f32.xlu0 %v2088_v40 }
 0x8e3   : > { %v5215_v41 = vpop.eup %5214 }
 0x8e4   : > { %v2091_v42 = vsel %vm1541_vm3, %v5215_v41, 0.0 }
 0x8e5   : > { %2092 = vadd.xlane.f32.xlu0 %v2091_v42  ;;  %v5177_v42 = vld [vmem:[%s6480_s5 + $0x8] sm:$0xff]  }
 0x8fb   : > { %2248 = vrot.lane.b32.xlu0 %v6559_v23, %s5807_s27 }
 0x8ff   : > { %2246 = vrot.lane.b32.xlu0 %v6559_v23, %s5808_s2 }
 0x96e   : > { %v2090_v43 = vpop.xlane.xlu0 %2089 }
 0x96f   : > { %5216 = vrcp.f32 %v2090_v43 }
 0x972   : > { %v2093_v44 = vpop.xlane.xlu0 %2092 }
 0x973   : > { %5218 = vrcp.f32 %v2093_v44 }
 0x976   : > { %v2249_v52 = vpop.permute.xlu0 %2248 }
 0x977   : > { %v2254_v53 = vsel %vm1541_vm3, %v2249_v52, 0 }
 0x979   : > { %v5217_v45 = vpop.eup %5216 }
 0x97a   : > { %v2096_v46 = vmul.f32 %v5217_v45, %v5213_v20  ;;  %v2247_v55 = vpop.permute.xlu0 %2246 }
 0x97c   : > { %v2098_v48 = vpack.c.bf16 %v2096_v46, %v2096_v46 }
 0x97d   : > { %v5219_v49 = vpop.eup %5218 }
 0x97e   : > { %v2097_v51 = vmul.f32 %v5219_v49, %v5215_v41  ;;  %4778 = vmatmul.mubr.msk.bf16.vlgmr.msra.gmra.mrb[20].mxu0 %vm1541_vm3, %v2098_v48  ;;  %v5176_v41 = vld [vmem:[%s6480_s5] sm:$0xff]  }
 0x97f   : > { %4788 = vmatpush3.bf16.xpose.msra.mxu0 %v2204_v50  ;;  %4789 = vmatprep.mubr.msk.bf16.mxu0 %vm5801_vm1, %v5800_v3 }
 0x980   : > { %v2099_v23 = vpack.c.bf16 %v2097_v51, %v2097_v51  ;;  %4799 = vmatprep.subr.bf16.mxu0 %v5800_v3 }
 0x982   : > { %4784 = vmatmul.mubr.msk.bf16.vlgmr.msra.gmra.mrb[28].mxu1 %vm1541_vm3, %v2099_v23 }
 0x983   : > { %4794 = vmatpush3.bf16.xpose.msra.mxu1 %v2254_v53  ;;  %4795 = vmatprep.mubr.msk.bf16.mxu1 %vm5801_vm1, %v5800_v3 }
 0x984   : > { %4805 = vmatprep.subr.bf16.mxu1 %v5800_v3 }
 0x986   : > { %4790 = vmatmul.mubr.msk.bf16.vlgmr.msra.gmra.mrb[24].mxu0 %vm1541_vm3, %v2197_v54 }
 0x987   : > { %4801 = vmatprep.mubr.msk.bf16.mxu0 %vm5801_vm1, %v5800_v3 }
 0x98a   : > { %4796 = vmatmul.mubr.msk.bf16.vlgmr.msra.gmra.mrb[32].mxu1 %vm1541_vm3, %v2247_v55 }
 0x98b   : > { %4807 = vmatprep.mubr.msk.bf16.mxu1 %vm5801_vm1, %v5800_v3 }
 0xa51   : > { %v2142_v56 = vpop.f32.mrb[20].mxu0 }
 0xa52   : > { %v4779_v57 = vpop.f32.mrb[21].mxu0 }
 0xa53   : > { %v2145_v58 = vpop.f32.mrb[22].mxu0 }
 0xa54   : > { %v4780_v59 = vpop.f32.mrb[23].mxu0 }
 0xa55   : > { %v2190_v60 = vpop.f32.mrb[28].mxu1 }
 0xa56   : > { %v5147_v61 = vpack.i.bf16 %v2190_v60, %v2142_v56  ;;  %v4785_v62 = vpop.f32.mrb[29].mxu1 }
 0xa57   : > { %v2193_v63 = vpop.f32.mrb[30].mxu1 }
 0xa58   : > { %v4786_v1 = vpop.f32.mrb[31].mxu1 }
 0xa59   : > { %v2240_v2 = vpop.f32.mrb[24].mxu0 }
 0xa5a   : > { %v4791_v4 = vpop.f32.mrb[25].mxu0  ;;  %v2296_v11 = vsel %vm1541_vm3, %v2240_v2, -inf }
 0xa5b   : > { %2297 = vmax.xlane.f32.xlu1 %v2296_v11  ;;  %v2243_v12 = vpop.f32.mrb[26].mxu0 }
 0xa5c   : > { %v4792_v13 = vpop.f32.mrb[27].mxu0 }
 0xa5d   : > { %v2290_v15 = vpop.f32.mrb[32].mxu1 }
 0xa5e   : > { %v4797_v16 = vpop.f32.mrb[33].mxu1  ;;  %v2299_v17 = vsel %vm1541_vm3, %v2290_v15, -inf }
 0xa5f   : > { %2300 = vmax.xlane.f32.xlu0 %v2299_v17  ;;  %v2293_v19 = vpop.f32.mrb[34].mxu1 }
 0xa60   : > { %v4798_v21 = vpop.f32.mrb[35].mxu1 }
 0xae8   : > { %v2298_v22 = vpop.xlane.xlu1 %2297 }
 0xae9   : > { %v2302_v24 = vsub.f32 %v2240_v2, %v2298_v22 }
 0xaeb   : > { %v2304_v25 = vmul.f32 1.442695, %v2302_v24 }
 0xaec   : > { %v2301_v26 = vpop.xlane.xlu0 %2300 }
 0xaed   : > { %5220 = vpow2.f32 %v2304_v25  ;;  %v2303_v27 = vsub.f32 %v2290_v15, %v2301_v26 }
 0xaef   : > { %v2306_v28 = vmul.f32 1.442695, %v2303_v27 }
 0xaf1   : > { %5222 = vpow2.f32 %v2306_v28  ;;  %v5180_v28 = vld [vmem:[#allocation8] sm:$0xff]  }
 0xaf7   : > { %v5221_v29 = vpop.eup %5220 }
 0xaf8   : > { %v2308_v30 = vsel %vm1541_vm3, %v5221_v29, 0.0 }
 0xaf9   : > { %2309 = vadd.xlane.f32.xlu0 %v2308_v30  ;;  %v5182_v30 = vld [vmem:[%s6485_s11] sm:$0xff]  }
 0xafb   : > { %v5223_v31 = vpop.eup %5222 }
 0xafc   : > { %v2311_v32 = vsel %vm1541_vm3, %v5223_v31, 0.0 }
 0xafd   : > { %2312 = vadd.xlane.f32.xlu1 %v2311_v32  ;;  %v5184_v32 = vld [vmem:[%s6490_s15] sm:$0xff]  }
 0xb0e   : > { %2368 = vrot.lane.b32.xlu1 %v6578_v36, %s5808_s2 }
 0xb0f   : > { %2320 = vrot.lane.b32.xlu0 %v6576_v35, %s5808_s2 }
 0xb12   : > { %5143 = vrot.lane.b32.xlu1 %v5142_v10, %s5809_s18 }
 0xb13   : > { %5148 = vrot.lane.b32.xlu0 %v5147_v61, %s5810_s23 }
 0xb86   : > { %v2310_v33 = vpop.xlane.xlu0 %2309 }
 0xb87   : > { %5224 = vrcp.f32 %v2310_v33 }
 0xb8a   : > { %v2313_v34 = vpop.xlane.xlu1 %2312  ;;  %v2321_v37 = vpop.permute.xlu0 %2320 }
 0xb8b   : > { %5226 = vrcp.f32 %v2313_v34  ;;  %v2326_v38 = vsel %vm1664_vm4, %v2321_v37, 0 }
 0xb8c   : > { %4800 = vmatpush3.bf16.msra.mxu0 %v2326_v38 }
 0xb8d   : > { %4811 = vmatprep.subr.bf16.mxu0 %v5800_v3 }
 0xb8e   : > { %v2369_v35 = vpop.permute.xlu1 %2368  ;;  %v5149_v54 = vpop.permute.xlu0 %5148 }
 0xb8f   : > { %v2374_v36 = vsel %vm1664_vm4, %v2369_v35, 0  ;;  %v5151_v57 = vunpack.i.h.bf16 %v5149_v54  ;;  %v5150_v58 = vunpack.i.l.bf16 %v5149_v54 }
 0xb90   : > { %4806 = vmatpush3.bf16.msra.mxu1 %v2374_v36 }
 0xb91   : > { %v5225_v0 = vpop.eup %5224  ;;  %4819 = vmatprep.subr.bf16.mxu1 %v5800_v3 }
 0xb92   : > { %v2316_v9 = vmul.f32 %v5225_v0, %v5221_v29  ;;  %v5144_v52 = vpop.permute.xlu1 %5143  ;;  %v5181_v29 = vld [vmem:[#allocation8 + $0x8] sm:$0xff]  }
 0xb93   : > { %v5146_v23 = vunpack.i.h.bf16 %v5144_v52  ;;  %v5145_v53 = vunpack.i.l.bf16 %v5144_v52 }
 0xb94   : > { %v2318_v10 = vpack.c.bf16 %v2316_v9, %v2316_v9 }
 0xb95   : > { %v5227_v39 = vpop.eup %5226  ;;  %v2441_v55 = vsel %vm1541_vm3, %v6614_v18, %v5146_v23  ;;  %v2440_v56 = vsel %vm1541_vm3, %v6612_v14, %v5145_v53  ;;  %v4536_v14 = vld [vmem:[%s1132_s10] ss:$0 sm:$0xff] }
 0xb96   : > { %v2317_v20 = vmul.f32 %v5227_v39, %v5223_v31  ;;  %4802 = vmatmul.mubr.msk.bf16.vlgmr.msra.gmra.mrb[28].mxu0 %vm1541_vm3, %v2318_v10  ;;  %v2443_v62 = vsel %vm2442_vm5, %v2440_v56, %v5150_v58  ;;  %v2444_v63 = vsel %vm2442_vm5, %v2441_v55, %v5151_v57  ;;  %v5183_v31 = vld [vmem:[%s6485_s11 + $0x8] sm:$0xff]   ;;  %v2544_v10 = vlaneseq }
 0xb97   : > { %4815 = vmatprep.mubr.msk.bf16.mxu0 %vm5801_vm1, %v5800_v3  ;;  %4812 = vmatpush3.bf16.msra.mxu0 %v5176_v41 }
 0xb98   : > { %v2319_v40 = vpack.c.bf16 %v2317_v20, %v2317_v20  ;;  %4813 = vmatprep.subr.bf16.mxu0 %v5800_v3 }
 0xb9a   : > { %4808 = vmatmul.mubr.msk.bf16.vlgmr.msra.gmra.mrb[36].mxu1 %vm1541_vm3, %v2319_v40 }
 0xb9b   : > { %4823 = vmatprep.mubr.msk.bf16.mxu1 %vm5801_vm1, %v5800_v3  ;;  %4814 = vmatpush3.bf16.msra.mxu0 %v5177_v42 }
 0xb9c   : > { %4820 = vmatpush3.bf16.msra.mxu1 %v5182_v30 }
 0xb9d   : > { %4821 = vmatprep.subr.bf16.mxu1 %v5800_v3 }
 0xba0   : > { %4822 = vmatpush3.bf16.msra.mxu1 %v5183_v31 }
 0xba1   : > { %4835 = vmatprep.subr.bf16.mxu1 %v5184_v32 }
 0xc69   : > { %v2362_v43 = vpop.f32.mrb[28].mxu0 }
 0xc6a   : > { %v4803_v44 = vpop.f32.mrb[29].mxu0 }
 0xc6b   : > { %v2365_v45 = vpop.f32.mrb[30].mxu0 }
 0xc6c   : > { %v4804_v46 = vpop.f32.mrb[31].mxu0 }
 0xc6d   : > { %v2410_v47 = vpop.f32.mrb[36].mxu1  ;;  %v6751_v46 = vld [vmem:[%s6462_s16] sm:$0x7]  ;;  %s7219_s16 = sld [smem:[#allocation57_spill]] }
 0xc6e   : > { %v5152_v48 = vpack.i.bf16 %v2410_v47, %v2362_v43  ;;  %v4809_v49 = vpop.f32.mrb[37].mxu1  ;;  %v6747_v43 = vshrl.u32 %v2544_v10, 7 }
 0xc6f   : > { %v2413_v50 = vpop.f32.mrb[38].mxu1 }
 0xc70   : > { %5153 = vrot.lane.b32.xlu1 %v5152_v48, %s5811_s6  ;;  %v4810_v51 = vpop.f32.mrb[39].mxu1  ;;  %v2546_v45 = vsub.s32 0, %v6747_v43 }
 0xc72   : > { %v2547_v48 = vrot.slane %v6751_v46, %v2546_v45 }
 0xc73   : > { %s7220_s11 = scalar_lea.vmem %s7219_s16, %s6455_s13 }
 0xce2   : > { %v5154_v59 = vpop.permute.xlu1 %5153 }
 0xce3   : > { %v5156_v60 = vunpack.i.h.bf16 %v5154_v59  ;;  %v5155_v61 = vunpack.i.l.bf16 %v5154_v59 }
 0xce5   : > { %v2447_v1 = vsel %vm2445_vm6, %v2444_v63, %v5156_v60  ;;  %v2446_v2 = vsel %vm2445_vm6, %v2443_v62, %v5155_v61  ;;  %v5186_v61 = vld [vmem:[#allocation9] sm:$0xff]   ;;  %v5185_v63 = vld [vmem:[%s6490_s15 + $0x8] sm:$0xff]  }
 0xce6   : > { %v2448_v4 = vpack.c.bf16 %v2447_v1, %v2446_v2  ;;  %v5187_v1 = vld [vmem:[#allocation9 + $0x8] sm:$0xff]  }
 0xce8   : > { %4816 = vmatmul.mubr.msk.bf16.vlgmr.msra.gmra.mrb[32].mxu0 %vm1416_vm2, %v2448_v4 }
 0xce9   : > { %4831 = vmatprep.mubr.msk.bf16.mxu0 %vm1416_vm2, %v5180_v28 }
 0xdbb   : > { %v2504_v18 = vpop.f32.mrb[32].mxu0 }
 0xdbc   : > { %v2505_v11 = vadd.f32 %v4536_v14, %v2504_v18  ;;  %v4817_v12 = vpop.f32.mrb[33].mxu0 }
 0xdbd   : > { %v2507_v13 = vpop.f32.mrb[34].mxu0 }
 0xdbe   : > { %v2511_v15 = vadd.f32 %v2505_v11, %v6526_v5  ;;  %v2508_v16 = vadd.f32 %v4536_v14, %v2507_v13  ;;  %v4818_v17 = vpop.f32.mrb[35].mxu0  ;;  %v5178_v5 = vld [vmem:[%s1149_s20] sm:$0xff]  }
 0xdbf   : > { %4827 = vmatprep.subr.bf16.mxu0 %v5178_v5 }
 0xdc0   : > { %v2512_v19 = vadd.f32 %v2508_v16, %v6528_v6  ;;  %v2513_v21 = vsel %vm1416_vm2, %v2511_v15, 0.0  ;;  %v2522_v22 = vmul.f32 %v2511_v15, %v2511_v15  ;;  %4828 = vmatpush3.bf16.msra.mxu0 %v5178_v5  ;;  %v5179_v6 = vld [vmem:[%s1149_s20 + $0x8] sm:$0xff]   ;;  %s7218_s20 = sld [smem:[#allocation37_spill]] }
 0xdc1   : > { %2514 = vadd.xlane.f32.xlu0 %v2513_v21  ;;  %4829 = vmatprep.subr.bf16.mxu0 %v5179_v6  ;;  %v4540_v21 = vld [vmem:[%s1140_s4] ss:$0 sm:$0xff] }
 0xdc2   : > { %v2516_v24 = vsel %vm1416_vm2, %v2512_v19, 0.0  ;;  %v2524_v25 = vsel %vm1416_vm2, %v2522_v22, 0.0  ;;  %v2523_v26 = vmul.f32 %v2512_v19, %v2512_v19 }
 0xdc3   : > { %2517 = vadd.xlane.f32.xlu1 %v2516_v24 }
 0xdc4   : > { %v2527_v27 = vsel %vm1416_vm2, %v2523_v26, 0.0  ;;  %4830 = vmatpush3.bf16.msra.mxu0 %v5179_v6 }
 0xdc5   : > { %2525 = vadd.xlane.f32.xlu0 %v2524_v25  ;;  %4843 = vmatprep.subr.bf16.mxu0 %v5800_v3 }
 0xdc6   : > { %v6755_v50 = vld [vmem:[%s7218_s20] sm:$0x7] }
 0xdc7   : > { %4832 = vmatmul.mubr.msk.bf16.vlgmr.msra.gmra.mrb[36].mxu0 %vm1416_vm2, %v5181_v29  ;;  %v2553_v53 = vrot.slane %v6755_v50, %v2546_v45  ;;  %v4551_v29 = vld [vmem:[%s7220_s11] ss:$0 sm:$0xff] }
 0xdc8   : > { %4845 = vmatprep.mubr.msk.bf16.mxu0 %vm5801_vm1, %v5800_v3 }
 0xdc9   : > { %2528 = vadd.xlane.f32.xlu0 %v2527_v27 }
 0xe4e   : > { %v2515_v33 = vpop.xlane.xlu0 %2514 }
 0xe4f   : > { %v2520_v34 = vmul.f32 0.03125, %v2515_v33 }
 0xe50   : > { %v2518_v37 = vpop.xlane.xlu1 %2517 }
 0xe51   : > { %v2532_v35 = vmul.f32 %v2520_v34, %v2520_v34  ;;  %v2521_v36 = vmul.f32 0.03125, %v2518_v37  ;;  %v2536_v47 = vsub.f32 %v2511_v15, %v2520_v34 }
 0xe52   : > { %v2526_v38 = vpop.xlane.xlu0 %2525 }
 0xe53   : > { %v2530_v0 = vmul.f32 0.03125, %v2526_v38  ;;  %v2533_v20 = vmul.f32 %v2521_v36, %v2521_v36  ;;  %v2537_v52 = vsub.f32 %v2512_v19, %v2521_v36 }
 0xe55   : > { %v2534_v9 = vsub.f32 %v2530_v0, %v2532_v35 }
 0xe56   : > { %v2529_v39 = vpop.xlane.xlu0 %2528 }
 0xe57   : > { %v2538_v40 = vadd.f32 1e-05, %v2534_v9  ;;  %v2531_v41 = vmul.f32 0.03125, %v2529_v39 }
 0xe59   : > { %5228 = vrsqrt.f32 %v2538_v40  ;;  %v2535_v42 = vsub.f32 %v2531_v41, %v2533_v20 }
 0xe5b   : > { %v2539_v44 = vadd.f32 1e-05, %v2535_v42 }
 0xe5d   : > { %5230 = vrsqrt.f32 %v2539_v44 }
 0xe63   : > { %v5229_v49 = vpop.eup %5228 }
 0xe64   : > { %v2542_v51 = vmul.f32 %v5229_v49, %v2536_v47 }
 0xe66   : > { %v2548_v23 = vmul.f32 %v2547_v48, %v2542_v51 }
 0xe67   : > { %v5231_v54 = vpop.eup %5230 }
 0xe68   : > { %v2543_v55 = vmul.f32 %v5231_v54, %v2537_v52  ;;  %v6758_v57 = vadd.f32 %v2553_v53, %v2548_v23 }
 0xe6a   : > { %v2549_v56 = vmul.f32 %v2547_v48, %v2543_v55  ;;  %v2564_v59 = vadd.f32 %v6758_v57, %v6530_v7  ;;  %v4544_v7 = vld [vmem:[%s1157_s22] ss:$0 sm:$0xff] }
 0xe6c   : > { %v6760_v58 = vadd.f32 %v2553_v53, %v2549_v56 }
 0xe6e   : > { %v2565_v60 = vadd.f32 %v6760_v58, %v6533_v8 }
 0xe70   : > { %v2571_v62 = vpack.c.bf16 %v2565_v60, %v2564_v59 }
 0xe72   : > { %4824 = vmatmul.mubr.msk.bf16.vlgmr.msra.gmra.mrb[40].mxu1 %vm1416_vm2, %v2571_v62 }
 0xe73   : > { %4836 = vmatpush3.bf16.msra.mxu1 %v5184_v32  ;;  %4839 = vmatprep.mubr.msk.bf16.mxu1 %vm1416_vm2, %v5186_v61 }
 0xe74   : > { %4837 = vmatprep.subr.bf16.mxu1 %v5185_v63 }
 0xe77   : > { %4838 = vmatpush3.bf16.msra.mxu1 %v5185_v63 }
 0xe78   : > { %4849 = vmatprep.subr.bf16.mxu1 %v5800_v3 }
 0xe7a   : > { %4840 = vmatmul.mubr.msk.bf16.vlgmr.msra.gmra.mrb[44].mxu1 %vm1416_vm2, %v5187_v1 }
 0xe7b   : > { %4851 = vmatprep.mubr.msk.bf16.mxu1 %vm5801_vm1, %v5800_v3 }
 0xe9a   : > { %v4833_v8 = vpop.f32.mrb[36].mxu0 }
 0xe9b   : > { %v2716_v2 = vadd.f32 %v4833_v8, %v4544_v7  ;;  %v2707_v4 = vpop.f32.mrb[37].mxu0 }
 0xe9c   : > { %v2708_v14 = vadd.f32 %v4544_v7, %v2707_v4  ;;  %v4834_v18 = vpop.f32.mrb[38].mxu0 }
 0xe9d   : > { %v2719_v11 = vadd.f32 %v4834_v18, %v4544_v7  ;;  %v2710_v12 = vpop.f32.mrb[39].mxu0 }
 0xe9e   : > { %v2711_v13 = vadd.f32 %v4544_v7, %v2710_v12 }
 0xe9f   : > { %v6775_v15 = vpack.c.bf16 %v2719_v11, %v2716_v2 }
 0xea0   : > { %v6777_v16 = vpack.c.bf16 %v2711_v13, %v2708_v14 }
 0xea1   : > { %v2871_v17 = vsel %vm1541_vm3, %v6775_v15, 0 }
 0xea2   : > { %v2825_v19 = vsel %vm1541_vm3, %v6777_v16, 0  ;;  %4850 = vmatpush3.bf16.xpose.msra.mxu1 %v2871_v17 }
 0xea3   : > { %4844 = vmatpush3.bf16.xpose.msra.mxu0 %v2825_v19  ;;  %4861 = vmatprep.subr.bf16.mxu1 %v5800_v3 }
 0xea4   : > { %4855 = vmatprep.subr.bf16.mxu0 %v5800_v3 }
 0xf45   : > { %v2627_v22 = vpop.f32.mrb[40].mxu1 }
 0xf46   : > { %v2628_v24 = vadd.f32 %v4540_v21, %v2627_v22  ;;  %v4825_v25 = vpop.f32.mrb[41].mxu1 }
 0xf47   : > { %v2630_v26 = vpop.f32.mrb[42].mxu1 }
 0xf48   : > { %v6787_v27 = vpack.c.bf16 %v2628_v24, %v2628_v24  ;;  %v2631_v5 = vadd.f32 %v4540_v21, %v2630_v26  ;;  %v4826_v6 = vpop.f32.mrb[43].mxu1 }
 0xf4a   : > { %v6789_v28 = vpack.c.bf16 %v2631_v5, %v2631_v5  ;;  %4846 = vmatmul.mubr.msk.bf16.vlgmr.msra.gmra.mrb[40].mxu0 %vm1541_vm3, %v6787_v27 }
 0xf4b   : > { %4857 = vmatprep.mubr.msk.bf16.mxu0 %vm5801_vm1, %v5800_v3 }
 0xf4c   : > { %4852 = vmatmul.mubr.msk.bf16.vlgmr.msra.gmra.mrb[48].mxu1 %vm1541_vm3, %v6789_v28 }
 0xf4d   : > { %v4841_v30 = vpop.f32.mrb[44].mxu1  ;;  %4863 = vmatprep.mubr.msk.bf16.mxu1 %vm5801_vm1, %v5800_v3 }
 0xf4e   : > { %v2804_v31 = vadd.f32 %v4841_v30, %v4551_v29  ;;  %v2795_v32 = vpop.f32.mrb[45].mxu1 }
 0xf4f   : > { %v2796_v33 = vadd.f32 %v4551_v29, %v2795_v32  ;;  %v4842_v34 = vpop.f32.mrb[46].mxu1 }
 0xf50   : > { %v2807_v37 = vadd.f32 %v4842_v34, %v4551_v29  ;;  %v2798_v38 = vpop.f32.mrb[47].mxu1 }
 0xf51   : > { %v2799_v35 = vadd.f32 %v4551_v29, %v2798_v38 }
 0xf52   : > { %v6804_v36 = vpack.c.bf16 %v2807_v37, %v2804_v31 }
 0xf53   : > { %v6806_v0 = vpack.c.bf16 %v2799_v35, %v2796_v33 }
 0xf54   : > { %4862 = vmatpush3.bf16.msra.mxu1 %v6804_v36 }
 0xf55   : > { %4856 = vmatpush3.bf16.msra.mxu0 %v6806_v0  ;;  %4873 = vmatprep.subr.bf16.mxu1 %v5800_v3 }
 0xf56   : > { %4867 = vmatprep.subr.bf16.mxu0 %v5800_v3 }
0x101d   : > { %v2861_v9 = vpop.f32.mrb[40].mxu0 }
0x101e   : > { %v4847_v10 = vpop.f32.mrb[41].mxu0  ;;  %v2913_v39 = vsel %vm2442_vm5, %v2861_v9, -inf }
0x101f   : > { %2914 = vmax.xlane.f32.xlu1 %v2913_v39  ;;  %v2864_v20 = vpop.f32.mrb[42].mxu0  ;;  %v2907_v40 = vpop.f32.mrb[48].mxu1 }
0x1020   : > { %v4848_v41 = vpop.f32.mrb[43].mxu0  ;;  %v4853_v42 = vpop.f32.mrb[49].mxu1  ;;  %v2916_v44 = vsel %vm2442_vm5, %v2907_v40, -inf }
0x1021   : > { %2917 = vmax.xlane.f32.xlu0 %v2916_v44  ;;  %v2910_v45 = vpop.f32.mrb[50].mxu1 }
0x1022   : > { %v4854_v47 = vpop.f32.mrb[51].mxu1 }
0x1030   : > { %3027 = vrot.lane.b32.xlu1 %v6777_v16, %s5804_s17 }
0x10ac   : > { %v2915_v48 = vpop.xlane.xlu1 %2914 }
0x10ad   : > { %v2919_v49 = vsub.f32 %v2861_v9, %v2915_v48 }
0x10ae   : > { %v2918_v51 = vpop.xlane.xlu0 %2917 }
0x10af   : > { %v2921_v52 = vmul.f32 1.442695, %v2919_v49  ;;  %v2920_v23 = vsub.f32 %v2907_v40, %v2918_v51 }
0x10b0   : > { %v3028_v60 = vpop.permute.xlu1 %3027 }
0x10b1   : > { %5232 = vpow2.f32 %v2921_v52  ;;  %v2923_v53 = vmul.f32 1.442695, %v2920_v23  ;;  %v3033_v14 = vsel %vm1541_vm3, %v3028_v60, 0 }
0x10b3   : > { %5234 = vpow2.f32 %v2923_v53 }
0x10bb   : > { %v5233_v54 = vpop.eup %5232 }
0x10bc   : > { %v2925_v55 = vsel %vm2442_vm5, %v5233_v54, 0.0 }
0x10bd   : > { %v5235_v56 = vpop.eup %5234  ;;  %2926 = vadd.xlane.f32.xlu1 %v2925_v55 }
0x10be   : > { %v2928_v59 = vsel %vm2442_vm5, %v5235_v56, 0.0 }
0x10bf   : > { %2929 = vadd.xlane.f32.xlu0 %v2928_v59 }
0x10ce   : > { %3024 = vrot.lane.b32.xlu1 %v6787_v27, %s5804_s17 }
0x10d2   : > { %3076 = vrot.lane.b32.xlu1 %v6789_v28, %s5804_s17 }
0x10d5   : > { %3079 = vrot.lane.b32.xlu0 %v6775_v15, %s5804_s17 }
0x114a   : > { %v2927_v61 = vpop.xlane.xlu1 %2926 }
0x114b   : > { %5236 = vrcp.f32 %v2927_v61 }
0x114c   : > { %v2930_v62 = vpop.xlane.xlu0 %2929 }
0x114d   : > { %5238 = vrcp.f32 %v2930_v62 }
0x114e   : > { %v3025_v12 = vpop.permute.xlu1 %3024 }
0x1150   : > { %v3080_v4 = vpop.permute.xlu0 %3079 }
0x1151   : > { %v3085_v11 = vsel %vm1541_vm3, %v3080_v4, 0 }
0x1152   : > { %v3077_v13 = vpop.permute.xlu1 %3076 }
0x1155   : > { %v5237_v63 = vpop.eup %5236 }
0x1156   : > { %v2933_v1 = vmul.f32 %v5237_v63, %v5233_v54 }
0x1157   : > { %v5239_v7 = vpop.eup %5238 }
0x1158   : > { %v2934_v8 = vmul.f32 %v5239_v7, %v5235_v56  ;;  %v2935_v2 = vpack.c.bf16 %v2933_v1, %v2933_v1 }
0x115a   : > { %4858 = vmatmul.mubr.msk.bf16.vlgmr.msra.gmra.mrb[44].mxu0 %vm2442_vm5, %v2935_v2  ;;  %v2936_v18 = vpack.c.bf16 %v2934_v8, %v2934_v8 }
0x115b   : > { %4868 = vmatpush3.bf16.xpose.msra.mxu0 %v3033_v14  ;;  %4869 = vmatprep.mubr.msk.bf16.mxu0 %vm5801_vm1, %v5800_v3 }
0x115c   : > { %4864 = vmatmul.mubr.msk.bf16.vlgmr.msra.gmra.mrb[52].mxu1 %vm2442_vm5, %v2936_v18  ;;  %4879 = vmatprep.subr.bf16.mxu0 %v5800_v3 }
0x115d   : > { %4874 = vmatpush3.bf16.xpose.msra.mxu1 %v3085_v11  ;;  %4875 = vmatprep.mubr.msk.bf16.mxu1 %vm5801_vm1, %v5800_v3 }
0x115e   : > { %4885 = vmatprep.subr.bf16.mxu1 %v5800_v3 }
0x1162   : > { %4870 = vmatmul.mubr.msk.bf16.vlgmr.msra.gmra.mrb[48].mxu0 %vm1541_vm3, %v3025_v12 }
0x1163   : > { %4881 = vmatprep.mubr.msk.bf16.mxu0 %vm5801_vm1, %v5800_v3 }
0x1164   : > { %4876 = vmatmul.mubr.msk.bf16.vlgmr.msra.gmra.mrb[56].mxu1 %vm1541_vm3, %v3077_v13 }
0x1165   : > { %4887 = vmatprep.mubr.msk.bf16.mxu1 %vm5801_vm1, %v5800_v3 }
0x122d   : > { %v6840_v17 = vpop.f32.mrb[44].mxu0 }
0x122e   : > { %v4859_v19 = vpop.f32.mrb[45].mxu0 }
0x122f   : > { %v2977_v21 = vpop.f32.mrb[46].mxu0  ;;  %v6842_v22 = vpop.f32.mrb[52].mxu1 }
0x1230   : > { %v4860_v24 = vpop.f32.mrb[47].mxu0  ;;  %v4865_v25 = vpop.f32.mrb[53].mxu1 }
0x1231   : > { %v3020_v26 = vpop.f32.mrb[54].mxu1 }
0x1232   : > { %v4866_v5 = vpop.f32.mrb[55].mxu1 }
0x1235   : > { %v3069_v6 = vpop.f32.mrb[48].mxu0 }
0x1236   : > { %v4871_v29 = vpop.f32.mrb[49].mxu0  ;;  %v3127_v30 = vsel %vm2442_vm5, %v3069_v6, -inf }
0x1237   : > { %v3121_v31 = vpop.f32.mrb[56].mxu1  ;;  %3128 = vmax.xlane.f32.xlu0 %v3127_v30  ;;  %v3072_v32 = vpop.f32.mrb[50].mxu0 }
0x1238   : > { %v4872_v33 = vpop.f32.mrb[51].mxu0  ;;  %v4877_v34 = vpop.f32.mrb[57].mxu1  ;;  %v3130_v37 = vsel %vm2442_vm5, %v3121_v31, -inf }
0x1239   : > { %3131 = vmax.xlane.f32.xlu1 %v3130_v37  ;;  %v3124_v38 = vpop.f32.mrb[58].mxu1 }
0x123a   : > { %v4878_v35 = vpop.f32.mrb[59].mxu1 }
0x124a   : > { %3152 = vrot.lane.b32.xlu1 %v6806_v0, %s5804_s17 }
0x124e   : > { %3247 = vrot.lane.b32.xlu1 %v6777_v16, %s5806_s1 }
0x1252   : > { %3297 = vrot.lane.b32.xlu1 %v6775_v15, %s5806_s1 }
0x1256   : > { %3295 = vrot.lane.b32.xlu1 %v6789_v28, %s5806_s1 }
0x12c4   : > { %v3129_v9 = vpop.xlane.xlu0 %3128 }
0x12c5   : > { %v3133_v10 = vsub.f32 %v3069_v6, %v3129_v9 }
0x12c6   : > { %v3132_v39 = vpop.xlane.xlu1 %3131 }
0x12c7   : > { %v3135_v20 = vmul.f32 1.442695, %v3133_v10  ;;  %v3134_v40 = vsub.f32 %v3121_v31, %v3132_v39 }
0x12c9   : > { %5240 = vpow2.f32 %v3135_v20  ;;  %v3137_v41 = vmul.f32 1.442695, %v3134_v40 }
0x12ca   : > { %v3153_v42 = vpop.permute.xlu1 %3152 }
0x12cb   : > { %5242 = vpow2.f32 %v3137_v41  ;;  %4880 = vmatpush3.bf16.msra.mxu0 %v3153_v42 }
0x12cc   : > { %4891 = vmatprep.subr.bf16.mxu0 %v5800_v3 }
0x12ce   : > { %v3248_v53 = vpop.permute.xlu1 %3247 }
0x12cf   : > { %v3253_v59 = vsel %vm1541_vm3, %v3248_v53, 0 }
0x12d2   : > { %v3298_v61 = vpop.permute.xlu1 %3297 }
0x12d3   : > { %v5241_v44 = vpop.eup %5240  ;;  %v3303_v63 = vsel %vm1541_vm3, %v3298_v61, 0 }
0x12d4   : > { %v3139_v45 = vsel %vm2442_vm5, %v5241_v44, 0.0 }
0x12d5   : > { %v5243_v47 = vpop.eup %5242  ;;  %3140 = vadd.xlane.f32.xlu0 %v3139_v45 }
0x12d6   : > { %v3142_v48 = vsel %vm2442_vm5, %v5243_v47, 0.0  ;;  %v3296_v7 = vpop.permute.xlu1 %3295 }
0x12d9   : > { %3143 = vadd.xlane.f32.xlu0 %v3142_v48 }
0x12ef   : > { %3199 = vrot.lane.b32.xlu0 %v6804_v36, %s5804_s17 }
0x12f3   : > { %3245 = vrot.lane.b32.xlu0 %v6787_v27, %s5806_s1 }
0x1362   : > { %v3141_v49 = vpop.xlane.xlu0 %3140 }
0x1363   : > { %5244 = vrcp.f32 %v3141_v49 }
0x1366   : > { %v3144_v51 = vpop.xlane.xlu0 %3143 }
0x1367   : > { %5246 = vrcp.f32 %v3144_v51 }
0x136a   : > { %v3200_v52 = vpop.permute.xlu0 %3199 }
0x136b   : > { %4886 = vmatpush3.bf16.msra.mxu1 %v3200_v52 }
0x136c   : > { %4897 = vmatprep.subr.bf16.mxu1 %v5800_v3 }
0x136d   : > { %v5245_v23 = vpop.eup %5244 }
0x136e   : > { %v3147_v54 = vmul.f32 %v5245_v23, %v5241_v44  ;;  %v3246_v1 = vpop.permute.xlu0 %3245 }
0x1370   : > { %v3149_v55 = vpack.c.bf16 %v3147_v54, %v3147_v54 }
0x1371   : > { %v5247_v56 = vpop.eup %5246 }
0x1372   : > { %v3148_v60 = vmul.f32 %v5247_v56, %v5243_v47  ;;  %4882 = vmatmul.mubr.msk.bf16.vlgmr.msra.gmra.mrb[52].mxu0 %vm2442_vm5, %v3149_v55 }
0x1373   : > { %4892 = vmatpush3.bf16.xpose.msra.mxu0 %v3253_v59  ;;  %4893 = vmatprep.mubr.msk.bf16.mxu0 %vm5801_vm1, %v5800_v3 }
0x1374   : > { %v3150_v62 = vpack.c.bf16 %v3148_v60, %v3148_v60  ;;  %4903 = vmatprep.subr.bf16.mxu0 %v5800_v3 }
0x1376   : > { %4888 = vmatmul.mubr.msk.bf16.vlgmr.msra.gmra.mrb[60].mxu1 %vm2442_vm5, %v3150_v62 }
0x1377   : > { %4898 = vmatpush3.bf16.xpose.msra.mxu1 %v3303_v63  ;;  %4899 = vmatprep.mubr.msk.bf16.mxu1 %vm5801_vm1, %v5800_v3 }
0x1378   : > { %4909 = vmatprep.subr.bf16.mxu1 %v5800_v3 }
0x137a   : > { %4894 = vmatmul.mubr.msk.bf16.vlgmr.msra.gmra.mrb[56].mxu0 %vm1541_vm3, %v3246_v1 }
0x137b   : > { %4905 = vmatprep.mubr.msk.bf16.mxu0 %vm5801_vm1, %v5800_v3 }
0x137e   : > { %4900 = vmatmul.mubr.msk.bf16.vlgmr.msra.gmra.mrb[64].mxu1 %vm1541_vm3, %v3296_v7 }
0x137f   : > { %4911 = vmatprep.mubr.msk.bf16.mxu1 %vm5801_vm1, %v5800_v3 }
0x1445   : > { %v6878_v8 = vpop.f32.mrb[52].mxu0 }
0x1446   : > { %v4883_v2 = vpop.f32.mrb[53].mxu0 }
0x1447   : > { %v3195_v4 = vpop.f32.mrb[54].mxu0 }
0x1448   : > { %v4884_v14 = vpop.f32.mrb[55].mxu0 }
0x1449   : > { %v6880_v18 = vpop.f32.mrb[60].mxu1 }
0x144a   : > { %v5157_v11 = vpack.i.bf16 %v6880_v18, %v6878_v8  ;;  %v4889_v12 = vpop.f32.mrb[61].mxu1 }
0x144b   : > { %v3242_v13 = vpop.f32.mrb[62].mxu1 }
0x144c   : > { %v4890_v19 = vpop.f32.mrb[63].mxu1 }
0x144d   : > { %v3289_v21 = vpop.f32.mrb[56].mxu0 }
0x144e   : > { %v4895_v24 = vpop.f32.mrb[57].mxu0  ;;  %v3345_v25 = vsel %vm2442_vm5, %v3289_v21, -inf }
0x144f   : > { %3346 = vmax.xlane.f32.xlu0 %v3345_v25  ;;  %v3292_v26 = vpop.f32.mrb[58].mxu0 }
0x1450   : > { %v4896_v5 = vpop.f32.mrb[59].mxu0 }
0x1451   : > { %v3339_v6 = vpop.f32.mrb[64].mxu1 }
0x1452   : > { %v4901_v29 = vpop.f32.mrb[65].mxu1  ;;  %v3348_v30 = vsel %vm2442_vm5, %v3339_v6, -inf }
0x1453   : > { %3349 = vmax.xlane.f32.xlu1 %v3348_v30  ;;  %v3342_v31 = vpop.f32.mrb[66].mxu1 }
0x1454   : > { %v4902_v32 = vpop.f32.mrb[67].mxu1 }
0x1464   : > { %3369 = vrot.lane.b32.xlu1 %v6806_v0, %s5806_s1 }
0x1468   : > { %3463 = vrot.lane.b32.xlu1 %v6777_v16, %s5808_s2 }
0x146c   : > { %3513 = vrot.lane.b32.xlu1 %v6775_v15, %s5808_s2 }
0x1470   : > { %3511 = vrot.lane.b32.xlu1 %v6789_v28, %s5808_s2 }
0x14dc   : > { %v3347_v33 = vpop.xlane.xlu0 %3346 }
0x14dd   : > { %v3351_v34 = vsub.f32 %v3289_v21, %v3347_v33 }
0x14df   : > { %v3353_v37 = vmul.f32 1.442695, %v3351_v34 }
0x14e0   : > { %v3350_v38 = vpop.xlane.xlu1 %3349 }
0x14e1   : > { %5248 = vpow2.f32 %v3353_v37  ;;  %v3352_v35 = vsub.f32 %v3339_v6, %v3350_v38 }
0x14e3   : > { %v3355_v9 = vmul.f32 1.442695, %v3352_v35 }
0x14e4   : > { %v3370_v10 = vpop.permute.xlu1 %3369 }
0x14e5   : > { %5250 = vpow2.f32 %v3355_v9  ;;  %4904 = vmatpush3.bf16.msra.mxu0 %v3370_v10 }
0x14e6   : > { %4915 = vmatprep.subr.bf16.mxu0 %v5800_v3 }
0x14e8   : > { %v3464_v44 = vpop.permute.xlu1 %3463 }
0x14e9   : > { %v3469_v49 = vsel %vm1541_vm3, %v3464_v44, 0 }
0x14eb   : > { %v5249_v39 = vpop.eup %5248 }
0x14ec   : > { %v3357_v16 = vsel %vm2442_vm5, %v5249_v39, 0.0  ;;  %v3514_v52 = vpop.permute.xlu1 %3513 }
0x14ed   : > { %3358 = vadd.xlane.f32.xlu0 %v3357_v16  ;;  %v3519_v23 = vsel %vm1541_vm3, %v3514_v52, 0 }
0x14ef   : > { %v5251_v15 = vpop.eup %5250 }
0x14f0   : > { %v3360_v20 = vsel %vm2442_vm5, %v5251_v15, 0.0  ;;  %v3512_v54 = vpop.permute.xlu1 %3511 }
0x14f1   : > { %3361 = vadd.xlane.f32.xlu0 %v3360_v20  ;;  %v5189_v20 = vld [vmem:[%s1166_s24 + $0x8] sm:$0xff]  }
0x1507   : > { %3415 = vrot.lane.b32.xlu0 %v6804_v36, %s5806_s1 }
0x150b   : > { %3461 = vrot.lane.b32.xlu0 %v6787_v27, %s5808_s2 }
0x157a   : > { %v3359_v28 = vpop.xlane.xlu0 %3358 }
0x157b   : > { %5252 = vrcp.f32 %v3359_v28 }
0x157e   : > { %v3362_v40 = vpop.xlane.xlu0 %3361 }
0x157f   : > { %5254 = vrcp.f32 %v3362_v40 }
0x1582   : > { %v3416_v41 = vpop.permute.xlu0 %3415 }
0x1583   : > { %4910 = vmatpush3.bf16.msra.mxu1 %v3416_v41 }
0x1584   : > { %4921 = vmatprep.subr.bf16.mxu1 %v5800_v3 }
0x1585   : > { %v5253_v42 = vpop.eup %5252 }
0x1586   : > { %v3365_v45 = vmul.f32 %v5253_v42, %v5249_v39  ;;  %v3462_v53 = vpop.permute.xlu0 %3461 }
0x1588   : > { %v3367_v47 = vpack.c.bf16 %v3365_v45, %v3365_v45 }
0x1589   : > { %v5255_v48 = vpop.eup %5254 }
0x158a   : > { %v3366_v51 = vmul.f32 %v5255_v48, %v5251_v15  ;;  %4906 = vmatmul.mubr.msk.bf16.vlgmr.msra.gmra.mrb[60].mxu0 %vm2442_vm5, %v3367_v47  ;;  %v5188_v15 = vld [vmem:[%s1166_s24] sm:$0xff]  }
0x158b   : > { %4916 = vmatpush3.bf16.xpose.msra.mxu0 %v3469_v49  ;;  %4917 = vmatprep.mubr.msk.bf16.mxu0 %vm5801_vm1, %v5800_v3 }
0x158c   : > { %v3368_v27 = vpack.c.bf16 %v3366_v51, %v3366_v51  ;;  %4927 = vmatprep.subr.bf16.mxu0 %v5800_v3 }
0x158e   : > { %4912 = vmatmul.mubr.msk.bf16.vlgmr.msra.gmra.mrb[68].mxu1 %vm2442_vm5, %v3368_v27 }
0x158f   : > { %4922 = vmatpush3.bf16.xpose.msra.mxu1 %v3519_v23  ;;  %4923 = vmatprep.mubr.msk.bf16.mxu1 %vm5801_vm1, %v5800_v3 }
0x1590   : > { %4933 = vmatprep.subr.bf16.mxu1 %v5800_v3 }
0x1592   : > { %4918 = vmatmul.mubr.msk.bf16.vlgmr.msra.gmra.mrb[64].mxu0 %vm1541_vm3, %v3462_v53 }
0x1593   : > { %4929 = vmatprep.mubr.msk.bf16.mxu0 %vm5801_vm1, %v5800_v3 }
0x1596   : > { %4924 = vmatmul.mubr.msk.bf16.vlgmr.msra.gmra.mrb[72].mxu1 %vm1541_vm3, %v3512_v54 }
0x1597   : > { %4935 = vmatprep.mubr.msk.bf16.mxu1 %vm5801_vm1, %v5800_v3 }
0x165d   : > { %v3409_v55 = vpop.f32.mrb[60].mxu0 }
0x165e   : > { %v4907_v56 = vpop.f32.mrb[61].mxu0 }
0x165f   : > { %v3412_v59 = vpop.f32.mrb[62].mxu0 }
0x1660   : > { %v4908_v60 = vpop.f32.mrb[63].mxu0 }
0x1661   : > { %v3455_v61 = vpop.f32.mrb[68].mxu1 }
0x1662   : > { %v5162_v62 = vpack.i.bf16 %v3455_v61, %v3409_v55  ;;  %v4913_v63 = vpop.f32.mrb[69].mxu1 }
0x1663   : > { %v3458_v1 = vpop.f32.mrb[70].mxu1 }
0x1664   : > { %v4914_v7 = vpop.f32.mrb[71].mxu1 }
0x1665   : > { %v3505_v2 = vpop.f32.mrb[64].mxu0 }
0x1666   : > { %v4919_v4 = vpop.f32.mrb[65].mxu0  ;;  %v3561_v14 = vsel %vm2442_vm5, %v3505_v2, -inf }
0x1667   : > { %3562 = vmax.xlane.f32.xlu0 %v3561_v14  ;;  %v3508_v12 = vpop.f32.mrb[66].mxu0 }
0x1668   : > { %v4920_v13 = vpop.f32.mrb[67].mxu0 }
0x1669   : > { %v3555_v19 = vpop.f32.mrb[72].mxu1 }
0x166a   : > { %v4925_v21 = vpop.f32.mrb[73].mxu1  ;;  %v3564_v24 = vsel %vm2442_vm5, %v3555_v19, -inf }
0x166b   : > { %3565 = vmax.xlane.f32.xlu1 %v3564_v24  ;;  %v3558_v25 = vpop.f32.mrb[74].mxu1 }
0x166c   : > { %v4926_v26 = vpop.f32.mrb[75].mxu1 }
0x167c   : > { %3585 = vrot.lane.b32.xlu1 %v6806_v0, %s5808_s2 }
0x1680   : > { %5158 = vrot.lane.b32.xlu1 %v5157_v11, %s5809_s18 }
0x1684   : > { %5163 = vrot.lane.b32.xlu1 %v5162_v62, %s5810_s23 }
0x16f4   : > { %v3563_v5 = vpop.xlane.xlu0 %3562 }
0x16f5   : > { %v3567_v6 = vsub.f32 %v3505_v2, %v3563_v5 }
0x16f7   : > { %v3569_v29 = vmul.f32 1.442695, %v3567_v6 }
0x16f8   : > { %v3566_v30 = vpop.xlane.xlu1 %3565 }
0x16f9   : > { %5256 = vpow2.f32 %v3569_v29  ;;  %v3568_v31 = vsub.f32 %v3555_v19, %v3566_v30  ;;  %v5190_v30 = vld [vmem:[%s1175_s7] sm:$0xff]  }
0x16fb   : > { %v3571_v32 = vmul.f32 1.442695, %v3568_v31  ;;  %v5192_v31 = vld [vmem:[%s6512_s21] sm:$0xff]  }
0x16fc   : > { %v3586_v33 = vpop.permute.xlu1 %3585 }
0x16fd   : > { %5258 = vpow2.f32 %v3571_v32  ;;  %4928 = vmatpush3.bf16.msra.mxu0 %v3586_v33  ;;  %v5193_v32 = vld [vmem:[%s6512_s21 + $0x8] sm:$0xff]  }
0x16fe   : > { %4939 = vmatprep.subr.bf16.mxu0 %v5800_v3 }
0x1700   : > { %v5159_v51 = vpop.permute.xlu1 %5158 }
0x1701   : > { %v5161_v27 = vunpack.i.h.bf16 %v5159_v51  ;;  %v5160_v23 = vunpack.i.l.bf16 %v5159_v51 }
0x1703   : > { %v5257_v0 = vpop.eup %5256  ;;  %v3702_v56 = vsel %vm1541_vm3, %v6842_v22, %v5161_v27  ;;  %v3701_v59 = vsel %vm1541_vm3, %v6840_v17, %v5160_v23  ;;  %v4574_v17 = vld [vmem:[%s1361_s9] ss:$0 sm:$0xff]  ;;  %v5194_v23 = vld [vmem:[%s6512_s21 + $0x10] sm:$0xff]  }
0x1704   : > { %v3573_v34 = vsel %vm2442_vm5, %v5257_v0, 0.0  ;;  %v5164_v52 = vpop.permute.xlu1 %5163 }
0x1705   : > { %3574 = vadd.xlane.f32.xlu0 %v3573_v34  ;;  %v5166_v53 = vunpack.i.h.bf16 %v5164_v52  ;;  %v5165_v54 = vunpack.i.l.bf16 %v5164_v52 }
0x1707   : > { %v5259_v8 = vpop.eup %5258  ;;  %v3704_v62 = vsel %vm2442_vm5, %v3702_v56, %v5166_v53  ;;  %v3703_v63 = vsel %vm2442_vm5, %v3701_v59, %v5165_v54  ;;  %v5195_v53 = vld [vmem:[%s6512_s21 + $0x18] sm:$0xff]   ;;  %v4578_v54 = vld [vmem:[%s1364_s3] ss:$0 sm:$0xff]  ;;  %s7224_s3 = sld [smem:[#allocation31_spill]] }
0x1708   : > { %v3576_v18 = vsel %vm2442_vm5, %v5259_v8, 0.0 }
0x1709   : > { %3577 = vadd.xlane.f32.xlu0 %v3576_v18 }
0x170d   : > { %p4588_p10 = scmp.ne.s32.totalorder %s7224_s3, 1 }
0x171f   : > { %3631 = vrot.lane.b32.xlu0 %v6804_v36, %s5808_s2 }
0x1792   : > { %v3575_v11 = vpop.xlane.xlu0 %3574 }
0x1793   : > { %5260 = vrcp.f32 %v3575_v11 }
0x1796   : > { %v3578_v37 = vpop.xlane.xlu0 %3577 }
0x1797   : > { %5262 = vrcp.f32 %v3578_v37 }
0x179a   : > { %v3632_v38 = vpop.permute.xlu0 %3631 }
0x179b   : > { %4934 = vmatpush3.bf16.msra.mxu1 %v3632_v38 }
0x179c   : > { %4947 = vmatprep.subr.bf16.mxu1 %v5800_v3 }
0x179d   : > { %v5261_v35 = vpop.eup %5260 }
0x179e   : > { %v3581_v9 = vmul.f32 %v5261_v35, %v5257_v0 }
0x17a0   : > { %v3583_v10 = vpack.c.bf16 %v3581_v9, %v3581_v9 }
0x17a1   : > { %v5263_v39 = vpop.eup %5262 }
0x17a2   : > { %v3582_v16 = vmul.f32 %v5263_v39, %v5259_v8  ;;  %4930 = vmatmul.mubr.msk.bf16.vlgmr.msra.gmra.mrb[68].mxu0 %vm2442_vm5, %v3583_v10 }
0x17a3   : > { %4943 = vmatprep.mubr.msk.bf16.mxu0 %vm5801_vm1, %v5800_v3  ;;  %4940 = vmatpush3.bf16.msra.mxu0 %v5188_v15  ;;  %v3804_v15 = vsub.s32 1, %v6747_v43 }
0x17a4   : > { %v3584_v36 = vpack.c.bf16 %v3582_v16, %v3582_v16  ;;  %4941 = vmatprep.subr.bf16.mxu0 %v5800_v3 }
0x17a6   : > { %4936 = vmatmul.mubr.msk.bf16.vlgmr.msra.gmra.mrb[76].mxu1 %vm2442_vm5, %v3584_v36 }
0x17a7   : > { %4951 = vmatprep.mubr.msk.bf16.mxu1 %vm5801_vm1, %v5800_v3  ;;  %4942 = vmatpush3.bf16.msra.mxu0 %v5189_v20 }
0x17a8   : > { %4955 = vmatprep.subr.bf16.mxu0 %v5800_v3  ;;  %4948 = vmatpush3.bf16.msra.mxu1 %v5190_v30 }
0x17a9   : > { %4949 = vmatprep.subr.bf16.mxu1 %v5800_v3 }
0x1875   : > { %v3625_v28 = vpop.f32.mrb[68].mxu0 }
0x1876   : > { %v4931_v40 = vpop.f32.mrb[69].mxu0 }
0x1877   : > { %v3628_v41 = vpop.f32.mrb[70].mxu0 }
0x1878   : > { %v4932_v42 = vpop.f32.mrb[71].mxu0 }
0x1879   : > { %v3671_v44 = vpop.f32.mrb[76].mxu1 }
0x187a   : > { %v5167_v45 = vpack.i.bf16 %v3671_v44, %v3625_v28  ;;  %v4937_v47 = vpop.f32.mrb[77].mxu1  ;;  %v3805_v28 = vrot.slane %v6751_v46, %v3804_v15 }
0x187b   : > { %v3674_v48 = vpop.f32.mrb[78].mxu1 }
0x187c   : > { %v4938_v49 = vpop.f32.mrb[79].mxu1  ;;  %5168 = vrot.lane.b32.xlu0 %v5167_v45, %s5811_s6  ;;  %v3811_v48 = vrot.slane %v6755_v50, %v3804_v15 }
0x18ee   : > { %v5169_v55 = vpop.permute.xlu0 %5168 }
0x18ef   : > { %v5171_v60 = vunpack.i.h.bf16 %v5169_v55  ;;  %v5170_v61 = vunpack.i.l.bf16 %v5169_v55 }
0x18f1   : > { %v3706_v1 = vsel %vm2445_vm6, %v3704_v62, %v5171_v60  ;;  %v3705_v7 = vsel %vm2445_vm6, %v3703_v63, %v5170_v61 }
0x18f2   : > { %v3707_v2 = vpack.c.bf16 %v3706_v1, %v3705_v7 }
0x18f4   : > { %4944 = vmatmul.mubr.msk.bf16.vlgmr.msra.gmra.mrb[72].mxu0 %vm1416_vm2, %v3707_v2 }
0x18f5   : > { %4963 = vmatprep.mubr.msk.bf16.mxu0 %vm5801_vm1, %v5800_v3  ;;  %4956 = vmatpush3.bf16.msra.mxu0 %v5192_v31 }
0x18f6   : > { %4957 = vmatprep.subr.bf16.mxu0 %v5800_v3 }
0x18f9   : > { %4958 = vmatpush3.bf16.msra.mxu0 %v5193_v32 }
0x18fa   : > { %4959 = vmatprep.subr.bf16.mxu0 %v5800_v3 }
0x18fd   : > { %4960 = vmatpush3.bf16.msra.mxu0 %v5194_v23 }
0x18fe   : > { %4961 = vmatprep.subr.bf16.mxu0 %v5800_v3  ;;  %v4582_v3 = vld [vmem:[%s1372_s28] ss:$0 sm:$0xff] }
0x1901   : > { %4962 = vmatpush3.bf16.msra.mxu0 %v5195_v53 }
0x19c7   : > { %v3763_v22 = vpop.f32.mrb[72].mxu0 }
0x19c8   : > { %v3764_v4 = vadd.f32 %v4574_v17, %v3763_v22  ;;  %v4945_v14 = vpop.f32.mrb[73].mxu0 }
0x19c9   : > { %v3766_v12 = vpop.f32.mrb[74].mxu0 }
0x19ca   : > { %v3770_v13 = vadd.f32 %v3764_v4, %v6758_v57  ;;  %v3767_v19 = vadd.f32 %v4574_v17, %v3766_v12  ;;  %v4946_v21 = vpop.f32.mrb[75].mxu0 }
0x19cc   : > { %v3771_v24 = vadd.f32 %v3767_v19, %v6760_v58  ;;  %v3772_v25 = vsel %vm1416_vm2, %v3770_v13, 0.0  ;;  %v3780_v6 = vmul.f32 %v3770_v13, %v3770_v13  ;;  %v5191_v58 = vld [vmem:[%s1175_s7 + $0x8] sm:$0xff]  }
0x19cd   : > { %3773 = vadd.xlane.f32.xlu1 %v3772_v25  ;;  %4950 = vmatpush3.bf16.msra.mxu1 %v5191_v58 }
0x19ce   : > { %v3775_v26 = vsel %vm1416_vm2, %v3771_v24, 0.0  ;;  %v3781_v5 = vmul.f32 %v3771_v24, %v3771_v24  ;;  %v3782_v57 = vsel %vm1416_vm2, %v3780_v6, 0.0 }
0x19cf   : > { %3776 = vadd.xlane.f32.xlu0 %v3775_v26 }
0x19d0   : > { %v3785_v29 = vsel %vm1416_vm2, %v3781_v5, 0.0 }
0x19d1   : > { %3786 = vadd.xlane.f32.xlu1 %v3785_v29 }
0x19d3   : > { %3783 = vadd.xlane.f32.xlu0 %v3782_v57 }
0x1a5a   : > { %v3774_v33 = vpop.xlane.xlu1 %3773 }
0x1a5b   : > { %v3778_v34 = vmul.f32 0.03125, %v3774_v33 }
0x1a5c   : > { %v3777_v0 = vpop.xlane.xlu0 %3776 }
0x1a5d   : > { %v3779_v8 = vmul.f32 0.03125, %v3777_v0  ;;  %v3790_v35 = vmul.f32 %v3778_v34, %v3778_v34  ;;  %v3794_v41 = vsub.f32 %v3770_v13, %v3778_v34 }
0x1a5e   : > { %v3787_v18 = vpop.xlane.xlu1 %3786 }
0x1a5f   : > { %v3791_v11 = vmul.f32 %v3779_v8, %v3779_v8  ;;  %v3789_v37 = vmul.f32 0.03125, %v3787_v18  ;;  %v3795_v20 = vsub.f32 %v3771_v24, %v3779_v8 }
0x1a60   : > { %v3784_v38 = vpop.xlane.xlu0 %3783 }
0x1a61   : > { %v3793_v9 = vsub.f32 %v3789_v37, %v3791_v11  ;;  %v3788_v10 = vmul.f32 0.03125, %v3784_v38 }
0x1a63   : > { %v3797_v39 = vadd.f32 1e-05, %v3793_v9  ;;  %v3792_v16 = vsub.f32 %v3788_v10, %v3790_v35  ;;  %v4003_v35 = vsub.s32 2, %v6747_v43 }
0x1a65   : > { %5264 = vrsqrt.f32 %v3797_v39  ;;  %v3796_v36 = vadd.f32 1e-05, %v3792_v16  ;;  %v4004_v10 = vrot.slane %v6751_v46, %v4003_v35 }
0x1a67   : > { %5266 = vrsqrt.f32 %v3796_v36  ;;  %v4010_v36 = vrot.slane %v6755_v50, %v4003_v35 }
0x1a6f   : > { %v5265_v40 = vpop.eup %5264 }
0x1a70   : > { %v3801_v42 = vmul.f32 %v5265_v40, %v3795_v20 }
0x1a71   : > { %v5267_v44 = vpop.eup %5266 }
0x1a72   : > { %v3800_v45 = vmul.f32 %v5267_v44, %v3794_v41  ;;  %v3807_v47 = vmul.f32 %v3805_v28, %v3801_v42 }
0x1a74   : > { %v3806_v49 = vmul.f32 %v3805_v28, %v3800_v45  ;;  %v3813_v52 = vadd.f32 %v3811_v48, %v3807_v47 }
0x1a76   : > { %v3812_v51 = vadd.f32 %v3811_v48, %v3806_v49 }
0x1a78   : > { %v3819_v27 = vpack.c.bf16 %v3813_v52, %v3812_v51 }
0x1a7a   : > { %4952 = vmatmul.mubr.msk.bf16.vlgmr.msra.gmra.mrb[80].mxu1 %vm1416_vm2, %v3819_v27 }
0x1b4d   : > { %v3875_v55 = vpop.f32.mrb[80].mxu1 }
0x1b4e   : > { %v3876_v56 = vadd.f32 %v4578_v54, %v3875_v55  ;;  %v4953_v59 = vpop.f32.mrb[81].mxu1 }
0x1b4f   : > { %v3878_v60 = vpop.f32.mrb[82].mxu1 }
0x1b50   : > { %v3879_v61 = vadd.f32 %v4578_v54, %v3878_v60  ;;  %v4954_v62 = vpop.f32.mrb[83].mxu1  ;;  %v3882_v63 = vmax.f32 %v3876_v56, 0.0 }
0x1b52   : > { %v3883_v1 = vmax.f32 %v3879_v61, 0.0 }
0x1b54   : > { %v3884_v7 = vpack.c.bf16 %v3883_v1, %v3882_v63 }
0x1b56   : > { %4964 = vmatmul.mubr.msk.bf16.vlgmr.msra.gmra.mrb[76].mxu0 %vm3924_vm7, %v3884_v7 }
0x1c29   : > { %v3962_v2 = vpop.f32.mrb[76].mxu0 }
0x1c2a   : > { %v3963_v17 = vadd.f32 %v4582_v3, %v3962_v2  ;;  %v4965_v22 = vpop.f32.mrb[77].mxu0 }
0x1c2b   : > { %v3965_v4 = vpop.f32.mrb[78].mxu0 }
0x1c2c   : > { %v3969_v14 = vadd.f32 %v3963_v17, %v3812_v51  ;;  %v3966_v12 = vadd.f32 %v4582_v3, %v3965_v4  ;;  %v4966_v13 = vpop.f32.mrb[79].mxu0  ;;  %v4589_v3 = vld [vmem:[#allocation11] ss:$0 sm:$0xff] (!%p4588_p10)  ;;  %v4590_v17 = vld [vmem:[#allocation12] ss:$0 sm:$0xff] (!%p4588_p10) }
0x1c2e   : > { %v3970_v19 = vadd.f32 %v3966_v12, %v3813_v52  ;;  %v3971_v21 = vsel %vm1416_vm2, %v3969_v14, 0.0  ;;  %v3979_v24 = vmul.f32 %v3969_v14, %v3969_v14 }
0x1c2f   : > { %3972 = vadd.xlane.f32.xlu0 %v3971_v21 }
0x1c30   : > { %v3974_v25 = vsel %vm1416_vm2, %v3970_v19, 0.0  ;;  %v3980_v26 = vmul.f32 %v3970_v19, %v3970_v19  ;;  %v3981_v5 = vsel %vm1416_vm2, %v3979_v24, 0.0 }
0x1c31   : > { %3975 = vadd.xlane.f32.xlu1 %v3974_v25 }
0x1c32   : > { %v3984_v6 = vsel %vm1416_vm2, %v3980_v26, 0.0 }
0x1c33   : > { %3982 = vadd.xlane.f32.xlu0 %v3981_v5 }
0x1c35   : > { %3985 = vadd.xlane.f32.xlu1 %v3984_v6 }
0x1cbc   : > { %v3973_v29 = vpop.xlane.xlu0 %3972 }
0x1cbd   : > { %v3977_v57 = vmul.f32 0.03125, %v3973_v29 }
0x1cbe   : > { %v3976_v30 = vpop.xlane.xlu1 %3975 }
0x1cbf   : > { %v3978_v58 = vmul.f32 0.03125, %v3976_v30  ;;  %v3989_v32 = vmul.f32 %v3977_v57, %v3977_v57  ;;  %v3993_v9 = vsub.f32 %v3969_v14, %v3977_v57 }
0x1cc0   : > { %v3983_v31 = vpop.xlane.xlu0 %3982 }
0x1cc1   : > { %v3987_v33 = vmul.f32 0.03125, %v3983_v31  ;;  %v3990_v34 = vmul.f32 %v3978_v58, %v3978_v58  ;;  %v3994_v16 = vsub.f32 %v3970_v19, %v3978_v58 }
0x1cc2   : > { %v3986_v0 = vpop.xlane.xlu1 %3985 }
0x1cc3   : > { %v3991_v8 = vsub.f32 %v3987_v33, %v3989_v32  ;;  %v3988_v18 = vmul.f32 0.03125, %v3986_v0 }
0x1cc5   : > { %v3995_v11 = vadd.f32 1e-05, %v3991_v8  ;;  %v3992_v37 = vsub.f32 %v3988_v18, %v3990_v34 }
0x1cc7   : > { %5268 = vrsqrt.f32 %v3995_v11  ;;  %v3996_v38 = vadd.f32 1e-05, %v3992_v37 }
0x1cc9   : > { %5270 = vrsqrt.f32 %v3996_v38 }
0x1cd1   : > { %v5269_v39 = vpop.eup %5268 }
0x1cd2   : > { %v3999_v15 = vmul.f32 %v5269_v39, %v3993_v9 }
0x1cd3   : > { %v5271_v20 = vpop.eup %5270 }
0x1cd4   : > { %v4005_v28 = vmul.f32 %v4004_v10, %v3999_v15  ;;  %v4000_v40 = vmul.f32 %v5271_v20, %v3994_v16  ;;  %4018 = sbr.rel (%p4588_p10) target bundleno = 7557 (0x1d85), region = 188 }
0x1cd6   : > { %v4011_v41 = vadd.f32 %v4010_v36, %v4005_v28  ;;  %v4006_v42 = vmul.f32 %v4004_v10, %v4000_v40 }
0x1cd8   : > { %4013 = vst.msk [vmem:[#allocation2] sm:$0xff] %vm1416_vm2, %v4011_v41  ;;  %v4012_v44 = vadd.f32 %v4010_v36, %v4006_v42  ;;  %v4021_v43 = vsel (!%p4588_p10), %vm1416_vm2, %v4011_v41, 0.0  ;;  %v4029_v46 = vmul.f32 (!%p4588_p10), %v4011_v41, %v4011_v41 }
0x1cd9   : > { %4022 = vadd.xlane.f32.xlu0 (!%p4588_p10), %v4021_v43 }
0x1cda   : > { %4014 = vst.msk [vmem:[#allocation2 + $0x8] sm:$0xff] %vm1416_vm2, %v4012_v44  ;;  %v4030_v45 = vmul.f32 (!%p4588_p10), %v4012_v44, %v4012_v44  ;;  %v4031_v50 = vsel (!%p4588_p10), %vm1416_vm2, %v4029_v46, 0.0  ;;  %v4024_v47 = vsel (!%p4588_p10), %vm1416_vm2, %v4012_v44, 0.0 }
0x1cdb   : > { %4032 = vadd.xlane.f32.xlu1 %v4031_v50 }
0x1cdc   : > { %v4034_v48 = vsel %vm1416_vm2, %v4030_v45, 0.0 }
0x1cdd   : > { %4025 = vadd.xlane.f32.xlu0 %v4024_v47 }
0x1cdf   : > { %4035 = vadd.xlane.f32.xlu1 %v4034_v48 }
0x1d66   : > { %v4023_v49 = vpop.xlane.xlu0 %4022 }
0x1d67   : > { %v4027_v51 = vmul.f32 0.03125, %v4023_v49 }
0x1d68   : > { %v4033_v52 = vpop.xlane.xlu1 %4032 }
0x1d69   : > { %v4039_v27 = vmul.f32 %v4027_v51, %v4027_v51  ;;  %v4037_v23 = vmul.f32 0.03125, %v4033_v52  ;;  %v4043_v1 = vsub.f32 %v4011_v41, %v4027_v51 }
0x1d6a   : > { %v4026_v53 = vpop.xlane.xlu0 %4025 }
0x1d6b   : > { %v4041_v54 = vsub.f32 %v4037_v23, %v4039_v27  ;;  %v4028_v55 = vmul.f32 0.03125, %v4026_v53 }
0x1d6c   : > { %v4036_v56 = vpop.xlane.xlu1 %4035 }
0x1d6d   : > { %v4045_v59 = vadd.f32 1e-05, %v4041_v54  ;;  %v4040_v60 = vmul.f32 %v4028_v55, %v4028_v55  ;;  %v4038_v61 = vmul.f32 0.03125, %v4036_v56  ;;  %v4044_v4 = vsub.f32 %v4012_v44, %v4028_v55 }
0x1d6f   : > { %5272 = vrsqrt.f32 %v4045_v59  ;;  %v4042_v62 = vsub.f32 %v4038_v61, %v4040_v60 }
0x1d71   : > { %v4046_v63 = vadd.f32 1e-05, %v4042_v62 }
0x1d73   : > { %5274 = vrsqrt.f32 %v4046_v63 }
0x1d79   : > { %v5273_v7 = vpop.eup %5272 }
0x1d7a   : > { %v4049_v2 = vmul.f32 %v5273_v7, %v4043_v1 }
0x1d7c   : > { %v4057_v22 = vmul.f32 %v4589_v3, %v4049_v2 }
0x1d7d   : > { %v5275_v14 = vpop.eup %5274 }
0x1d7e   : > { %v4065_v12 = vadd.f32 %v4590_v17, %v4057_v22  ;;  %v4050_v13 = vmul.f32 %v5275_v14, %v4044_v4 }
0x1d80   : > { %4067 = vst.msk [vmem:[#allocation22] sm:$0xff] %vm1416_vm2, %v4065_v12  ;;  %v4058_v19 = vmul.f32 %v4589_v3, %v4050_v13 }
0x1d82   : > { %v4066_v21 = vadd.f32 %v4590_v17, %v4058_v19 }
0x1d84   : > { %4068 = vst.msk [vmem:[#allocation22 + $0x8] sm:$0xff] %vm1416_vm2, %v4066_v21 }
0x1d85 PF: > { %s7225_s13 = sld [smem:[#allocation34_spill]]  ;;  %s5812_s28 = smov [#allocation22]  }
0x1d86   : > { %s4078_s22 = sshll.u32 %s5812_s28, 4  ;;  %s4079_s22 = int_to_ptr.vmem [resolvable:$true] %s4078_s22 }
0x1d87   : > { %s5684_s24 = scalar_lea.vmem %s4079_s22, 256  ;;  %p5691_p7 = scmp.lt.s32.totalorder %s4079_s22, %s4079_s22 }
0x1d88   : > { %p5685_p6 = scmp.ne.s32.totalorder %s4079_s22, %s5684_s24  ;;  %p5692_p13 = scmp.lt.s32.totalorder %s5684_s24, %s5684_s24 }
0x1d8a   : > { %p5693_p2 = por %p5692_p13, %p5691_p7 }
0x1d8b   : > { %p5068_p5 = scmp.eq.s32.totalorder %s7225_s13, 1 }
0x1d8d   : > { %p5686_p8 = pnand %p5685_p6, %p5068_p5 }
0x1d8f   : > { %p5687_p3 = pneg %p5686_p8 }
0x1d91   : > { %p5694_p4 = pnand %p5693_p2, %p5687_p3 }
0x1d93   : > { %5697 = shalt.err (!%p5694_p4)
}
0x1d94   : > { %s7226_s29 = sld [smem:[#allocation64_spill]] }
0x1d9a   : > { %s5698_s25 = scalar_lea.hbm %s7226_s29, 256 }
0x1d9b   : > { %p5699_p1 = scmp.ne.s32.totalorder %s7226_s29, %s5698_s25  ;;  %p5704_p11 = scmp.lt.u32.totalorder %s5698_s25, %s7226_s29 }
0x1d9d   : > { %p5700_p12 = pnand %p5699_p1, %p5068_p5 }
0x1d9f   : > { %p5701_p0 = pneg %p5700_p12 }
0x1da1   : > { %p5706_p9 = pnand %p5704_p11, %p5701_p0 }
0x1da3   : > { %5709 = shalt.err (!%p5706_p9)
}
0x1da4   : > { %s5813_s2 = smov 128  }
0x1da5   : > { %5008 = dma.vmem_to_hbm [thread:$0]  (%p5068_p5), %s4079_s22, 256, %s7226_s29, [#allocation5], %s5813_s2, %s5813_s2, %s5809_s18  }
0x1da6   : > { %5755 = dma.done.wait (%p5068_p5), [#allocation5], 256  }
0x1da7   : > { %5757 = vsyncadd (%p5068_p5), [#allocation5], 4294967040 }
0x1da8 PF: > { %s7227_s20 = sld [smem:[#allocation33_spill]]  ;;  %s7228_s27 = sld [smem:[#allocation29_spill]] }
0x1da9   : > { %s7229_s3 = sld [smem:[#allocation30_spill]]  ;;  %s7230_s7 = sld [smem:[#allocation36_spill]] }
0x1daa   : > { %s7231_s28 = sld [smem:[#allocation32_spill]]  ;;  %s7232_s8 = sld [smem:[#allocation35_spill]] }
0x1dae   : > { %s41_s4 = sadd.s32 1, %s7227_s20  }
0x1daf   : > { %p38_p10 = scmp.ge.s32.totalorder %s41_s4, 4  }
0x1db1   :  { %40 = sbr.rel (!%p38_p10) target bundleno = 35 (0x23), region = 310 }
0x1db8   :  { %4094 = vsyncpa [#allocation4], 1 }
0x1db9   :  { %4096 = vsyncpa [#allocation4 + $0x1], 1 }
0x1dba   :  { %4097 = vsyncpa [#allocation7], 1 }
0x1dbb   :  { %4098 = vsyncpa [#allocation10], 1 }
0x1dbc   :  { %4099 = vsyncpa [#allocation13], 1 }
0x1dbd   :  { %4100 = vsyncpa [#allocation5], 1 }
0x1dbe   :  { %4102 = vsyncpa [#allocation5 + $0x1], 1 }

</bundles_post_ra>
